<compile_context>
chip_gen: v7x
topology: tpu7x:2x2x1
jax: 0.10.0
libtpu: 0.0.40
codegen_flags: <defaults>
</compile_context>

<pallas_src>
import numpy as np
import jax
import jax.numpy as jnp
from jax.experimental import pallas as pl
from jax.experimental.pallas import tpu as pltpu


# ------------------------------ fused Pallas kernel --------------------------

def _make_fused_kernel(num_stages, C, H, W):
    """PSP stages (pool -> depthwise3x3 -> bilinear-up) + 1x1 proj + BN + PReLU
    for one batch element, fully fused.  Stage activations travel as
    (channel*row on sublanes, width on lanes); the feature stack and the
    projection are lane-dense (H*W on lanes)."""
    CH = C * H

    def kernel(x2d_ref, xlane_ref, *refs):
        feats_ref = refs[-1]            # VMEM scratch (5C, H*W), lane-dense
        o_ref = refs[-2]                # (1, Cout, H*W)
        alpha_ref = refs[-3]            # (Cout, 1) PReLU slope
        bias_ref = refs[-4]             # (Cout, 1) folded-BN bias
        wp_ref = refs[-5]               # (Cout, 5C) 1x1 weight, BN scale folded
        const_refs = refs[:-5]

        f32 = jnp.float32
        # identity feature (feats[0]) arrives already lane-dense: (C, H*W)
        feats_ref[0:C, :] = xlane_ref[0].astype(f32)

        cur = x2d_ref[0].astype(f32)                      # (C*H, W)
        for s in range(num_stages):                       # static unroll (shapes differ)
            pwt_ref, bph_ref, gs_ref, rt_ref = const_refs[4 * s:4 * s + 4]
            # avg_pool2d(k=3, s=2, p=1), count_include_pad=True -> separable 1/3 taps
            t = jnp.dot(cur, pwt_ref[...], preferred_element_type=f32)   # (C*hp, wo)
            p = jnp.dot(bph_ref[...], t, preferred_element_type=f32)     # (C*ho, wo)
            # depthwise 3x3 (weights folded into Gs) + bilinear upsample:
            # one wide matmul + three small tap matmuls (6 MXU pushes per stage).
            z = jnp.dot(gs_ref[...], p, preferred_element_type=f32)      # (3*C*H, wo)
            up = (jnp.dot(z[0 * CH:1 * CH, :], rt_ref[0], preferred_element_type=f32)
                  + jnp.dot(z[1 * CH:2 * CH, :], rt_ref[1], preferred_element_type=f32)
                  + jnp.dot(z[2 * CH:3 * CH, :], rt_ref[2], preferred_element_type=f32))
            # `up` rows are (image-row, channel)-ordered (Gs rows pre-permuted on
            # host), so each image row is a contiguous (C, W) slab -> lane-dense
            # relayout into the (5C, H*W) feature scratch with contiguous slices.
            base = (s + 1) * C
            for h in range(H):
                feats_ref[base:base + C, h * W:(h + 1) * W] = up[h * C:(h + 1) * C, :]
            cur = p                                       # next stage pools this

        # 1x1 projection (+ folded BN) + PReLU; HW = 256 lanes -> unmasked stores.
        f = feats_ref[...]                                # (5C, HW)
        y = jnp.dot(wp_ref[...], f, preferred_element_type=f32)          # (Cout, HW)
        y = y + bias_ref[...]
        y = jnp.where(y > 0, y, alpha_ref[...] * y)       # per-channel PReLU
        o_ref[0] = y.astype(o_ref.dtype)

    return kernel


# ------------------------------ pallas_call wrapper ---------------------------

def psp_forward(x_nchw, consts, wp_folded, bias, alpha):
    """x_nchw: (N, C, H, W) f32.  consts: per-stage (PwT, BPh, Gs, RT)."""
    N, C, H, W = x_nchw.shape
    HW = H * W
    num_stages = len(consts)
    Cout = wp_folded.shape[0]
    flat = [a for sc in consts for a in sc]

    # Boundary reshapes: both are tiny (N*C*H*W elements) host/XLA-side copies.
    x2d = x_nchw.reshape(N, C * H, W)     # (c, h) on sublanes, w on lanes
    xlane = x_nchw.reshape(N, C, HW)      # lane-dense identity feature

    in_specs = [pl.BlockSpec((1, C * H, W), lambda n: (n, 0, 0)),
                pl.BlockSpec((1, C, HW), lambda n: (n, 0, 0))]
    for arr in flat:  # constants: full-array blocks, same block every grid step
        in_specs.append(pl.BlockSpec(arr.shape, lambda n, _nd=arr.ndim: (0,) * _nd))
    in_specs += [pl.BlockSpec(wp_folded.shape, lambda n: (0, 0)),
                 pl.BlockSpec(bias.shape, lambda n: (0, 0)),
                 pl.BlockSpec(alpha.shape, lambda n: (0, 0))]

    # Advisory cost estimate.
    CH = C * H
    flops = 0
    for (pwt, bph, gs, rt) in consts:
        w_prev, wo = pwt.shape
        cho, chprev = bph.shape
        flops += 2 * chprev * w_prev * wo                 # pool along w
        flops += 2 * cho * chprev * wo                    # pool along h
        flops += 2 * gs.shape[0] * gs.shape[1] * wo       # folded conv (wide matmul)
        flops += 3 * 2 * CH * wo * W                      # 3 upsample taps
    flops += 2 * Cout * (num_stages + 1) * C * HW + 3 * Cout * HW
    flops *= N
    bytes_accessed = 4 * (x2d.size + xlane.size
                          + sum(int(np.prod(a.shape)) for a in flat)
                          + wp_folded.size + bias.size + alpha.size
                          + N * Cout * HW)

    out = pl.pallas_call(
        _make_fused_kernel(num_stages, C, H, W),
        out_shape=jax.ShapeDtypeStruct((N, Cout, HW), x_nchw.dtype),
        grid=(N,),
        in_specs=in_specs,
        out_specs=pl.BlockSpec((1, Cout, HW), lambda n: (n, 0, 0)),
        scratch_shapes=[pltpu.VMEM(((num_stages + 1) * C, HW), jnp.float32)],
        compiler_params=pltpu.CompilerParams(
            dimension_semantics=("parallel",),
            vmem_limit_bytes=32 * 1024 * 1024),
        cost_estimate=pl.CostEstimate(flops=int(flops), transcendentals=0,
                                      bytes_accessed=int(bytes_accessed)),
    )(x2d, xlane, *flat, wp_folded, bias, alpha)
    return out.reshape(N, Cout, H, W)


# ------------------------------ static spatial factors (host numpy) -----------

def _avgpool1d_matrix(size):
    # 1-D factor of avg_pool2d(k=3, s=2, p=1); count_include_pad=True -> 1/3 taps.
    out = (size + 2 - 3) // 2 + 1
    P = np.zeros((out, size), np.float32)
    for o in range(out):
        for t in range(3):
            j = 2 * o - 1 + t
            if 0 <= j < size:
                P[o, j] = 1.0 / 3.0
    return P, out


def _upsample1d_matrix(out_size, in_size):
    # 1-D factor of F.interpolate(mode='bilinear', align_corners=True).
    A = np.zeros((out_size, in_size), np.float32)
    if in_size == 1:
        A[:, 0] = 1.0
        return A
    if out_size == 1:
        A[0, 0] = 1.0
        return A
    scale = (in_size - 1) / (out_size - 1)
    for o in range(out_size):
        src = o * scale
        i0 = min(int(np.floor(src)), in_size - 1)
        i1 = min(i0 + 1, in_size - 1)
        w1 = src - i0
        A[o, i0] += 1.0 - w1
        A[o, i1] += w1
    return A


def _shift1d_matrices(n):
    # R[a][i, j] = 1 iff j == i + a - 1 (zero-padded 3-tap shift operators).
    R = np.zeros((3, n, n), np.float32)
    for a in range(3):
        for i in range(n):
            j = i + a - 1
            if 0 <= j < n:
                R[a, i, j] = 1.0
    return R


def precompute_constants(params, C, H, W, num_stages=4):
    """One-time host-side (numpy) build of all stage factors + folded projection."""
    dw_list = [np.asarray(w, np.float32) for w in params["dw"]]
    eye_c = np.eye(C, dtype=np.float32)
    consts = []
    ch, cw = H, W
    for s in range(num_stages):
        Ph, ho = _avgpool1d_matrix(ch)                  # (ho, ch)
        Pw, wo = _avgpool1d_matrix(cw)                  # (wo, cw)
        PwT = np.ascontiguousarray(Pw.T)                # (cw, wo)
        BPh = np.kron(eye_c, Ph).astype(np.float32)     # (C*ho, C*ch) block-diag
        Ah = _upsample1d_matrix(H, ho)                  # (H, ho)
        Aw = _upsample1d_matrix(W, wo)                  # (W, wo)
        Rh = _shift1d_matrices(ho)                      # (3, ho, ho)
        Rw = _shift1d_matrices(wo)                      # (3, wo, wo)
        L = np.einsum('hi,aij->ahj', Ah, Rh)            # (3, H, ho)  = Ah @ shift_h(a)
        RT = np.einsum('wj,bjk->bkw', Aw, Rw)           # (3, wo, W)  = (Aw @ shift_w(b))^T
        w_s = dw_list[s]                                # (C, 3, 3) depthwise weights
        M = np.einsum('cab,ahi->bchi', w_s, L)          # (3, C, H, ho) dw folded into Ah
        # Gs rows ordered (tap b, image-row h, channel c); block-diag over channels,
        # built by direct scatter (no large broadcast temporaries).
        Gs = np.zeros((3 * H * C, C * ho), np.float32)
        for b in range(3):
            for c in range(C):
                rows = b * H * C + np.arange(H) * C + c
                Gs[rows, c * ho:(c + 1) * ho] = M[b, c]
        consts.append(tuple(jnp.asarray(a.astype(np.float32))
                            for a in (PwT, BPh, Gs, RT)))
        ch, cw = ho, wo

    # Fold inference-mode BN scale into the 1x1 projection weight.
    wp = np.asarray(params["w_proj"], np.float32)
    scale = np.asarray(params["scale"], np.float32)
    wp_folded = jnp.asarray(wp * scale[:, None])
    bias = jnp.asarray(np.asarray(params["bias"], np.float32)[:, None])
    alpha = jnp.asarray(np.asarray(params["alpha"], np.float32)[:, None])
    return consts, wp_folded, bias, alpha


# ------------------------------ parameters ------------------------------------

def init_params(key, in_channels, out_channels, num_stages=4):
    keys = jax.random.split(key, num_stages + 5)
    # depthwise Conv2d(C, C, 3, 1, 1, groups=C, bias=False): weight (C, 1, 3, 3)
    dw = [jax.random.normal(keys[s], (in_channels, 3, 3), jnp.float32) * 0.1
          for s in range(num_stages)]
    cin = in_channels * (num_stages + 1)
    # project: Conv2d(5C, Cout, 1, bias=False): weight (Cout, 5C, 1, 1) -> (Cout, 5C)
    w_proj = jax.random.normal(keys[num_stages], (out_channels, cin), jnp.float32) * 0.1
    # BatchNorm2d, inference mode (folded).
    # TODO(synk): training-mode batch statistics are not reproduced.
    gamma = 1.0 + 0.1 * jax.random.normal(keys[num_stages + 1], (out_channels,), jnp.float32)
    beta = 0.1 * jax.random.normal(keys[num_stages + 2], (out_channels,), jnp.float32)
    r_mean = 0.1 * jax.random.normal(keys[num_stages + 3], (out_channels,), jnp.float32)
    r_var = jnp.abs(jax.random.normal(keys[num_stages + 4], (out_channels,), jnp.float32)) + 0.5
    eps = 1e-5
    scale = gamma / jnp.sqrt(r_var + eps)
    bias = beta - r_mean * scale
    alpha = jnp.full((out_channels,), 0.25, jnp.float32)   # nn.PReLU(Cout) default
    return dict(dw=dw, w_proj=w_proj, scale=scale, bias=bias, alpha=alpha)


# ------------------------------ main -------------------------------------------

if __name__ == "__main__":
    key = jax.random.PRNGKey(0)
    k_x, k_p = jax.random.split(key)
    N, C, H, W = 2, 4, 16, 16
    out_channels = 32
    num_stages = 4

    x = jax.random.normal(k_x, (N, C, H, W), jnp.float32)
    params = init_params(k_p, C, out_channels, num_stages)
    # One-time host-side constant build (hoisted out of the forward pass).
    consts, wp_folded, bias, alpha = precompute_constants(params, C, H, W, num_stages)

    y = psp_forward(x, consts, wp_folded, bias, alpha)
    y = jax.block_until_ready(y)
    assert y.shape == (N, out_channels, H, W), y.shape
    assert bool(jnp.isfinite(y).all())
    print("KERNEL_OK")
</pallas_src>

<mosaic_0001>
module attributes {stable_mosaic.version = 11 : i64} {
  func.func @kernel(%arg0: i32, %arg1: memref<1x64x16xf32, #tpu.memory_space<vmem>>, %arg2: memref<1x4x256xf32, #tpu.memory_space<vmem>>, %arg3: memref<16x8xf32, #tpu.memory_space<vmem>>, %arg4: memref<32x64xf32, #tpu.memory_space<vmem>>, %arg5: memref<192x32xf32, #tpu.memory_space<vmem>>, %arg6: memref<3x8x16xf32, #tpu.memory_space<vmem>>, %arg7: memref<8x4xf32, #tpu.memory_space<vmem>>, %arg8: memref<16x32xf32, #tpu.memory_space<vmem>>, %arg9: memref<192x16xf32, #tpu.memory_space<vmem>>, %arg10: memref<3x4x16xf32, #tpu.memory_space<vmem>>, %arg11: memref<4x2xf32, #tpu.memory_space<vmem>>, %arg12: memref<8x16xf32, #tpu.memory_space<vmem>>, %arg13: memref<192x8xf32, #tpu.memory_space<vmem>>, %arg14: memref<3x2x16xf32, #tpu.memory_space<vmem>>, %arg15: memref<2x1xf32, #tpu.memory_space<vmem>>, %arg16: memref<4x8xf32, #tpu.memory_space<vmem>>, %arg17: memref<192x4xf32, #tpu.memory_space<vmem>>, %arg18: memref<3x1x16xf32, #tpu.memory_space<vmem>>, %arg19: memref<32x20xf32, #tpu.memory_space<vmem>>, %arg20: memref<32x1xf32, #tpu.memory_space<vmem>>, %arg21: memref<32x1xf32, #tpu.memory_space<vmem>>, %arg22: memref<1x32x256xf32, #tpu.memory_space<vmem>>, %arg23: memref<20x256xf32, #tpu.memory_space<vmem>>) attributes {dimension_semantics = [#tpu.dimension_semantics<parallel>], iteration_bounds = array<i64: 2>, scalar_prefetch = 0 : i64, scratch_operands = 1 : i64, tpu.core_type = #tpu.core_type<tc>, window_params = [{transform_indices = @transform_0, window_bounds = array<i64: 1, 64, 16>}, {transform_indices = @transform_1, window_bounds = array<i64: 1, 4, 256>}, {pipeline_mode = #tpu.pipeline_mode<synchronous>, transform_indices = @transform_2, window_bounds = array<i64: 16, 8>}, {pipeline_mode = #tpu.pipeline_mode<synchronous>, transform_indices = @transform_3, window_bounds = array<i64: 32, 64>}, {pipeline_mode = #tpu.pipeline_mode<synchronous>, transform_indices = @transform_4, window_bounds = array<i64: 192, 32>}, {pipeline_mode = #tpu.pipeline_mode<synchronous>, transform_indices = @transform_5, window_bounds = array<i64: 3, 8, 16>}, {pipeline_mode = #tpu.pipeline_mode<synchronous>, transform_indices = @transform_6, window_bounds = array<i64: 8, 4>}, {pipeline_mode = #tpu.pipeline_mode<synchronous>, transform_indices = @transform_7, window_bounds = array<i64: 16, 32>}, {pipeline_mode = #tpu.pipeline_mode<synchronous>, transform_indices = @transform_8, window_bounds = array<i64: 192, 16>}, {pipeline_mode = #tpu.pipeline_mode<synchronous>, transform_indices = @transform_9, window_bounds = array<i64: 3, 4, 16>}, {pipeline_mode = #tpu.pipeline_mode<synchronous>, transform_indices = @transform_10, window_bounds = array<i64: 4, 2>}, {pipeline_mode = #tpu.pipeline_mode<synchronous>, transform_indices = @transform_11, window_bounds = array<i64: 8, 16>}, {pipeline_mode = #tpu.pipeline_mode<synchronous>, transform_indices = @transform_12, window_bounds = array<i64: 192, 8>}, {pipeline_mode = #tpu.pipeline_mode<synchronous>, transform_indices = @transform_13, window_bounds = array<i64: 3, 2, 16>}, {pipeline_mode = #tpu.pipeline_mode<synchronous>, transform_indices = @transform_14, window_bounds = array<i64: 2, 1>}, {pipeline_mode = #tpu.pipeline_mode<synchronous>, transform_indices = @transform_15, window_bounds = array<i64: 4, 8>}, {pipeline_mode = #tpu.pipeline_mode<synchronous>, transform_indices = @transform_16, window_bounds = array<i64: 192, 4>}, {pipeline_mode = #tpu.pipeline_mode<synchronous>, transform_indices = @transform_17, window_bounds = array<i64: 3, 1, 16>}, {pipeline_mode = #tpu.pipeline_mode<synchronous>, transform_indices = @transform_18, window_bounds = array<i64: 32, 20>}, {pipeline_mode = #tpu.pipeline_mode<synchronous>, transform_indices = @transform_19, window_bounds = array<i64: 32, 1>}, {pipeline_mode = #tpu.pipeline_mode<synchronous>, transform_indices = @transform_20, window_bounds = array<i64: 32, 1>}, {transform_indices = @transform_21, window_bounds = array<i64: 1, 32, 256>}]} {
    %c0 = arith.constant 0 : index
    %c0_0 = arith.constant 0 : index
    %c0_1 = arith.constant 0 : index
    %0 = vector.load %arg2[%c0, %c0_0, %c0_1] : memref<1x4x256xf32, #tpu.memory_space<vmem>>, vector<1x4x256xf32>
    %1 = vector.shape_cast %0 : vector<1x4x256xf32> to vector<4x256xf32>
    %c0_2 = arith.constant 0 : index
    %c0_3 = arith.constant 0 : index
    %2 = vector.load %arg23[%c0_2, %c0_3] : memref<20x256xf32, #tpu.memory_space<vmem>>, vector<4x256xf32>
    tpu.vector_store %arg23[%c0_2, %c0_3], %1 {strides = array<i32>} : memref<20x256xf32, #tpu.memory_space<vmem>>, vector<4x256xf32>,
    %c0_4 = arith.constant 0 : index
    %c0_5 = arith.constant 0 : index
    %c0_6 = arith.constant 0 : index
    %3 = vector.load %arg1[%c0_4, %c0_5, %c0_6] : memref<1x64x16xf32, #tpu.memory_space<vmem>>, vector<1x64x16xf32>
    %4 = vector.shape_cast %3 : vector<1x64x16xf32> to vector<64x16xf32>
    %c0_7 = arith.constant 0 : index
    %c0_8 = arith.constant 0 : index
    %5 = vector.load %arg3[%c0_7, %c0_8] : memref<16x8xf32, #tpu.memory_space<vmem>>, vector<16x8xf32>
    %cst = arith.constant dense<0.000000e+00> : vector<64x8xf32>
    %6 = tpu.matmul %4, %5, %cst {dimension_numbers = #tpu.dot_dimension_numbers<[1], [0], [0], [1], [0, 0, 1, 1], [], []>} : vector<64x16xf32>, vector<16x8xf32>, vector<64x8xf32> -> vector<64x8xf32>
    %c0_9 = arith.constant 0 : index
    %c0_10 = arith.constant 0 : index
    %7 = vector.load %arg4[%c0_9, %c0_10] : memref<32x64xf32, #tpu.memory_space<vmem>>, vector<32x64xf32>
    %cst_11 = arith.constant dense<0.000000e+00> : vector<32x8xf32>
    %8 = tpu.matmul %7, %6, %cst_11 {dimension_numbers = #tpu.dot_dimension_numbers<[1], [0], [0], [1], [0, 0, 1, 1], [], []>} : vector<32x64xf32>, vector<64x8xf32>, vector<32x8xf32> -> vector<32x8xf32>
    %c0_12 = arith.constant 0 : index
    %c0_13 = arith.constant 0 : index
    %9 = vector.load %arg5[%c0_12, %c0_13] : memref<192x32xf32, #tpu.memory_space<vmem>>, vector<192x32xf32>
    %cst_14 = arith.constant dense<0.000000e+00> : vector<192x8xf32>
    %10 = tpu.matmul %9, %8, %cst_14 {dimension_numbers = #tpu.dot_dimension_numbers<[1], [0], [0], [1], [0, 0, 1, 1], [], []>} : vector<192x32xf32>, vector<32x8xf32>, vector<192x8xf32> -> vector<192x8xf32>
    %11 = vector.extract_strided_slice %10 {offsets = [0, 0], sizes = [64, 8], strides = [1, 1]} : vector<192x8xf32> to vector<64x8xf32>
    %c0_15 = arith.constant 0 : index
    %c0_16 = arith.constant 0 : index
    %c0_17 = arith.constant 0 : index
    %12 = vector.load %arg6[%c0_15, %c0_16, %c0_17] : memref<3x8x16xf32, #tpu.memory_space<vmem>>, vector<1x8x16xf32>
    %13 = vector.shape_cast %12 : vector<1x8x16xf32> to vector<8x16xf32>
    %cst_18 = arith.constant dense<0.000000e+00> : vector<64x16xf32>
    %14 = tpu.matmul %11, %13, %cst_18 {dimension_numbers = #tpu.dot_dimension_numbers<[1], [0], [0], [1], [0, 0, 1, 1], [], []>} : vector<64x8xf32>, vector<8x16xf32>, vector<64x16xf32> -> vector<64x16xf32>
    %15 = vector.extract_strided_slice %10 {offsets = [64, 0], sizes = [64, 8], strides = [1, 1]} : vector<192x8xf32> to vector<64x8xf32>
    %c1 = arith.constant 1 : index
    %c0_19 = arith.constant 0 : index
    %c0_20 = arith.constant 0 : index
    %16 = vector.load %arg6[%c1, %c0_19, %c0_20] : memref<3x8x16xf32, #tpu.memory_space<vmem>>, vector<1x8x16xf32>
    %17 = vector.shape_cast %16 : vector<1x8x16xf32> to vector<8x16xf32>
    %cst_21 = arith.constant dense<0.000000e+00> : vector<64x16xf32>
    %18 = tpu.matmul %15, %17, %cst_21 {dimension_numbers = #tpu.dot_dimension_numbers<[1], [0], [0], [1], [0, 0, 1, 1], [], []>} : vector<64x8xf32>, vector<8x16xf32>, vector<64x16xf32> -> vector<64x16xf32>
    %19 = arith.addf %14, %18 : vector<64x16xf32>
    %20 = vector.extract_strided_slice %10 {offsets = [128, 0], sizes = [64, 8], strides = [1, 1]} : vector<192x8xf32> to vector<64x8xf32>
    %c2 = arith.constant 2 : index
    %c0_22 = arith.constant 0 : index
    %c0_23 = arith.constant 0 : index
    %21 = vector.load %arg6[%c2, %c0_22, %c0_23] : memref<3x8x16xf32, #tpu.memory_space<vmem>>, vector<1x8x16xf32>
    %22 = vector.shape_cast %21 : vector<1x8x16xf32> to vector<8x16xf32>
    %cst_24 = arith.constant dense<0.000000e+00> : vector<64x16xf32>
    %23 = tpu.matmul %20, %22, %cst_24 {dimension_numbers = #tpu.dot_dimension_numbers<[1], [0], [0], [1], [0, 0, 1, 1], [], []>} : vector<64x8xf32>, vector<8x16xf32>, vector<64x16xf32> -> vector<64x16xf32>
    %24 = arith.addf %19, %23 : vector<64x16xf32>
    %25 = vector.extract_strided_slice %24 {offsets = [0, 0], sizes = [4, 16], strides = [1, 1]} : vector<64x16xf32> to vector<4x16xf32>
    %c4 = arith.constant 4 : index
    %c0_25 = arith.constant 0 : index
    %26 = vector.load %arg23[%c4, %c0_25] : memref<20x256xf32, #tpu.memory_space<vmem>>, vector<4x16xf32>
    tpu.vector_store %arg23[%c4, %c0_25], %25 {strides = array<i32>} : memref<20x256xf32, #tpu.memory_space<vmem>>, vector<4x16xf32>,
    %27 = vector.extract_strided_slice %24 {offsets = [4, 0], sizes = [4, 16], strides = [1, 1]} : vector<64x16xf32> to vector<4x16xf32>
    %c4_26 = arith.constant 4 : index
    %c16 = arith.constant 16 : index
    %28 = vector.load %arg23[%c4_26, %c16] : memref<20x256xf32, #tpu.memory_space<vmem>>, vector<4x16xf32>
    tpu.vector_store %arg23[%c4_26, %c16], %27 {strides = array<i32>} : memref<20x256xf32, #tpu.memory_space<vmem>>, vector<4x16xf32>,
    %29 = vector.extract_strided_slice %24 {offsets = [8, 0], sizes = [4, 16], strides = [1, 1]} : vector<64x16xf32> to vector<4x16xf32>
    %c4_27 = arith.constant 4 : index
    %c32 = arith.constant 32 : index
    %30 = vector.load %arg23[%c4_27, %c32] : memref<20x256xf32, #tpu.memory_space<vmem>>, vector<4x16xf32>
    tpu.vector_store %arg23[%c4_27, %c32], %29 {strides = array<i32>} : memref<20x256xf32, #tpu.memory_space<vmem>>, vector<4x16xf32>,
    %31 = vector.extract_strided_slice %24 {offsets = [12, 0], sizes = [4, 16], strides = [1, 1]} : vector<64x16xf32> to vector<4x16xf32>
    %c4_28 = arith.constant 4 : index
    %c48 = arith.constant 48 : index
    %32 = vector.load %arg23[%c4_28, %c48] : memref<20x256xf32, #tpu.memory_space<vmem>>, vector<4x16xf32>
    tpu.vector_store %arg23[%c4_28, %c48], %31 {strides = array<i32>} : memref<20x256xf32, #tpu.memory_space<vmem>>, vector<4x16xf32>,
    %33 = vector.extract_strided_slice %24 {offsets = [16, 0], sizes = [4, 16], strides = [1, 1]} : vector<64x16xf32> to vector<4x16xf32>
    %c4_29 = arith.constant 4 : index
    %c64 = arith.constant 64 : index
    %34 = vector.load %arg23[%c4_29, %c64] : memref<20x256xf32, #tpu.memory_space<vmem>>, vector<4x16xf32>
    tpu.vector_store %arg23[%c4_29, %c64], %33 {strides = array<i32>} : memref<20x256xf32, #tpu.memory_space<vmem>>, vector<4x16xf32>,
    %35 = vector.extract_strided_slice %24 {offsets = [20, 0], sizes = [4, 16], strides = [1, 1]} : vector<64x16xf32> to vector<4x16xf32>
    %c4_30 = arith.constant 4 : index
    %c80 = arith.constant 80 : index
    %36 = vector.load %arg23[%c4_30, %c80] : memref<20x256xf32, #tpu.memory_space<vmem>>, vector<4x16xf32>
    tpu.vector_store %arg23[%c4_30, %c80], %35 {strides = array<i32>} : memref<20x256xf32, #tpu.memory_space<vmem>>, vector<4x16xf32>,
    %37 = vector.extract_strided_slice %24 {offsets = [24, 0], sizes = [4, 16], strides = [1, 1]} : vector<64x16xf32> to vector<4x16xf32>
    %c4_31 = arith.constant 4 : index
    %c96 = arith.constant 96 : index
    %38 = vector.load %arg23[%c4_31, %c96] : memref<20x256xf32, #tpu.memory_space<vmem>>, vector<4x16xf32>
    tpu.vector_store %arg23[%c4_31, %c96], %37 {strides = array<i32>} : memref<20x256xf32, #tpu.memory_space<vmem>>, vector<4x16xf32>,
    %39 = vector.extract_strided_slice %24 {offsets = [28, 0], sizes = [4, 16], strides = [1, 1]} : vector<64x16xf32> to vector<4x16xf32>
    %c4_32 = arith.constant 4 : index
    %c112 = arith.constant 112 : index
    %40 = vector.load %arg23[%c4_32, %c112] : memref<20x256xf32, #tpu.memory_space<vmem>>, vector<4x16xf32>
    tpu.vector_store %arg23[%c4_32, %c112], %39 {strides = array<i32>} : memref<20x256xf32, #tpu.memory_space<vmem>>, vector<4x16xf32>,
    %41 = vector.extract_strided_slice %24 {offsets = [32, 0], sizes = [4, 16], strides = [1, 1]} : vector<64x16xf32> to vector<4x16xf32>
    %c4_33 = arith.constant 4 : index
    %c128 = arith.constant 128 : index
    %42 = vector.load %arg23[%c4_33, %c128] : memref<20x256xf32, #tpu.memory_space<vmem>>, vector<4x16xf32>
    tpu.vector_store %arg23[%c4_33, %c128], %41 {strides = array<i32>} : memref<20x256xf32, #tpu.memory_space<vmem>>, vector<4x16xf32>,
    %43 = vector.extract_strided_slice %24 {offsets = [36, 0], sizes = [4, 16], strides = [1, 1]} : vector<64x16xf32> to vector<4x16xf32>
    %c4_34 = arith.constant 4 : index
    %c144 = arith.constant 144 : index
    %44 = vector.load %arg23[%c4_34, %c144] : memref<20x256xf32, #tpu.memory_space<vmem>>, vector<4x16xf32>
    tpu.vector_store %arg23[%c4_34, %c144], %43 {strides = array<i32>} : memref<20x256xf32, #tpu.memory_space<vmem>>, vector<4x16xf32>,
    %45 = vector.extract_strided_slice %24 {offsets = [40, 0], sizes = [4, 16], strides = [1, 1]} : vector<64x16xf32> to vector<4x16xf32>
    %c4_35 = arith.constant 4 : index
    %c160 = arith.constant 160 : index
    %46 = vector.load %arg23[%c4_35, %c160] : memref<20x256xf32, #tpu.memory_space<vmem>>, vector<4x16xf32>
    tpu.vector_store %arg23[%c4_35, %c160], %45 {strides = array<i32>} : memref<20x256xf32, #tpu.memory_space<vmem>>, vector<4x16xf32>,
    %47 = vector.extract_strided_slice %24 {offsets = [44, 0], sizes = [4, 16], strides = [1, 1]} : vector<64x16xf32> to vector<4x16xf32>
    %c4_36 = arith.constant 4 : index
    %c176 = arith.constant 176 : index
    %48 = vector.load %arg23[%c4_36, %c176] : memref<20x256xf32, #tpu.memory_space<vmem>>, vector<4x16xf32>
    tpu.vector_store %arg23[%c4_36, %c176], %47 {strides = array<i32>} : memref<20x256xf32, #tpu.memory_space<vmem>>, vector<4x16xf32>,
    %49 = vector.extract_strided_slice %24 {offsets = [48, 0], sizes = [4, 16], strides = [1, 1]} : vector<64x16xf32> to vector<4x16xf32>
    %c4_37 = arith.constant 4 : index
    %c192 = arith.constant 192 : index
    %50 = vector.load %arg23[%c4_37, %c192] : memref<20x256xf32, #tpu.memory_space<vmem>>, vector<4x16xf32>
    tpu.vector_store %arg23[%c4_37, %c192], %49 {strides = array<i32>} : memref<20x256xf32, #tpu.memory_space<vmem>>, vector<4x16xf32>,
    %51 = vector.extract_strided_slice %24 {offsets = [52, 0], sizes = [4, 16], strides = [1, 1]} : vector<64x16xf32> to vector<4x16xf32>
    %c4_38 = arith.constant 4 : index
    %c208 = arith.constant 208 : index
    %52 = vector.load %arg23[%c4_38, %c208] : memref<20x256xf32, #tpu.memory_space<vmem>>, vector<4x16xf32>
    tpu.vector_store %arg23[%c4_38, %c208], %51 {strides = array<i32>} : memref<20x256xf32, #tpu.memory_space<vmem>>, vector<4x16xf32>,
    %53 = vector.extract_strided_slice %24 {offsets = [56, 0], sizes = [4, 16], strides = [1, 1]} : vector<64x16xf32> to vector<4x16xf32>
    %c4_39 = arith.constant 4 : index
    %c224 = arith.constant 224 : index
    %54 = vector.load %arg23[%c4_39, %c224] : memref<20x256xf32, #tpu.memory_space<vmem>>, vector<4x16xf32>
    tpu.vector_store %arg23[%c4_39, %c224], %53 {strides = array<i32>} : memref<20x256xf32, #tpu.memory_space<vmem>>, vector<4x16xf32>,
    %55 = vector.extract_strided_slice %24 {offsets = [60, 0], sizes = [4, 16], strides = [1, 1]} : vector<64x16xf32> to vector<4x16xf32>
    %c4_40 = arith.constant 4 : index
    %c240 = arith.constant 240 : index
    %56 = vector.load %arg23[%c4_40, %c240] : memref<20x256xf32, #tpu.memory_space<vmem>>, vector<4x16xf32>
    tpu.vector_store %arg23[%c4_40, %c240], %55 {strides = array<i32>} : memref<20x256xf32, #tpu.memory_space<vmem>>, vector<4x16xf32>,
    %c0_41 = arith.constant 0 : index
    %c0_42 = arith.constant 0 : index
    %57 = vector.load %arg7[%c0_41, %c0_42] : memref<8x4xf32, #tpu.memory_space<vmem>>, vector<8x4xf32>
    %cst_43 = arith.constant dense<0.000000e+00> : vector<32x4xf32>
    %58 = tpu.matmul %8, %57, %cst_43 {dimension_numbers = #tpu.dot_dimension_numbers<[1], [0], [0], [1], [0, 0, 1, 1], [], []>} : vector<32x8xf32>, vector<8x4xf32>, vector<32x4xf32> -> vector<32x4xf32>
    %c0_44 = arith.constant 0 : index
    %c0_45 = arith.constant 0 : index
    %59 = vector.load %arg8[%c0_44, %c0_45] : memref<16x32xf32, #tpu.memory_space<vmem>>, vector<16x32xf32>
    %cst_46 = arith.constant dense<0.000000e+00> : vector<16x4xf32>
    %60 = tpu.matmul %59, %58, %cst_46 {dimension_numbers = #tpu.dot_dimension_numbers<[1], [0], [0], [1], [0, 0, 1, 1], [], []>} : vector<16x32xf32>, vector<32x4xf32>, vector<16x4xf32> -> vector<16x4xf32>
    %c0_47 = arith.constant 0 : index
    %c0_48 = arith.constant 0 : index
    %61 = vector.load %arg9[%c0_47, %c0_48] : memref<192x16xf32, #tpu.memory_space<vmem>>, vector<192x16xf32>
    %cst_49 = arith.constant dense<0.000000e+00> : vector<192x4xf32>
    %62 = tpu.matmul %61, %60, %cst_49 {dimension_numbers = #tpu.dot_dimension_numbers<[1], [0], [0], [1], [0, 0, 1, 1], [], []>} : vector<192x16xf32>, vector<16x4xf32>, vector<192x4xf32> -> vector<192x4xf32>
    %63 = vector.extract_strided_slice %62 {offsets = [0, 0], sizes = [64, 4], strides = [1, 1]} : vector<192x4xf32> to vector<64x4xf32>
    %c0_50 = arith.constant 0 : index
    %c0_51 = arith.constant 0 : index
    %c0_52 = arith.constant 0 : index
    %64 = vector.load %arg10[%c0_50, %c0_51, %c0_52] : memref<3x4x16xf32, #tpu.memory_space<vmem>>, vector<1x4x16xf32>
    %65 = vector.shape_cast %64 : vector<1x4x16xf32> to vector<4x16xf32>
    %cst_53 = arith.constant dense<0.000000e+00> : vector<64x16xf32>
    %66 = tpu.matmul %63, %65, %cst_53 {dimension_numbers = #tpu.dot_dimension_numbers<[1], [0], [0], [1], [0, 0, 1, 1], [], []>} : vector<64x4xf32>, vector<4x16xf32>, vector<64x16xf32> -> vector<64x16xf32>
    %67 = vector.extract_strided_slice %62 {offsets = [64, 0], sizes = [64, 4], strides = [1, 1]} : vector<192x4xf32> to vector<64x4xf32>
    %c1_54 = arith.constant 1 : index
    %c0_55 = arith.constant 0 : index
    %c0_56 = arith.constant 0 : index
    %68 = vector.load %arg10[%c1_54, %c0_55, %c0_56] : memref<3x4x16xf32, #tpu.memory_space<vmem>>, vector<1x4x16xf32>
    %69 = vector.shape_cast %68 : vector<1x4x16xf32> to vector<4x16xf32>
    %cst_57 = arith.constant dense<0.000000e+00> : vector<64x16xf32>
    %70 = tpu.matmul %67, %69, %cst_57 {dimension_numbers = #tpu.dot_dimension_numbers<[1], [0], [0], [1], [0, 0, 1, 1], [], []>} : vector<64x4xf32>, vector<4x16xf32>, vector<64x16xf32> -> vector<64x16xf32>
    %71 = arith.addf %66, %70 : vector<64x16xf32>
    %72 = vector.extract_strided_slice %62 {offsets = [128, 0], sizes = [64, 4], strides = [1, 1]} : vector<192x4xf32> to vector<64x4xf32>
    %c2_58 = arith.constant 2 : index
    %c0_59 = arith.constant 0 : index
    %c0_60 = arith.constant 0 : index
    %73 = vector.load %arg10[%c2_58, %c0_59, %c0_60] : memref<3x4x16xf32, #tpu.memory_space<vmem>>, vector<1x4x16xf32>
    %74 = vector.shape_cast %73 : vector<1x4x16xf32> to vector<4x16xf32>
    %cst_61 = arith.constant dense<0.000000e+00> : vector<64x16xf32>
    %75 = tpu.matmul %72, %74, %cst_61 {dimension_numbers = #tpu.dot_dimension_numbers<[1], [0], [0], [1], [0, 0, 1, 1], [], []>} : vector<64x4xf32>, vector<4x16xf32>, vector<64x16xf32> -> vector<64x16xf32>
    %76 = arith.addf %71, %75 : vector<64x16xf32>
    %77 = vector.extract_strided_slice %76 {offsets = [0, 0], sizes = [4, 16], strides = [1, 1]} : vector<64x16xf32> to vector<4x16xf32>
    %c8 = arith.constant 8 : index
    %c0_62 = arith.constant 0 : index
    %78 = vector.load %arg23[%c8, %c0_62] : memref<20x256xf32, #tpu.memory_space<vmem>>, vector<4x16xf32>
    tpu.vector_store %arg23[%c8, %c0_62], %77 {strides = array<i32>} : memref<20x256xf32, #tpu.memory_space<vmem>>, vector<4x16xf32>,
    %79 = vector.extract_strided_slice %76 {offsets = [4, 0], sizes = [4, 16], strides = [1, 1]} : vector<64x16xf32> to vector<4x16xf32>
    %c8_63 = arith.constant 8 : index
    %c16_64 = arith.constant 16 : index
    %80 = vector.load %arg23[%c8_63, %c16_64] : memref<20x256xf32, #tpu.memory_space<vmem>>, vector<4x16xf32>
    tpu.vector_store %arg23[%c8_63, %c16_64], %79 {strides = array<i32>} : memref<20x256xf32, #tpu.memory_space<vmem>>, vector<4x16xf32>,
    %81 = vector.extract_strided_slice %76 {offsets = [8, 0], sizes = [4, 16], strides = [1, 1]} : vector<64x16xf32> to vector<4x16xf32>
    %c8_65 = arith.constant 8 : index
    %c32_66 = arith.constant 32 : index
    %82 = vector.load %arg23[%c8_65, %c32_66] : memref<20x256xf32, #tpu.memory_space<vmem>>, vector<4x16xf32>
    tpu.vector_store %arg23[%c8_65, %c32_66], %81 {strides = array<i32>} : memref<20x256xf32, #tpu.memory_space<vmem>>, vector<4x16xf32>,
    %83 = vector.extract_strided_slice %76 {offsets = [12, 0], sizes = [4, 16], strides = [1, 1]} : vector<64x16xf32> to vector<4x16xf32>
    %c8_67 = arith.constant 8 : index
    %c48_68 = arith.constant 48 : index
    %84 = vector.load %arg23[%c8_67, %c48_68] : memref<20x256xf32, #tpu.memory_space<vmem>>, vector<4x16xf32>
    tpu.vector_store %arg23[%c8_67, %c48_68], %83 {strides = array<i32>} : memref<20x256xf32, #tpu.memory_space<vmem>>, vector<4x16xf32>,
    %85 = vector.extract_strided_slice %76 {offsets = [16, 0], sizes = [4, 16], strides = [1, 1]} : vector<64x16xf32> to vector<4x16xf32>
    %c8_69 = arith.constant 8 : index
    %c64_70 = arith.constant 64 : index
    %86 = vector.load %arg23[%c8_69, %c64_70] : memref<20x256xf32, #tpu.memory_space<vmem>>, vector<4x16xf32>
    tpu.vector_store %arg23[%c8_69, %c64_70], %85 {strides = array<i32>} : memref<20x256xf32, #tpu.memory_space<vmem>>, vector<4x16xf32>,
    %87 = vector.extract_strided_slice %76 {offsets = [20, 0], sizes = [4, 16], strides = [1, 1]} : vector<64x16xf32> to vector<4x16xf32>
    %c8_71 = arith.constant 8 : index
    %c80_72 = arith.constant 80 : index
    %88 = vector.load %arg23[%c8_71, %c80_72] : memref<20x256xf32, #tpu.memory_space<vmem>>, vector<4x16xf32>
    tpu.vector_store %arg23[%c8_71, %c80_72], %87 {strides = array<i32>} : memref<20x256xf32, #tpu.memory_space<vmem>>, vector<4x16xf32>,
    %89 = vector.extract_strided_slice %76 {offsets = [24, 0], sizes = [4, 16], strides = [1, 1]} : vector<64x16xf32> to vector<4x16xf32>
    %c8_73 = arith.constant 8 : index
    %c96_74 = arith.constant 96 : index
    %90 = vector.load %arg23[%c8_73, %c96_74] : memref<20x256xf32, #tpu.memory_space<vmem>>, vector<4x16xf32>
    tpu.vector_store %arg23[%c8_73, %c96_74], %89 {strides = array<i32>} : memref<20x256xf32, #tpu.memory_space<vmem>>, vector<4x16xf32>,
    %91 = vector.extract_strided_slice %76 {offsets = [28, 0], sizes = [4, 16], strides = [1, 1]} : vector<64x16xf32> to vector<4x16xf32>
    %c8_75 = arith.constant 8 : index
    %c112_76 = arith.constant 112 : index
    %92 = vector.load %arg23[%c8_75, %c112_76] : memref<20x256xf32, #tpu.memory_space<vmem>>, vector<4x16xf32>
    tpu.vector_store %arg23[%c8_75, %c112_76], %91 {strides = array<i32>} : memref<20x256xf32, #tpu.memory_space<vmem>>, vector<4x16xf32>,
    %93 = vector.extract_strided_slice %76 {offsets = [32, 0], sizes = [4, 16], strides = [1, 1]} : vector<64x16xf32> to vector<4x16xf32>
    %c8_77 = arith.constant 8 : index
    %c128_78 = arith.constant 128 : index
    %94 = vector.load %arg23[%c8_77, %c128_78] : memref<20x256xf32, #tpu.memory_space<vmem>>, vector<4x16xf32>
    tpu.vector_store %arg23[%c8_77, %c128_78], %93 {strides = array<i32>} : memref<20x256xf32, #tpu.memory_space<vmem>>, vector<4x16xf32>,
    %95 = vector.extract_strided_slice %76 {offsets = [36, 0], sizes = [4, 16], strides = [1, 1]} : vector<64x16xf32> to vector<4x16xf32>
    %c8_79 = arith.constant 8 : index
    %c144_80 = arith.constant 144 : index
    %96 = vector.load %arg23[%c8_79, %c144_80] : memref<20x256xf32, #tpu.memory_space<vmem>>, vector<4x16xf32>
    tpu.vector_store %arg23[%c8_79, %c144_80], %95 {strides = array<i32>} : memref<20x256xf32, #tpu.memory_space<vmem>>, vector<4x16xf32>,
    %97 = vector.extract_strided_slice %76 {offsets = [40, 0], sizes = [4, 16], strides = [1, 1]} : vector<64x16xf32> to vector<4x16xf32>
    %c8_81 = arith.constant 8 : index
    %c160_82 = arith.constant 160 : index
    %98 = vector.load %arg23[%c8_81, %c160_82] : memref<20x256xf32, #tpu.memory_space<vmem>>, vector<4x16xf32>
    tpu.vector_store %arg23[%c8_81, %c160_82], %97 {strides = array<i32>} : memref<20x256xf32, #tpu.memory_space<vmem>>, vector<4x16xf32>,
    %99 = vector.extract_strided_slice %76 {offsets = [44, 0], sizes = [4, 16], strides = [1, 1]} : vector<64x16xf32> to vector<4x16xf32>
    %c8_83 = arith.constant 8 : index
    %c176_84 = arith.constant 176 : index
    %100 = vector.load %arg23[%c8_83, %c176_84] : memref<20x256xf32, #tpu.memory_space<vmem>>, vector<4x16xf32>
    tpu.vector_store %arg23[%c8_83, %c176_84], %99 {strides = array<i32>} : memref<20x256xf32, #tpu.memory_space<vmem>>, vector<4x16xf32>,
    %101 = vector.extract_strided_slice %76 {offsets = [48, 0], sizes = [4, 16], strides = [1, 1]} : vector<64x16xf32> to vector<4x16xf32>
    %c8_85 = arith.constant 8 : index
    %c192_86 = arith.constant 192 : index
    %102 = vector.load %arg23[%c8_85, %c192_86] : memref<20x256xf32, #tpu.memory_space<vmem>>, vector<4x16xf32>
    tpu.vector_store %arg23[%c8_85, %c192_86], %101 {strides = array<i32>} : memref<20x256xf32, #tpu.memory_space<vmem>>, vector<4x16xf32>,
    %103 = vector.extract_strided_slice %76 {offsets = [52, 0], sizes = [4, 16], strides = [1, 1]} : vector<64x16xf32> to vector<4x16xf32>
    %c8_87 = arith.constant 8 : index
    %c208_88 = arith.constant 208 : index
    %104 = vector.load %arg23[%c8_87, %c208_88] : memref<20x256xf32, #tpu.memory_space<vmem>>, vector<4x16xf32>
    tpu.vector_store %arg23[%c8_87, %c208_88], %103 {strides = array<i32>} : memref<20x256xf32, #tpu.memory_space<vmem>>, vector<4x16xf32>,
    %105 = vector.extract_strided_slice %76 {offsets = [56, 0], sizes = [4, 16], strides = [1, 1]} : vector<64x16xf32> to vector<4x16xf32>
    %c8_89 = arith.constant 8 : index
    %c224_90 = arith.constant 224 : index
    %106 = vector.load %arg23[%c8_89, %c224_90] : memref<20x256xf32, #tpu.memory_space<vmem>>, vector<4x16xf32>
    tpu.vector_store %arg23[%c8_89, %c224_90], %105 {strides = array<i32>} : memref<20x256xf32, #tpu.memory_space<vmem>>, vector<4x16xf32>,
    %107 = vector.extract_strided_slice %76 {offsets = [60, 0], sizes = [4, 16], strides = [1, 1]} : vector<64x16xf32> to vector<4x16xf32>
    %c8_91 = arith.constant 8 : index
    %c240_92 = arith.constant 240 : index
    %108 = vector.load %arg23[%c8_91, %c240_92] : memref<20x256xf32, #tpu.memory_space<vmem>>, vector<4x16xf32>
    tpu.vector_store %arg23[%c8_91, %c240_92], %107 {strides = array<i32>} : memref<20x256xf32, #tpu.memory_space<vmem>>, vector<4x16xf32>,
    %c0_93 = arith.constant 0 : index
    %c0_94 = arith.constant 0 : index
    %109 = vector.load %arg11[%c0_93, %c0_94] : memref<4x2xf32, #tpu.memory_space<vmem>>, vector<4x2xf32>
    %cst_95 = arith.constant dense<0.000000e+00> : vector<16x2xf32>
    %110 = tpu.matmul %60, %109, %cst_95 {dimension_numbers = #tpu.dot_dimension_numbers<[1], [0], [0], [1], [0, 0, 1, 1], [], []>} : vector<16x4xf32>, vector<4x2xf32>, vector<16x2xf32> -> vector<16x2xf32>
    %c0_96 = arith.constant 0 : index
    %c0_97 = arith.constant 0 : index
    %111 = vector.load %arg12[%c0_96, %c0_97] : memref<8x16xf32, #tpu.memory_space<vmem>>, vector<8x16xf32>
    %cst_98 = arith.constant dense<0.000000e+00> : vector<8x2xf32>
    %112 = tpu.matmul %111, %110, %cst_98 {dimension_numbers = #tpu.dot_dimension_numbers<[1], [0], [0], [1], [0, 0, 1, 1], [], []>} : vector<8x16xf32>, vector<16x2xf32>, vector<8x2xf32> -> vector<8x2xf32>
    %c0_99 = arith.constant 0 : index
    %c0_100 = arith.constant 0 : index
    %113 = vector.load %arg13[%c0_99, %c0_100] : memref<192x8xf32, #tpu.memory_space<vmem>>, vector<192x8xf32>
    %cst_101 = arith.constant dense<0.000000e+00> : vector<192x2xf32>
    %114 = tpu.matmul %113, %112, %cst_101 {dimension_numbers = #tpu.dot_dimension_numbers<[1], [0], [0], [1], [0, 0, 1, 1], [], []>} : vector<192x8xf32>, vector<8x2xf32>, vector<192x2xf32> -> vector<192x2xf32>
    %115 = vector.extract_strided_slice %114 {offsets = [0, 0], sizes = [64, 2], strides = [1, 1]} : vector<192x2xf32> to vector<64x2xf32>
    %c0_102 = arith.constant 0 : index
    %c0_103 = arith.constant 0 : index
    %c0_104 = arith.constant 0 : index
    %116 = vector.load %arg14[%c0_102, %c0_103, %c0_104] : memref<3x2x16xf32, #tpu.memory_space<vmem>>, vector<1x2x16xf32>
    %117 = vector.shape_cast %116 : vector<1x2x16xf32> to vector<2x16xf32>
    %cst_105 = arith.constant dense<0.000000e+00> : vector<64x16xf32>
    %118 = tpu.matmul %115, %117, %cst_105 {dimension_numbers = #tpu.dot_dimension_numbers<[1], [0], [0], [1], [0, 0, 1, 1], [], []>} : vector<64x2xf32>, vector<2x16xf32>, vector<64x16xf32> -> vector<64x16xf32>
    %119 = vector.extract_strided_slice %114 {offsets = [64, 0], sizes = [64, 2], strides = [1, 1]} : vector<192x2xf32> to vector<64x2xf32>
    %c1_106 = arith.constant 1 : index
    %c0_107 = arith.constant 0 : index
    %c0_108 = arith.constant 0 : index
    %120 = vector.load %arg14[%c1_106, %c0_107, %c0_108] : memref<3x2x16xf32, #tpu.memory_space<vmem>>, vector<1x2x16xf32>
    %121 = vector.shape_cast %120 : vector<1x2x16xf32> to vector<2x16xf32>
    %cst_109 = arith.constant dense<0.000000e+00> : vector<64x16xf32>
    %122 = tpu.matmul %119, %121, %cst_109 {dimension_numbers = #tpu.dot_dimension_numbers<[1], [0], [0], [1], [0, 0, 1, 1], [], []>} : vector<64x2xf32>, vector<2x16xf32>, vector<64x16xf32> -> vector<64x16xf32>
    %123 = arith.addf %118, %122 : vector<64x16xf32>
    %124 = vector.extract_strided_slice %114 {offsets = [128, 0], sizes = [64, 2], strides = [1, 1]} : vector<192x2xf32> to vector<64x2xf32>
    %c2_110 = arith.constant 2 : index
    %c0_111 = arith.constant 0 : index
    %c0_112 = arith.constant 0 : index
    %125 = vector.load %arg14[%c2_110, %c0_111, %c0_112] : memref<3x2x16xf32, #tpu.memory_space<vmem>>, vector<1x2x16xf32>
    %126 = vector.shape_cast %125 : vector<1x2x16xf32> to vector<2x16xf32>
    %cst_113 = arith.constant dense<0.000000e+00> : vector<64x16xf32>
    %127 = tpu.matmul %124, %126, %cst_113 {dimension_numbers = #tpu.dot_dimension_numbers<[1], [0], [0], [1], [0, 0, 1, 1], [], []>} : vector<64x2xf32>, vector<2x16xf32>, vector<64x16xf32> -> vector<64x16xf32>
    %128 = arith.addf %123, %127 : vector<64x16xf32>
    %129 = vector.extract_strided_slice %128 {offsets = [0, 0], sizes = [4, 16], strides = [1, 1]} : vector<64x16xf32> to vector<4x16xf32>
    %c12 = arith.constant 12 : index
    %c0_114 = arith.constant 0 : index
    %130 = vector.load %arg23[%c12, %c0_114] : memref<20x256xf32, #tpu.memory_space<vmem>>, vector<4x16xf32>
    tpu.vector_store %arg23[%c12, %c0_114], %129 {strides = array<i32>} : memref<20x256xf32, #tpu.memory_space<vmem>>, vector<4x16xf32>,
    %131 = vector.extract_strided_slice %128 {offsets = [4, 0], sizes = [4, 16], strides = [1, 1]} : vector<64x16xf32> to vector<4x16xf32>
    %c12_115 = arith.constant 12 : index
    %c16_116 = arith.constant 16 : index
    %132 = vector.load %arg23[%c12_115, %c16_116] : memref<20x256xf32, #tpu.memory_space<vmem>>, vector<4x16xf32>
    tpu.vector_store %arg23[%c12_115, %c16_116], %131 {strides = array<i32>} : memref<20x256xf32, #tpu.memory_space<vmem>>, vector<4x16xf32>,
    %133 = vector.extract_strided_slice %128 {offsets = [8, 0], sizes = [4, 16], strides = [1, 1]} : vector<64x16xf32> to vector<4x16xf32>
    %c12_117 = arith.constant 12 : index
    %c32_118 = arith.constant 32 : index
    %134 = vector.load %arg23[%c12_117, %c32_118] : memref<20x256xf32, #tpu.memory_space<vmem>>, vector<4x16xf32>
    tpu.vector_store %arg23[%c12_117, %c32_118], %133 {strides = array<i32>} : memref<20x256xf32, #tpu.memory_space<vmem>>, vector<4x16xf32>,
    %135 = vector.extract_strided_slice %128 {offsets = [12, 0], sizes = [4, 16], strides = [1, 1]} : vector<64x16xf32> to vector<4x16xf32>
    %c12_119 = arith.constant 12 : index
    %c48_120 = arith.constant 48 : index
    %136 = vector.load %arg23[%c12_119, %c48_120] : memref<20x256xf32, #tpu.memory_space<vmem>>, vector<4x16xf32>
    tpu.vector_store %arg23[%c12_119, %c48_120], %135 {strides = array<i32>} : memref<20x256xf32, #tpu.memory_space<vmem>>, vector<4x16xf32>,
    %137 = vector.extract_strided_slice %128 {offsets = [16, 0], sizes = [4, 16], strides = [1, 1]} : vector<64x16xf32> to vector<4x16xf32>
    %c12_121 = arith.constant 12 : index
    %c64_122 = arith.constant 64 : index
    %138 = vector.load %arg23[%c12_121, %c64_122] : memref<20x256xf32, #tpu.memory_space<vmem>>, vector<4x16xf32>
    tpu.vector_store %arg23[%c12_121, %c64_122], %137 {strides = array<i32>} : memref<20x256xf32, #tpu.memory_space<vmem>>, vector<4x16xf32>,
    %139 = vector.extract_strided_slice %128 {offsets = [20, 0], sizes = [4, 16], strides = [1, 1]} : vector<64x16xf32> to vector<4x16xf32>
    %c12_123 = arith.constant 12 : index
    %c80_124 = arith.constant 80 : index
    %140 = vector.load %arg23[%c12_123, %c80_124] : memref<20x256xf32, #tpu.memory_space<vmem>>, vector<4x16xf32>
    tpu.vector_store %arg23[%c12_123, %c80_124], %139 {strides = array<i32>} : memref<20x256xf32, #tpu.memory_space<vmem>>, vector<4x16xf32>,
    %141 = vector.extract_strided_slice %128 {offsets = [24, 0], sizes = [4, 16], strides = [1, 1]} : vector<64x16xf32> to vector<4x16xf32>
    %c12_125 = arith.constant 12 : index
    %c96_126 = arith.constant 96 : index
    %142 = vector.load %arg23[%c12_125, %c96_126] : memref<20x256xf32, #tpu.memory_space<vmem>>, vector<4x16xf32>
    tpu.vector_store %arg23[%c12_125, %c96_126], %141 {strides = array<i32>} : memref<20x256xf32, #tpu.memory_space<vmem>>, vector<4x16xf32>,
    %143 = vector.extract_strided_slice %128 {offsets = [28, 0], sizes = [4, 16], strides = [1, 1]} : vector<64x16xf32> to vector<4x16xf32>
    %c12_127 = arith.constant 12 : index
    %c112_128 = arith.constant 112 : index
    %144 = vector.load %arg23[%c12_127, %c112_128] : memref<20x256xf32, #tpu.memory_space<vmem>>, vector<4x16xf32>
    tpu.vector_store %arg23[%c12_127, %c112_128], %143 {strides = array<i32>} : memref<20x256xf32, #tpu.memory_space<vmem>>, vector<4x16xf32>,
    %145 = vector.extract_strided_slice %128 {offsets = [32, 0], sizes = [4, 16], strides = [1, 1]} : vector<64x16xf32> to vector<4x16xf32>
    %c12_129 = arith.constant 12 : index
    %c128_130 = arith.constant 128 : index
    %146 = vector.load %arg23[%c12_129, %c128_130] : memref<20x256xf32, #tpu.memory_space<vmem>>, vector<4x16xf32>
    tpu.vector_store %arg23[%c12_129, %c128_130], %145 {strides = array<i32>} : memref<20x256xf32, #tpu.memory_space<vmem>>, vector<4x16xf32>,
    %147 = vector.extract_strided_slice %128 {offsets = [36, 0], sizes = [4, 16], strides = [1, 1]} : vector<64x16xf32> to vector<4x16xf32>
    %c12_131 = arith.constant 12 : index
    %c144_132 = arith.constant 144 : index
    %148 = vector.load %arg23[%c12_131, %c144_132] : memref<20x256xf32, #tpu.memory_space<vmem>>, vector<4x16xf32>
    tpu.vector_store %arg23[%c12_131, %c144_132], %147 {strides = array<i32>} : memref<20x256xf32, #tpu.memory_space<vmem>>, vector<4x16xf32>,
    %149 = vector.extract_strided_slice %128 {offsets = [40, 0], sizes = [4, 16], strides = [1, 1]} : vector<64x16xf32> to vector<4x16xf32>
    %c12_133 = arith.constant 12 : index
    %c160_134 = arith.constant 160 : index
    %150 = vector.load %arg23[%c12_133, %c160_134] : memref<20x256xf32, #tpu.memory_space<vmem>>, vector<4x16xf32>
    tpu.vector_store %arg23[%c12_133, %c160_134], %149 {strides = array<i32>} : memref<20x256xf32, #tpu.memory_space<vmem>>, vector<4x16xf32>,
    %151 = vector.extract_strided_slice %128 {offsets = [44, 0], sizes = [4, 16], strides = [1, 1]} : vector<64x16xf32> to vector<4x16xf32>
    %c12_135 = arith.constant 12 : index
    %c176_136 = arith.constant 176 : index
    %152 = vector.load %arg23[%c12_135, %c176_136] : memref<20x256xf32, #tpu.memory_space<vmem>>, vector<4x16xf32>
    tpu.vector_store %arg23[%c12_135, %c176_136], %151 {strides = array<i32>} : memref<20x256xf32, #tpu.memory_space<vmem>>, vector<4x16xf32>,
    %153 = vector.extract_strided_slice %128 {offsets = [48, 0], sizes = [4, 16], strides = [1, 1]} : vector<64x16xf32> to vector<4x16xf32>
    %c12_137 = arith.constant 12 : index
    %c192_138 = arith.constant 192 : index
    %154 = vector.load %arg23[%c12_137, %c192_138] : memref<20x256xf32, #tpu.memory_space<vmem>>, vector<4x16xf32>
    tpu.vector_store %arg23[%c12_137, %c192_138], %153 {strides = array<i32>} : memref<20x256xf32, #tpu.memory_space<vmem>>, vector<4x16xf32>,
    %155 = vector.extract_strided_slice %128 {offsets = [52, 0], sizes = [4, 16], strides = [1, 1]} : vector<64x16xf32> to vector<4x16xf32>
    %c12_139 = arith.constant 12 : index
    %c208_140 = arith.constant 208 : index
    %156 = vector.load %arg23[%c12_139, %c208_140] : memref<20x256xf32, #tpu.memory_space<vmem>>, vector<4x16xf32>
    tpu.vector_store %arg23[%c12_139, %c208_140], %155 {strides = array<i32>} : memref<20x256xf32, #tpu.memory_space<vmem>>, vector<4x16xf32>,
    %157 = vector.extract_strided_slice %128 {offsets = [56, 0], sizes = [4, 16], strides = [1, 1]} : vector<64x16xf32> to vector<4x16xf32>
    %c12_141 = arith.constant 12 : index
    %c224_142 = arith.constant 224 : index
    %158 = vector.load %arg23[%c12_141, %c224_142] : memref<20x256xf32, #tpu.memory_space<vmem>>, vector<4x16xf32>
    tpu.vector_store %arg23[%c12_141, %c224_142], %157 {strides = array<i32>} : memref<20x256xf32, #tpu.memory_space<vmem>>, vector<4x16xf32>,
    %159 = vector.extract_strided_slice %128 {offsets = [60, 0], sizes = [4, 16], strides = [1, 1]} : vector<64x16xf32> to vector<4x16xf32>
    %c12_143 = arith.constant 12 : index
    %c240_144 = arith.constant 240 : index
    %160 = vector.load %arg23[%c12_143, %c240_144] : memref<20x256xf32, #tpu.memory_space<vmem>>, vector<4x16xf32>
    tpu.vector_store %arg23[%c12_143, %c240_144], %159 {strides = array<i32>} : memref<20x256xf32, #tpu.memory_space<vmem>>, vector<4x16xf32>,
    %c0_145 = arith.constant 0 : index
    %c0_146 = arith.constant 0 : index
    %161 = vector.load %arg15[%c0_145, %c0_146] : memref<2x1xf32, #tpu.memory_space<vmem>>, vector<2x1xf32>
    %cst_147 = arith.constant dense<0.000000e+00> : vector<8x1xf32>
    %162 = tpu.matmul %112, %161, %cst_147 {dimension_numbers = #tpu.dot_dimension_numbers<[1], [0], [0], [1], [0, 0, 1, 1], [], []>} : vector<8x2xf32>, vector<2x1xf32>, vector<8x1xf32> -> vector<8x1xf32>
    %c0_148 = arith.constant 0 : index
    %c0_149 = arith.constant 0 : index
    %163 = vector.load %arg16[%c0_148, %c0_149] : memref<4x8xf32, #tpu.memory_space<vmem>>, vector<4x8xf32>
    %cst_150 = arith.constant dense<0.000000e+00> : vector<4x1xf32>
    %164 = tpu.matmul %163, %162, %cst_150 {dimension_numbers = #tpu.dot_dimension_numbers<[1], [0], [0], [1], [0, 0, 1, 1], [], []>} : vector<4x8xf32>, vector<8x1xf32>, vector<4x1xf32> -> vector<4x1xf32>
    %c0_151 = arith.constant 0 : index
    %c0_152 = arith.constant 0 : index
    %165 = vector.load %arg17[%c0_151, %c0_152] : memref<192x4xf32, #tpu.memory_space<vmem>>, vector<192x4xf32>
    %cst_153 = arith.constant dense<0.000000e+00> : vector<192x1xf32>
    %166 = tpu.matmul %165, %164, %cst_153 {dimension_numbers = #tpu.dot_dimension_numbers<[1], [0], [0], [1], [0, 0, 1, 1], [], []>} : vector<192x4xf32>, vector<4x1xf32>, vector<192x1xf32> -> vector<192x1xf32>
    %167 = vector.extract_strided_slice %166 {offsets = [0, 0], sizes = [64, 1], strides = [1, 1]} : vector<192x1xf32> to vector<64x1xf32>
    %c0_154 = arith.constant 0 : index
    %c0_155 = arith.constant 0 : index
    %c0_156 = arith.constant 0 : index
    %168 = vector.load %arg18[%c0_154, %c0_155, %c0_156] : memref<3x1x16xf32, #tpu.memory_space<vmem>>, vector<1x1x16xf32>
    %169 = vector.shape_cast %168 : vector<1x1x16xf32> to vector<1x16xf32>
    %cst_157 = arith.constant dense<0.000000e+00> : vector<64x16xf32>
    %170 = tpu.matmul %167, %169, %cst_157 {dimension_numbers = #tpu.dot_dimension_numbers<[1], [0], [0], [1], [0, 0, 1, 1], [], []>} : vector<64x1xf32>, vector<1x16xf32>, vector<64x16xf32> -> vector<64x16xf32>
    %171 = vector.extract_strided_slice %166 {offsets = [64, 0], sizes = [64, 1], strides = [1, 1]} : vector<192x1xf32> to vector<64x1xf32>
    %c1_158 = arith.constant 1 : index
    %c0_159 = arith.constant 0 : index
    %c0_160 = arith.constant 0 : index
    %172 = vector.load %arg18[%c1_158, %c0_159, %c0_160] : memref<3x1x16xf32, #tpu.memory_space<vmem>>, vector<1x1x16xf32>
    %173 = vector.shape_cast %172 : vector<1x1x16xf32> to vector<1x16xf32>
    %cst_161 = arith.constant dense<0.000000e+00> : vector<64x16xf32>
    %174 = tpu.matmul %171, %173, %cst_161 {dimension_numbers = #tpu.dot_dimension_numbers<[1], [0], [0], [1], [0, 0, 1, 1], [], []>} : vector<64x1xf32>, vector<1x16xf32>, vector<64x16xf32> -> vector<64x16xf32>
    %175 = arith.addf %170, %174 : vector<64x16xf32>
    %176 = vector.extract_strided_slice %166 {offsets = [128, 0], sizes = [64, 1], strides = [1, 1]} : vector<192x1xf32> to vector<64x1xf32>
    %c2_162 = arith.constant 2 : index
    %c0_163 = arith.constant 0 : index
    %c0_164 = arith.constant 0 : index
    %177 = vector.load %arg18[%c2_162, %c0_163, %c0_164] : memref<3x1x16xf32, #tpu.memory_space<vmem>>, vector<1x1x16xf32>
    %178 = vector.shape_cast %177 : vector<1x1x16xf32> to vector<1x16xf32>
    %cst_165 = arith.constant dense<0.000000e+00> : vector<64x16xf32>
    %179 = tpu.matmul %176, %178, %cst_165 {dimension_numbers = #tpu.dot_dimension_numbers<[1], [0], [0], [1], [0, 0, 1, 1], [], []>} : vector<64x1xf32>, vector<1x16xf32>, vector<64x16xf32> -> vector<64x16xf32>
    %180 = arith.addf %175, %179 : vector<64x16xf32>
    %181 = vector.extract_strided_slice %180 {offsets = [0, 0], sizes = [4, 16], strides = [1, 1]} : vector<64x16xf32> to vector<4x16xf32>
    %c16_166 = arith.constant 16 : index
    %c0_167 = arith.constant 0 : index
    %182 = vector.load %arg23[%c16_166, %c0_167] : memref<20x256xf32, #tpu.memory_space<vmem>>, vector<4x16xf32>
    tpu.vector_store %arg23[%c16_166, %c0_167], %181 {strides = array<i32>} : memref<20x256xf32, #tpu.memory_space<vmem>>, vector<4x16xf32>,
    %183 = vector.extract_strided_slice %180 {offsets = [4, 0], sizes = [4, 16], strides = [1, 1]} : vector<64x16xf32> to vector<4x16xf32>
    %c16_168 = arith.constant 16 : index
    %c16_169 = arith.constant 16 : index
    %184 = vector.load %arg23[%c16_168, %c16_169] : memref<20x256xf32, #tpu.memory_space<vmem>>, vector<4x16xf32>
    tpu.vector_store %arg23[%c16_168, %c16_169], %183 {strides = array<i32>} : memref<20x256xf32, #tpu.memory_space<vmem>>, vector<4x16xf32>,
    %185 = vector.extract_strided_slice %180 {offsets = [8, 0], sizes = [4, 16], strides = [1, 1]} : vector<64x16xf32> to vector<4x16xf32>
    %c16_170 = arith.constant 16 : index
    %c32_171 = arith.constant 32 : index
    %186 = vector.load %arg23[%c16_170, %c32_171] : memref<20x256xf32, #tpu.memory_space<vmem>>, vector<4x16xf32>
    tpu.vector_store %arg23[%c16_170, %c32_171], %185 {strides = array<i32>} : memref<20x256xf32, #tpu.memory_space<vmem>>, vector<4x16xf32>,
    %187 = vector.extract_strided_slice %180 {offsets = [12, 0], sizes = [4, 16], strides = [1, 1]} : vector<64x16xf32> to vector<4x16xf32>
    %c16_172 = arith.constant 16 : index
    %c48_173 = arith.constant 48 : index
    %188 = vector.load %arg23[%c16_172, %c48_173] : memref<20x256xf32, #tpu.memory_space<vmem>>, vector<4x16xf32>
    tpu.vector_store %arg23[%c16_172, %c48_173], %187 {strides = array<i32>} : memref<20x256xf32, #tpu.memory_space<vmem>>, vector<4x16xf32>,
    %189 = vector.extract_strided_slice %180 {offsets = [16, 0], sizes = [4, 16], strides = [1, 1]} : vector<64x16xf32> to vector<4x16xf32>
    %c16_174 = arith.constant 16 : index
    %c64_175 = arith.constant 64 : index
    %190 = vector.load %arg23[%c16_174, %c64_175] : memref<20x256xf32, #tpu.memory_space<vmem>>, vector<4x16xf32>
    tpu.vector_store %arg23[%c16_174, %c64_175], %189 {strides = array<i32>} : memref<20x256xf32, #tpu.memory_space<vmem>>, vector<4x16xf32>,
    %191 = vector.extract_strided_slice %180 {offsets = [20, 0], sizes = [4, 16], strides = [1, 1]} : vector<64x16xf32> to vector<4x16xf32>
    %c16_176 = arith.constant 16 : index
    %c80_177 = arith.constant 80 : index
    %192 = vector.load %arg23[%c16_176, %c80_177] : memref<20x256xf32, #tpu.memory_space<vmem>>, vector<4x16xf32>
    tpu.vector_store %arg23[%c16_176, %c80_177], %191 {strides = array<i32>} : memref<20x256xf32, #tpu.memory_space<vmem>>, vector<4x16xf32>,
    %193 = vector.extract_strided_slice %180 {offsets = [24, 0], sizes = [4, 16], strides = [1, 1]} : vector<64x16xf32> to vector<4x16xf32>
    %c16_178 = arith.constant 16 : index
    %c96_179 = arith.constant 96 : index
    %194 = vector.load %arg23[%c16_178, %c96_179] : memref<20x256xf32, #tpu.memory_space<vmem>>, vector<4x16xf32>
    tpu.vector_store %arg23[%c16_178, %c96_179], %193 {strides = array<i32>} : memref<20x256xf32, #tpu.memory_space<vmem>>, vector<4x16xf32>,
    %195 = vector.extract_strided_slice %180 {offsets = [28, 0], sizes = [4, 16], strides = [1, 1]} : vector<64x16xf32> to vector<4x16xf32>
    %c16_180 = arith.constant 16 : index
    %c112_181 = arith.constant 112 : index
    %196 = vector.load %arg23[%c16_180, %c112_181] : memref<20x256xf32, #tpu.memory_space<vmem>>, vector<4x16xf32>
    tpu.vector_store %arg23[%c16_180, %c112_181], %195 {strides = array<i32>} : memref<20x256xf32, #tpu.memory_space<vmem>>, vector<4x16xf32>,
    %197 = vector.extract_strided_slice %180 {offsets = [32, 0], sizes = [4, 16], strides = [1, 1]} : vector<64x16xf32> to vector<4x16xf32>
    %c16_182 = arith.constant 16 : index
    %c128_183 = arith.constant 128 : index
    %198 = vector.load %arg23[%c16_182, %c128_183] : memref<20x256xf32, #tpu.memory_space<vmem>>, vector<4x16xf32>
    tpu.vector_store %arg23[%c16_182, %c128_183], %197 {strides = array<i32>} : memref<20x256xf32, #tpu.memory_space<vmem>>, vector<4x16xf32>,
    %199 = vector.extract_strided_slice %180 {offsets = [36, 0], sizes = [4, 16], strides = [1, 1]} : vector<64x16xf32> to vector<4x16xf32>
    %c16_184 = arith.constant 16 : index
    %c144_185 = arith.constant 144 : index
    %200 = vector.load %arg23[%c16_184, %c144_185] : memref<20x256xf32, #tpu.memory_space<vmem>>, vector<4x16xf32>
    tpu.vector_store %arg23[%c16_184, %c144_185], %199 {strides = array<i32>} : memref<20x256xf32, #tpu.memory_space<vmem>>, vector<4x16xf32>,
    %201 = vector.extract_strided_slice %180 {offsets = [40, 0], sizes = [4, 16], strides = [1, 1]} : vector<64x16xf32> to vector<4x16xf32>
    %c16_186 = arith.constant 16 : index
    %c160_187 = arith.constant 160 : index
    %202 = vector.load %arg23[%c16_186, %c160_187] : memref<20x256xf32, #tpu.memory_space<vmem>>, vector<4x16xf32>
    tpu.vector_store %arg23[%c16_186, %c160_187], %201 {strides = array<i32>} : memref<20x256xf32, #tpu.memory_space<vmem>>, vector<4x16xf32>,
    %203 = vector.extract_strided_slice %180 {offsets = [44, 0], sizes = [4, 16], strides = [1, 1]} : vector<64x16xf32> to vector<4x16xf32>
    %c16_188 = arith.constant 16 : index
    %c176_189 = arith.constant 176 : index
    %204 = vector.load %arg23[%c16_188, %c176_189] : memref<20x256xf32, #tpu.memory_space<vmem>>, vector<4x16xf32>
    tpu.vector_store %arg23[%c16_188, %c176_189], %203 {strides = array<i32>} : memref<20x256xf32, #tpu.memory_space<vmem>>, vector<4x16xf32>,
    %205 = vector.extract_strided_slice %180 {offsets = [48, 0], sizes = [4, 16], strides = [1, 1]} : vector<64x16xf32> to vector<4x16xf32>
    %c16_190 = arith.constant 16 : index
    %c192_191 = arith.constant 192 : index
    %206 = vector.load %arg23[%c16_190, %c192_191] : memref<20x256xf32, #tpu.memory_space<vmem>>, vector<4x16xf32>
    tpu.vector_store %arg23[%c16_190, %c192_191], %205 {strides = array<i32>} : memref<20x256xf32, #tpu.memory_space<vmem>>, vector<4x16xf32>,
    %207 = vector.extract_strided_slice %180 {offsets = [52, 0], sizes = [4, 16], strides = [1, 1]} : vector<64x16xf32> to vector<4x16xf32>
    %c16_192 = arith.constant 16 : index
    %c208_193 = arith.constant 208 : index
    %208 = vector.load %arg23[%c16_192, %c208_193] : memref<20x256xf32, #tpu.memory_space<vmem>>, vector<4x16xf32>
    tpu.vector_store %arg23[%c16_192, %c208_193], %207 {strides = array<i32>} : memref<20x256xf32, #tpu.memory_space<vmem>>, vector<4x16xf32>,
    %209 = vector.extract_strided_slice %180 {offsets = [56, 0], sizes = [4, 16], strides = [1, 1]} : vector<64x16xf32> to vector<4x16xf32>
    %c16_194 = arith.constant 16 : index
    %c224_195 = arith.constant 224 : index
    %210 = vector.load %arg23[%c16_194, %c224_195] : memref<20x256xf32, #tpu.memory_space<vmem>>, vector<4x16xf32>
    tpu.vector_store %arg23[%c16_194, %c224_195], %209 {strides = array<i32>} : memref<20x256xf32, #tpu.memory_space<vmem>>, vector<4x16xf32>,
    %211 = vector.extract_strided_slice %180 {offsets = [60, 0], sizes = [4, 16], strides = [1, 1]} : vector<64x16xf32> to vector<4x16xf32>
    %c16_196 = arith.constant 16 : index
    %c240_197 = arith.constant 240 : index
    %212 = vector.load %arg23[%c16_196, %c240_197] : memref<20x256xf32, #tpu.memory_space<vmem>>, vector<4x16xf32>
    tpu.vector_store %arg23[%c16_196, %c240_197], %211 {strides = array<i32>} : memref<20x256xf32, #tpu.memory_space<vmem>>, vector<4x16xf32>,
    %c0_198 = arith.constant 0 : index
    %c0_199 = arith.constant 0 : index
    %213 = vector.load %arg23[%c0_198, %c0_199] : memref<20x256xf32, #tpu.memory_space<vmem>>, vector<20x256xf32>
    %c0_200 = arith.constant 0 : index
    %c0_201 = arith.constant 0 : index
    %214 = vector.load %arg19[%c0_200, %c0_201] : memref<32x20xf32, #tpu.memory_space<vmem>>, vector<32x20xf32>
    %cst_202 = arith.constant dense<0.000000e+00> : vector<32x256xf32>
    %215 = tpu.matmul %214, %213, %cst_202 {dimension_numbers = #tpu.dot_dimension_numbers<[1], [0], [0], [1], [0, 0, 1, 1], [], []>} : vector<32x20xf32>, vector<20x256xf32>, vector<32x256xf32> -> vector<32x256xf32>
    %c0_203 = arith.constant 0 : index
    %c0_204 = arith.constant 0 : index
    %216 = vector.load %arg20[%c0_203, %c0_204] : memref<32x1xf32, #tpu.memory_space<vmem>>, vector<32x1xf32>
    %217 = vector.broadcast %216 : vector<32x1xf32> to vector<32x256xf32>
    %218 = arith.addf %215, %217 : vector<32x256xf32>
    %cst_205 = arith.constant 0.000000e+00 : f32
    %219 = vector.broadcast %cst_205 : f32 to vector<32x256xf32>
    %220 = arith.cmpf ogt, %218, %219 : vector<32x256xf32>
    %c0_206 = arith.constant 0 : index
    %c0_207 = arith.constant 0 : index
    %221 = vector.load %arg21[%c0_206, %c0_207] : memref<32x1xf32, #tpu.memory_space<vmem>>, vector<32x1xf32>
    %222 = vector.broadcast %221 : vector<32x1xf32> to vector<32x256xf32>
    %223 = arith.mulf %222, %218 : vector<32x256xf32>
    %224 = arith.select %220, %218, %223 : vector<32x256xi1>, vector<32x256xf32>
    %c0_208 = arith.constant 0 : index
    %c0_209 = arith.constant 0 : index
    %c0_210 = arith.constant 0 : index
    %225 = vector.load %arg22[%c0_208, %c0_209, %c0_210] : memref<1x32x256xf32, #tpu.memory_space<vmem>>, vector<1x32x256xf32>
    %226 = vector.shape_cast %225 : vector<1x32x256xf32> to vector<32x256xf32>
    %227 = vector.shape_cast %224 : vector<32x256xf32> to vector<1x32x256xf32>
    tpu.vector_store %arg22[%c0_208, %c0_209, %c0_210], %227 {strides = array<i32>} : memref<1x32x256xf32, #tpu.memory_space<vmem>>, vector<1x32x256xf32>,
    return
  }
  func.func @transform_0(%arg0: i32) -> (i32, i32, i32) {
    %c0_i32 = arith.constant 0 : i32
    %c0_i32_0 = arith.constant 0 : i32
    %c0_i32_1 = arith.constant 0 : i32
    return %arg0, %c0_i32, %c0_i32_0 : i32, i32, i32
  }
  func.func @transform_1(%arg0: i32) -> (i32, i32, i32) {
    %c0_i32 = arith.constant 0 : i32
    %c0_i32_0 = arith.constant 0 : i32
    %c0_i32_1 = arith.constant 0 : i32
    return %arg0, %c0_i32, %c0_i32_0 : i32, i32, i32
  }
  func.func @transform_2(%arg0: i32) -> (i32, i32) {
    %c0_i32 = arith.constant 0 : i32
    %c0_i32_0 = arith.constant 0 : i32
    %c0_i32_1 = arith.constant 0 : i32
    return %c0_i32, %c0_i32_0 : i32, i32
  }
  func.func @transform_3(%arg0: i32) -> (i32, i32) {
    %c0_i32 = arith.constant 0 : i32
    %c0_i32_0 = arith.constant 0 : i32
    %c0_i32_1 = arith.constant 0 : i32
    return %c0_i32, %c0_i32_0 : i32, i32
  }
  func.func @transform_4(%arg0: i32) -> (i32, i32) {
    %c0_i32 = arith.constant 0 : i32
    %c0_i32_0 = arith.constant 0 : i32
    %c0_i32_1 = arith.constant 0 : i32
    return %c0_i32, %c0_i32_0 : i32, i32
  }
  func.func @transform_5(%arg0: i32) -> (i32, i32, i32) {
    %c0_i32 = arith.constant 0 : i32
    %c0_i32_0 = arith.constant 0 : i32
    %c0_i32_1 = arith.constant 0 : i32
    %c0_i32_2 = arith.constant 0 : i32
    return %c0_i32, %c0_i32_0, %c0_i32_1 : i32, i32, i32
  }
  func.func @transform_6(%arg0: i32) -> (i32, i32) {
    %c0_i32 = arith.constant 0 : i32
    %c0_i32_0 = arith.constant 0 : i32
    %c0_i32_1 = arith.constant 0 : i32
    return %c0_i32, %c0_i32_0 : i32, i32
  }
  func.func @transform_7(%arg0: i32) -> (i32, i32) {
    %c0_i32 = arith.constant 0 : i32
    %c0_i32_0 = arith.constant 0 : i32
    %c0_i32_1 = arith.constant 0 : i32
    return %c0_i32, %c0_i32_0 : i32, i32
  }
  func.func @transform_8(%arg0: i32) -> (i32, i32) {
    %c0_i32 = arith.constant 0 : i32
    %c0_i32_0 = arith.constant 0 : i32
    %c0_i32_1 = arith.constant 0 : i32
    return %c0_i32, %c0_i32_0 : i32, i32
  }
  func.func @transform_9(%arg0: i32) -> (i32, i32, i32) {
    %c0_i32 = arith.constant 0 : i32
    %c0_i32_0 = arith.constant 0 : i32
    %c0_i32_1 = arith.constant 0 : i32
    %c0_i32_2 = arith.constant 0 : i32
    return %c0_i32, %c0_i32_0, %c0_i32_1 : i32, i32, i32
  }
  func.func @transform_10(%arg0: i32) -> (i32, i32) {
    %c0_i32 = arith.constant 0 : i32
    %c0_i32_0 = arith.constant 0 : i32
    %c0_i32_1 = arith.constant 0 : i32
    return %c0_i32, %c0_i32_0 : i32, i32
  }
  func.func @transform_11(%arg0: i32) -> (i32, i32) {
    %c0_i32 = arith.constant 0 : i32
    %c0_i32_0 = arith.constant 0 : i32
    %c0_i32_1 = arith.constant 0 : i32
    return %c0_i32, %c0_i32_0 : i32, i32
  }
  func.func @transform_12(%arg0: i32) -> (i32, i32) {
    %c0_i32 = arith.constant 0 : i32
    %c0_i32_0 = arith.constant 0 : i32
    %c0_i32_1 = arith.constant 0 : i32
    return %c0_i32, %c0_i32_0 : i32, i32
  }
  func.func @transform_13(%arg0: i32) -> (i32, i32, i32) {
    %c0_i32 = arith.constant 0 : i32
    %c0_i32_0 = arith.constant 0 : i32
    %c0_i32_1 = arith.constant 0 : i32
    %c0_i32_2 = arith.constant 0 : i32
    return %c0_i32, %c0_i32_0, %c0_i32_1 : i32, i32, i32
  }
  func.func @transform_14(%arg0: i32) -> (i32, i32) {
    %c0_i32 = arith.constant 0 : i32
    %c0_i32_0 = arith.constant 0 : i32
    %c0_i32_1 = arith.constant 0 : i32
    return %c0_i32, %c0_i32_0 : i32, i32
  }
  func.func @transform_15(%arg0: i32) -> (i32, i32) {
    %c0_i32 = arith.constant 0 : i32
    %c0_i32_0 = arith.constant 0 : i32
    %c0_i32_1 = arith.constant 0 : i32
    return %c0_i32, %c0_i32_0 : i32, i32
  }
  func.func @transform_16(%arg0: i32) -> (i32, i32) {
    %c0_i32 = arith.constant 0 : i32
    %c0_i32_0 = arith.constant 0 : i32
    %c0_i32_1 = arith.constant 0 : i32
    return %c0_i32, %c0_i32_0 : i32, i32
  }
  func.func @transform_17(%arg0: i32) -> (i32, i32, i32) {
    %c0_i32 = arith.constant 0 : i32
    %c0_i32_0 = arith.constant 0 : i32
    %c0_i32_1 = arith.constant 0 : i32
    %c0_i32_2 = arith.constant 0 : i32
    return %c0_i32, %c0_i32_0, %c0_i32_1 : i32, i32, i32
  }
  func.func @transform_18(%arg0: i32) -> (i32, i32) {
    %c0_i32 = arith.constant 0 : i32
    %c0_i32_0 = arith.constant 0 : i32
    %c0_i32_1 = arith.constant 0 : i32
    return %c0_i32, %c0_i32_0 : i32, i32
  }
  func.func @transform_19(%arg0: i32) -> (i32, i32) {
    %c0_i32 = arith.constant 0 : i32
    %c0_i32_0 = arith.constant 0 : i32
    %c0_i32_1 = arith.constant 0 : i32
    return %c0_i32, %c0_i32_0 : i32, i32
  }
  func.func @transform_20(%arg0: i32) -> (i32, i32) {
    %c0_i32 = arith.constant 0 : i32
    %c0_i32_0 = arith.constant 0 : i32
    %c0_i32_1 = arith.constant 0 : i32
    return %c0_i32, %c0_i32_0 : i32, i32
  }
  func.func @transform_21(%arg0: i32) -> (i32, i32, i32) {
    %c0_i32 = arith.constant 0 : i32
    %c0_i32_0 = arith.constant 0 : i32
    %c0_i32_1 = arith.constant 0 : i32
    return %arg0, %c0_i32, %c0_i32_0 : i32, i32, i32
  }
}

</mosaic_0001>

<bundles_post_ra>
// kernel: tpu_custom_call.1
= control target key start
LH: loop header
LB: loop body
LE: loop exit
PB: predicated region body
PF: predicated region fallthrough
CT: control target
= control target key end

     0   :  { %s6956_s0 = inlined_call_operand.vmem [shape: f32[2,64,16], index: 0, kind: input, shape index: {}]   ;;  %s6957_s1 = inlined_call_operand.vmem [shape: f32[2,4,256], index: 1, kind: input, shape index: {}]   ;;  %s6958_s2 = inlined_call_operand.vmem [shape: f32[16,8], index: 2, kind: input, shape index: {}]   ;;  %s6959_s3 = inlined_call_operand.vmem [shape: f32[32,64], index: 3, kind: input, shape index: {}]   ;;  %s6960_s4 = inlined_call_operand.vmem [shape: f32[192,32], index: 4, kind: input, shape index: {}]   ;;  %s6961_s5 = inlined_call_operand.vmem [shape: f32[3,8,16], index: 5, kind: input, shape index: {}]   ;;  %s6962_s6 = inlined_call_operand.vmem [shape: f32[8,4], index: 6, kind: input, shape index: {}]   ;;  %s6963_s7 = inlined_call_operand.vmem [shape: f32[16,32], index: 7, kind: input, shape index: {}]   ;;  %s6964_s8 = inlined_call_operand.vmem [shape: f32[192,16], index: 8, kind: input, shape index: {}]   ;;  %s6965_s9 = inlined_call_operand.vmem [shape: f32[3,4,16], index: 9, kind: input, shape index: {}]   ;;  %s6966_s10 = inlined_call_operand.vmem [shape: f32[4,2], index: 10, kind: input, shape index: {}]   ;;  %s6967_s11 = inlined_call_operand.vmem [shape: f32[8,16], index: 11, kind: input, shape index: {}]   ;;  %s6968_s12 = inlined_call_operand.vmem [shape: f32[192,8], index: 12, kind: input, shape index: {}]   ;;  %s6969_s13 = inlined_call_operand.vmem [shape: f32[3,2,16], index: 13, kind: input, shape index: {}]   ;;  %s6970_s14 = inlined_call_operand.vmem [shape: f32[2,1], index: 14, kind: input, shape index: {}]   ;;  %s6971_s15 = inlined_call_operand.vmem [shape: f32[4,8], index: 15, kind: input, shape index: {}]   ;;  %s6972_s16 = inlined_call_operand.vmem [shape: f32[192,4], index: 16, kind: input, shape index: {}]   ;;  %s6973_s17 = inlined_call_operand.vmem [shape: f32[3,1,16], index: 17, kind: input, shape index: {}]   ;;  %s6974_s18 = inlined_call_operand.vmem [shape: f32[32,20], index: 18, kind: input, shape index: {}]   ;;  %s6975_s19 = inlined_call_operand.vmem [shape: f32[32,1], index: 19, kind: input, shape index: {}]   ;;  %s6976_s20 = inlined_call_operand.vmem [shape: f32[32,1], index: 20, kind: input, shape index: {}]   ;;  %s6977_s21 = inlined_call_operand.hbm [shape: f32[2,32,256], index: 21, kind: output, shape index: {}]  }
   0x1   :  { %7014 = sst [smem:[#allocation13_spill]] %s6956_s0 }
   0x2   :  { %7015 = sst [smem:[#allocation14_spill]] %s6957_s1 }
   0x3   :  { %7016 = sst [smem:[#allocation15_spill]] %s6958_s2 }
   0x4   :  { %7017 = sst [smem:[#allocation16_spill]] %s6959_s3 }
   0x5   :  { %7018 = sst [smem:[#allocation17_spill]] %s6960_s4 }
   0x6   :  { %7019 = sst [smem:[#allocation18_spill]] %s6961_s5 }
   0x7   :  { %7020 = sst [smem:[#allocation19_spill]] %s6962_s6 }
   0x8   :  { %7021 = sst [smem:[#allocation20_spill]] %s6963_s7 }
   0x9   :  { %7022 = sst [smem:[#allocation21_spill]] %s6964_s8 }
   0xa   :  { %7023 = sst [smem:[#allocation22_spill]] %s6965_s9 }
   0xb   :  { %7024 = sst [smem:[#allocation23_spill]] %s6977_s21 }
   0xc   :  { %26 = vsyncpa [#allocation4], 0 }
   0xd   :  { %28 = vsyncpa [#allocation4 + $0x1], 0  ;;  %s6050_s2 = smov 0   ;;  %s6052_s25 = smov 0  }
   0xe   :  { %s6054_s26 = smov 0   ;;  %s6056_s27 = smov 0  }
   0xf LB: > { %7025 = sst [smem:[#allocation6_spill]] %s5913_s2  ;;  %s6071_s3 = sadd.s32 4294967295, %s5925_s27   ;;  %s5925_s27 = sphi %s6056_s27, %s7072_s27   ;;  %s5921_s26 = sphi %s6054_s26, %s7074_s26   ;;  %s5917_s25 = sphi %s6052_s25, %s7076_s25   ;;  %s5913_s2 = sphi %s6050_s2, %s7075_s2  }
  0x10   : > { %7026 = sst [smem:[#allocation7_spill]] %s5921_s26  ;;  %s4778_s28 = sadd.s32 4294967294, %s5925_s27  }
  0x11   : > { %7027 = sst [smem:[#allocation8_spill]] %s5925_s27  ;;  %s6075_s29 = sadd.s32 1, %s5925_s27  }
  0x12   : > { %7028 = sst [smem:[#allocation9_spill]] %s6075_s29  ;;  %s492_s0 = sadd.s32 1, %s5921_s26 }
  0x13   : > { %s489_s4 = ssub.s32 %s5925_s27, %s6075_s29  ;;  %p502_p0 = scmp.ne.s32.totalorder %s5921_s26, %s5917_s25 }
  0x14   : > { %p490_p1 = scmp.eq.s32.totalorder %s489_s4, 0  ;;  %p503_p2 = scmp.eq.s32.totalorder %s6071_s3, 1 }
  0x15   : > { %p508_p3 = scmp.ne.s32.totalorder %s5917_s25, %s5913_s2  ;;  %p509_p4 = scmp.eq.s32.totalorder %s4778_s28, 1 }
  0x16   : > { %s6086_s30 = scalar_select %p490_p1, %s5921_s26, %s492_s0  }
  0x17   : > { %p6088_p5 = por %p503_p2, %p502_p0  ;;  %p6092_p6 = por %p509_p4, %p508_p3 }
  0x18   : > { %7029 = sst [smem:[#allocation10_spill]] %s6086_s30  ;;  %p4781_p7 = scmp.ge.s32.totalorder %s5925_s27, 1 }
  0x19   : > { %s7030_s5 = scalar_select %p6088_p5, 1, 0 }
  0x1a   : > { %s7032_s22 = scalar_select %p6092_p6, 1, 0 }
  0x1b   : > { %7031 = sst [smem:[#allocation11_spill]] %s7030_s5  ;;  %p600_p8 = scmp.lt.s32.totalorder %s5925_s27, 3 }
  0x1c   : > { %7033 = sst [smem:[#allocation12_spill]] %s7032_s22 }
  0x1d   : > { %p601_p9 = pnand %p4781_p7, %p600_p8 }
  0x1e   : > { %s7034_s24 = sld [smem:[#allocation15_spill]] (!%p601_p9)  ;;  %p665_p10 = scmp.lt.s32.totalorder (!%p601_p9), %s6071_s3, 1  ;;  %vm691_vm0 = vcmask (!%p601_p9), 130048   ;;  %vm825_vm1 = vcmask (!%p601_p9), 523264   ;;  %vm947_vm2 = vcmask (!%p601_p9), 261120   ;;  %vm1208_vm3 = vcmask (!%p601_p9), 64512  }
  0x1f   : > { %604 = sbr.rel (%p601_p9) target bundleno = 2854 (0xb26), region = 104  ;;  %s7035_s2 = sld [smem:[#allocation13_spill]] (!%p601_p9)  ;;  %vm1609_vm4 = vcmask (!%p601_p9), 130052   ;;  %vm7012_vm5 = vcmask (!%p601_p9), 1043456   ;;  %vm2155_vm6 = vcmask (!%p601_p9), 31744   ;;  %vm1614_vm7 = vcmask (!%p601_p9), 261252  }
  0x20   : > { %s7036_s21 = sld [smem:[#allocation14_spill]] (!%p601_p9)  ;;  %s7039_s1 = sld [smem:[#allocation17_spill]] (!%p601_p9)  ;;  %vm1621_vm8 = vcmask (!%p601_p9), 392452   ;;  %vm7011_vm9 = vcmask (!%p601_p9), 523652   ;;  %vm7010_vm10 = vcmask (!%p601_p9), 654852   ;;  %vm7009_vm11 = vcmask (!%p601_p9), 786052  }
  0x21   : > { %s7040_s6 = sld [smem:[#allocation19_spill]] (!%p601_p9)  ;;  %s7041_s22 = sld [smem:[#allocation18_spill]] (!%p601_p9)  ;;  %vm7008_vm12 = vcmask (!%p601_p9), 917252   ;;  %vm7007_vm13 = vcmask (!%p601_p9), 1048452   ;;  %vm5935_vm14 = vmmov (!%p601_p9), 0   ;;  %vm7006_vm15 = vcmask (!%p601_p9), 125952  }
  0x22   : > { %s7042_s7 = sld [smem:[#allocation20_spill]] (!%p601_p9)  ;;  %s7043_s8 = sld [smem:[#allocation21_spill]] (!%p601_p9) }
  0x23   : > { %s6993_s28 = smov (!%p601_p9), 48   ;;  %s6991_s0 = smov (!%p601_p9), 16  }
  0x24   : > { %v689_v0 = vld [vmem:[%s7034_s24] sm:$0xff] (!%p601_p9)  ;;  %v690_v1 = vld [vmem:[%s7034_s24 + $0x8] sm:$0xff] (!%p601_p9)  ;;  %s6995_s23 = smov (!%p601_p9), 32   ;;  %s7044_s9 = sld [smem:[#allocation22_spill]] (!%p601_p9) }
  0x25   : > { %v5698_v2 = vpack.c.bf16 (!%p601_p9), %v690_v1, %v689_v0 }
  0x26   : > { %s666_s4 = scalar_select %p665_p10, %s6071_s3, 1  ;;  %v923_v29 = vld [vmem:[%s7039_s1] sm:$0xff]  ;;  %v924_v37 = vld [vmem:[%s7039_s1 + $0x8] sm:$0xff]  ;;  %v925_v38 = vld [vmem:[%s7039_s1 + $0x10] sm:$0xff] }
  0x27   : > { %5699 = vmatprep.subr.bf16.mxu1 %v5698_v2  ;;  %5337 = vmatprep.mubr.msk.f32.mxu0 %vm947_vm2, %v923_v29  ;;  %v1690_v36 = vld [vmem:[%s7040_s6] sm:$0xff]  ;;  %v926_v39 = vld [vmem:[%s7039_s1 + $0x18] sm:$0xff]  ;;  %v928_v41 = vld [vmem:[%s7039_s1 + $0x28] sm:$0xff] }
  0x28   : > { %5701 = vmatpush3.bf16.msra.mxu1 %v5698_v2  ;;  %s5033_s30 = sshll.u32 %s666_s4, 6  ;;  %s5034_s26 = sshll.u32 %s666_s4, 3  ;;  %v927_v40 = vld [vmem:[%s7039_s1 + $0x20] sm:$0xff]  ;;  %v929_v42 = vld [vmem:[%s7039_s1 + $0x30] sm:$0xff]  ;;  %v930_v43 = vld [vmem:[%s7039_s1 + $0x38] sm:$0xff] }
  0x29   : > { %s669_s27 = scalar_lea.vmem %s7035_s2, %s5033_s30  ;;  %s674_s5 = scalar_lea.vmem %s7036_s21, %s5034_s26  ;;  %v931_v44 = vld [vmem:[%s7039_s1 + $0x40] sm:$0xff]  ;;  %v932_v45 = vld [vmem:[%s7039_s1 + $0x48] sm:$0xff]  ;;  %v933_v46 = vld [vmem:[%s7039_s1 + $0x50] sm:$0xff] }
  0x2a   : > { %v675_v3 = vld [vmem:[%s674_s5] sm:$0xff]  ;;  %v682_v5 = vld [vmem:[%s669_s27 + $0x8] sm:$0xff]  ;;  %v683_v7 = vld [vmem:[%s669_s27 + $0x10] sm:$0xff]  ;;  %s7037_s26 = sld [smem:[#allocation16_spill]]  ;;  %s6999_s4 = smov 112  }
  0x2b   : > { %v681_v4 = vld [vmem:[%s669_s27] sm:$0xff]  ;;  %v677_v6 = vcombine.high %v675_v3, %v675_v3  ;;  %679 = vst [vmem:[#allocation2] sm:$0xf] %v675_v3  ;;  %v684_v8 = vld [vmem:[%s669_s27 + $0x18] sm:$0xff]  ;;  %v686_v10 = vld [vmem:[%s669_s27 + $0x28] sm:$0xff]  ;;  %s6997_s21 = smov 80  }
  0x2c   : > { %5295 = vmatprep.mubr.msk.f32.mxu1 %vm691_vm0, %v681_v4  ;;  %v685_v9 = vld [vmem:[%s669_s27 + $0x20] sm:$0xff]  ;;  %v687_v11 = vld [vmem:[%s669_s27 + $0x30] sm:$0xff]  ;;  %v688_v12 = vld [vmem:[%s669_s27 + $0x38] sm:$0xff]  ;;  %s7001_s2 = smov 96   ;;  %s7003_s30 = smov 64  }
  0x2d   : > { %5296 = vmatmul.mubr.msk.f32.vlgmr.msra.gmra.mrb[0].mxu1 %vm691_vm0, %v682_v5  ;;  %680 = vst [vmem:[#allocation2 + $0x8] sm:$0xf] %v677_v6  ;;  %v934_v47 = vld [vmem:[%s7039_s1 + $0x58] sm:$0xff]  ;;  %v935_v48 = vld [vmem:[%s7039_s1 + $0x60] sm:$0xff]  ;;  %v936_v49 = vld [vmem:[%s7039_s1 + $0x68] sm:$0xff]  ;;  %s7048_s5 = smov 112  }
  0x2e   : > { %5298 = vmatprep.mubr.msk.f32.mxu1 %vm691_vm0, %v683_v7  ;;  %v937_v50 = vld [vmem:[%s7039_s1 + $0x70] sm:$0xff]  ;;  %v938_v51 = vld [vmem:[%s7039_s1 + $0x78] sm:$0xff]  ;;  %v939_v52 = vld [vmem:[%s7039_s1 + $0x80] sm:$0xff]  ;;  %s7050_s27 = smov 80  }
  0x2f   : > { %v940_v53 = vld [vmem:[%s7039_s1 + $0x88] sm:$0xff]  ;;  %v941_v54 = vld [vmem:[%s7039_s1 + $0x90] sm:$0xff]  ;;  %v942_v55 = vld [vmem:[%s7039_s1 + $0x98] sm:$0xff] }
  0x30   : > { %s7038_s29 = smov %s7037_s26  ;;  %v821_v13 = vld [vmem:[%s7037_s26] sm:$0xff]  ;;  %v944_v57 = vld [vmem:[%s7039_s1 + $0xa8] sm:$0xff]  ;;  %v945_v58 = vld [vmem:[%s7039_s1 + $0xb0] sm:$0xff]  ;;  %s7047_s26 = smov 16  }
  0x31   : > { %5299 = vmatmul.mubr.msk.f32.gmra.mrb[2].mxu1 %vm691_vm0, %v684_v8  ;;  %v822_v26 = vld [vmem:[%s7038_s29 + $0x8] sm:$0xff]  ;;  %v823_v27 = vld [vmem:[%s7038_s29 + $0x10] sm:$0xff]  ;;  %v824_v28 = vld [vmem:[%s7038_s29 + $0x18] sm:$0xff] }
  0x32   : > { %5301 = vmatprep.mubr.msk.f32.mxu1 %vm691_vm0, %v685_v9  ;;  %v943_v56 = vld [vmem:[%s7039_s1 + $0xa0] sm:$0xff]  ;;  %v946_v59 = vld [vmem:[%s7039_s1 + $0xb8] sm:$0xff]  ;;  %v4823_v60 = vld [vmem:[%s7041_s22 + $0x8] sm:$0xff] }
  0x33   : > { %v1205_v61 = vld [vmem:[%s7041_s22] sm:$0xff]  ;;  %v4840_v8 = vld [vmem:[%s7041_s22 + $0x10] sm:$0xff] }
  0x34   : > { %v1788_v29 = vld [vmem:[%s7042_s7] sm:$0xff] }
  0x35   : > { %5302 = vmatmul.mubr.msk.f32.gmra.mrb[4].mxu1 %vm691_vm0, %v686_v10 }
  0x36   : > { %5304 = vmatprep.mubr.msk.f32.mxu1 %vm691_vm0, %v687_v11 }
  0x39   : > { %5305 = vmatmul.mubr.msk.f32.gmra.mrb[6].mxu1 %vm691_vm0, %v688_v12 }
  0x3a   : > { %5323 = vmatprep.mubr.msk.f32.mxu1 %vm825_vm1, %v821_v13 }
 0x100   : > { %v5297_v14 = vpop.f32.mrb[0].mxu1 }
 0x101   : > { %v782_v15 = vpop.f32.mrb[1].mxu1 }
 0x102   : > { %v5702_v16 = vpack.c.bf16 %v5297_v14, %v782_v15 }
 0x104   : > { %v5300_v17 = vpop.f32.mrb[2].mxu1  ;;  %5703 = vmatprep.subr.bf16.mxu1 %v5702_v16 }
 0x105   : > { %v792_v18 = vpop.f32.mrb[3].mxu1  ;;  %5705 = vmatpush3.bf16.msra.mxu1 %v5702_v16 }
 0x106   : > { %v5706_v19 = vpack.c.bf16 %v5300_v17, %v792_v18 }
 0x108   : > { %v5303_v20 = vpop.f32.mrb[4].mxu1  ;;  %5707 = vmatprep.subr.bf16.mxu1 %v5706_v19 }
 0x109   : > { %v802_v21 = vpop.f32.mrb[5].mxu1  ;;  %5709 = vmatpush3.bf16.msra.mxu1 %v5706_v19 }
 0x10a   : > { %v5710_v22 = vpack.c.bf16 %v5303_v20, %v802_v21 }
 0x10c   : > { %v5306_v23 = vpop.f32.mrb[6].mxu1  ;;  %5711 = vmatprep.subr.bf16.mxu1 %v5710_v22 }
 0x10d   : > { %v812_v24 = vpop.f32.mrb[7].mxu1  ;;  %5713 = vmatpush3.bf16.msra.mxu1 %v5710_v22 }
 0x10e   : > { %v5714_v25 = vpack.c.bf16 %v5306_v23, %v812_v24 }
 0x110   : > { %5715 = vmatprep.subr.bf16.mxu1 %v5714_v25 }
 0x111   : > { %5717 = vmatpush3.bf16.msra.mxu1 %v5714_v25 }
 0x112   : > { %5373 = vmatprep.subr.mxu1 %v4823_v60 }
 0x114   : > { %5324 = vmatmul.mubr.msk.f32.vlgmr.msra.gmra.mrb[8].mxu1 %vm825_vm1, %v822_v26 }
 0x115   : > { %5326 = vmatprep.mubr.msk.f32.mxu1 %vm825_vm1, %v823_v27  ;;  %5374 = vmatpush3.msra.mxu1 %v4823_v60  ;;  %v1880_v60 = vld [vmem:[%s7043_s8 + $0x48] sm:$0xff] }
 0x116   : > { %5387 = vmatprep.subr.mxu1 %v1205_v61 }
 0x118   : > { %5327 = vmatmul.mubr.msk.f32.gmra.mrb[10].mxu1 %vm825_vm1, %v824_v28  ;;  %vm3088_vm1 = vcmask 15360  }
 0x1e7   : > { %v5325_v30 = vpop.f32.mrb[8].mxu1 }
 0x1e8   : > { %v904_v31 = vpop.f32.mrb[9].mxu1 }
 0x1e9   : > { %v5718_v32 = vpack.c.bf16 %v5325_v30, %v904_v31 }
 0x1eb   : > { %v5328_v33 = vpop.f32.mrb[10].mxu1  ;;  %5719 = vmatprep.subr.bf16.mxu0 %v5718_v32 }
 0x1ec   : > { %v914_v34 = vpop.f32.mrb[11].mxu1  ;;  %5721 = vmatpush3.bf16.msra.mxu0 %v5718_v32 }
 0x1ed   : > { %v5722_v35 = vpack.c.bf16 %v5328_v33, %v914_v34 }
 0x1ef   : > { %5723 = vmatprep.subr.bf16.mxu0 %v5722_v35 }
 0x1f0   : > { %5725 = vmatpush3.bf16.msra.mxu0 %v5722_v35 }
 0x1f1   : > { %5415 = vmatprep.subr.mxu0 %v1690_v36 }
 0x1f3   : > { %5338 = vmatmul.mubr.msk.f32.vlgmr.msra.gmra.mrb[0].mxu0 %vm947_vm2, %v924_v37 }
 0x1f4   : > { %5340 = vmatprep.mubr.msk.f32.mxu0 %vm947_vm2, %v925_v38  ;;  %5416 = vmatpush3.msra.mxu0 %v1690_v36 }
 0x1f7   : > { %5341 = vmatmul.mubr.msk.f32.gmra.mrb[2].mxu0 %vm947_vm2, %v926_v39 }
 0x1f8   : > { %5343 = vmatprep.mubr.msk.f32.mxu0 %vm947_vm2, %v927_v40 }
 0x1fb   : > { %5344 = vmatmul.mubr.msk.f32.gmra.mrb[4].mxu0 %vm947_vm2, %v928_v41 }
 0x1fc   : > { %5346 = vmatprep.mubr.msk.f32.mxu0 %vm947_vm2, %v929_v42 }
 0x1ff   : > { %5347 = vmatmul.mubr.msk.f32.gmra.mrb[6].mxu0 %vm947_vm2, %v930_v43 }
 0x200   : > { %5349 = vmatprep.mubr.msk.f32.mxu0 %vm947_vm2, %v931_v44 }
 0x203   : > { %5350 = vmatmul.mubr.msk.f32.gmra.mrb[8].mxu0 %vm947_vm2, %v932_v45 }
 0x204   : > { %5352 = vmatprep.mubr.msk.f32.mxu0 %vm947_vm2, %v933_v46 }
 0x207   : > { %5353 = vmatmul.mubr.msk.f32.gmra.mrb[10].mxu0 %vm947_vm2, %v934_v47 }
 0x208   : > { %5355 = vmatprep.mubr.msk.f32.mxu0 %vm947_vm2, %v935_v48 }
 0x20b   : > { %5356 = vmatmul.mubr.msk.f32.gmra.mrb[12].mxu0 %vm947_vm2, %v936_v49  ;;  %v2645_v49 = vld [vmem:[%s6966_s10] sm:$0xf] }
 0x20c   : > { %5358 = vmatprep.mubr.msk.f32.mxu0 %vm947_vm2, %v937_v50  ;;  %v1872_v50 = vld [vmem:[%s7043_s8 + $0x8] sm:$0xff] }
 0x20f   : > { %5359 = vmatmul.mubr.msk.f32.gmra.mrb[14].mxu0 %vm947_vm2, %v938_v51  ;;  %v1873_v51 = vld [vmem:[%s7043_s8 + $0x10] sm:$0xff] }
 0x210   : > { %5361 = vmatprep.mubr.msk.f32.mxu0 %vm947_vm2, %v939_v52  ;;  %v1874_v52 = vld [vmem:[%s7043_s8 + $0x18] sm:$0xff] }
 0x213   : > { %5362 = vmatmul.mubr.msk.f32.gmra.mrb[16].mxu0 %vm947_vm2, %v940_v53 }
 0x214   : > { %5364 = vmatprep.mubr.msk.f32.mxu0 %vm947_vm2, %v941_v54  ;;  %v1875_v54 = vld [vmem:[%s7043_s8 + $0x20] sm:$0xff] }
 0x217   : > { %5365 = vmatmul.mubr.msk.f32.gmra.mrb[18].mxu0 %vm947_vm2, %v942_v55  ;;  %v1876_v55 = vld [vmem:[%s7043_s8 + $0x28] sm:$0xff] }
 0x218   : > { %5367 = vmatprep.mubr.msk.f32.mxu0 %vm947_vm2, %v943_v56 }
 0x21b   : > { %5368 = vmatmul.mubr.msk.f32.gmra.mrb[20].mxu0 %vm947_vm2, %v944_v57  ;;  %v1877_v57 = vld [vmem:[%s7043_s8 + $0x30] sm:$0xff] }
 0x21c   : > { %5370 = vmatprep.mubr.msk.f32.mxu0 %vm947_vm2, %v945_v58  ;;  %v1878_v58 = vld [vmem:[%s7043_s8 + $0x38] sm:$0xff] }
 0x21f   : > { %5371 = vmatmul.mubr.msk.f32.gmra.mrb[22].mxu0 %vm947_vm2, %v946_v59  ;;  %v1879_v59 = vld [vmem:[%s7043_s8 + $0x40] sm:$0xff] }
 0x220   : > { %5417 = vmatprep.mubr.msk.f32.mxu0 %vm1208_vm3, %v904_v31  ;;  %v1871_v31 = vld [vmem:[%s7043_s8] sm:$0xff] }
 0x223   : > { %5418 = vmatmul.mubr.msk.f32.vlgmr.msra.gmra.mrb[24].mxu0 %vm1208_vm3, %v5325_v30  ;;  %v1789_v30 = vld [vmem:[%s7042_s7 + $0x8] sm:$0xff]  ;;  %s7051_s7 = smov 64  }
 0x224   : > { %5420 = vmatprep.mubr.msk.f32.mxu0 %vm1208_vm3, %v914_v34 }
 0x227   : > { %5421 = vmatmul.mubr.msk.f32.gmra.mrb[26].mxu0 %vm1208_vm3, %v5328_v33 }
 0x228   : > { %5438 = vmatprep.mubr.msk.f32.mxu0 %vm691_vm0, %v1871_v31 }
 0x2c6   : > { %v5339_v62 = vpop.f32.mrb[0].mxu0 }
 0x2c7   : > { %v1086_v63 = vpop.f32.mrb[1].mxu0 }
 0x2ca   : > { %v5342_v0 = vpop.f32.mrb[2].mxu0 }
 0x2cb   : > { %v1096_v1 = vpop.f32.mrb[3].mxu0 }
 0x2ce   : > { %v5345_v2 = vpop.f32.mrb[4].mxu0 }
 0x2cf   : > { %v1106_v3 = vpop.f32.mrb[5].mxu0 }
 0x2d2   : > { %v5348_v4 = vpop.f32.mrb[6].mxu0 }
 0x2d3   : > { %v1116_v5 = vpop.f32.mrb[7].mxu0 }
 0x2d6   : > { %v5351_v6 = vpop.f32.mrb[8].mxu0 }
 0x2d7   : > { %v1126_v7 = vpop.f32.mrb[9].mxu0 }
 0x2d8   : > { %5375 = vmatprep.mubr.msk.f32.mxu1 %vm1208_vm3, %v1126_v7  ;;  %v1891_v7 = vld [vmem:[%s7043_s8 + $0xa0] sm:$0xff] }
 0x2d9   : > { %5376 = vmatmul.mubr.msk.f32.vlgmr.msra.gmra.mrb[12].mxu1 %vm1208_vm3, %v5351_v6  ;;  %v1890_v6 = vld [vmem:[%s7043_s8 + $0x98] sm:$0xff] }
 0x2da   : > { %v5354_v9 = vpop.f32.mrb[10].mxu0  ;;  %5388 = vmatpush3.msra.mxu1 %v1205_v61  ;;  %v1881_v61 = vld [vmem:[%s7043_s8 + $0x50] sm:$0xff] }
 0x2db   : > { %v1136_v10 = vpop.f32.mrb[11].mxu0  ;;  %5401 = vmatprep.subr.mxu1 %v4840_v8 }
 0x2dc   : > { %5378 = vmatprep.mubr.msk.f32.mxu1 %vm1208_vm3, %v1136_v10  ;;  %v1894_v10 = vld [vmem:[%s7043_s8 + $0xb8] sm:$0xff] }
 0x2dd   : > { %5379 = vmatmul.mubr.msk.f32.gmra.mrb[14].mxu1 %vm1208_vm3, %v5354_v9  ;;  %v1893_v9 = vld [vmem:[%s7043_s8 + $0xb0] sm:$0xff] }
 0x2de   : > { %v5357_v11 = vpop.f32.mrb[12].mxu0 }
 0x2df   : > { %v1146_v12 = vpop.f32.mrb[13].mxu0 }
 0x2e0   : > { %5381 = vmatprep.mubr.msk.f32.mxu1 %vm1208_vm3, %v1146_v12 }
 0x2e1   : > { %5382 = vmatmul.mubr.msk.f32.gmra.mrb[16].mxu1 %vm1208_vm3, %v5357_v11 }
 0x2e2   : > { %v5360_v13 = vpop.f32.mrb[14].mxu0 }
 0x2e3   : > { %v1156_v14 = vpop.f32.mrb[15].mxu0 }
 0x2e4   : > { %5384 = vmatprep.mubr.msk.f32.mxu1 %vm1208_vm3, %v1156_v14 }
 0x2e5   : > { %5385 = vmatmul.mubr.msk.f32.gmra.mrb[18].mxu1 %vm1208_vm3, %v5360_v13 }
 0x2e6   : > { %5389 = vmatprep.mubr.msk.f32.mxu1 %vm1208_vm3, %v1086_v63  ;;  %v5363_v15 = vpop.f32.mrb[16].mxu0  ;;  %v1883_v63 = vld [vmem:[%s7043_s8 + $0x60] sm:$0xff] }
 0x2e7   : > { %v1166_v16 = vpop.f32.mrb[17].mxu0 }
 0x2e9   : > { %5390 = vmatmul.mubr.msk.f32.vlgmr.msra.gmra.mrb[12].mxu1 %vm1208_vm3, %v5339_v62  ;;  %v1882_v62 = vld [vmem:[%s7043_s8 + $0x58] sm:$0xff] }
 0x2ea   : > { %5392 = vmatprep.mubr.msk.f32.mxu1 %vm1208_vm3, %v1096_v1  ;;  %v5366_v17 = vpop.f32.mrb[18].mxu0  ;;  %5402 = vmatpush3.msra.mxu1 %v4840_v8  ;;  %v1885_v1 = vld [vmem:[%s7043_s8 + $0x70] sm:$0xff]  ;;  %v1892_v8 = vld [vmem:[%s7043_s8 + $0xa8] sm:$0xff] }
 0x2eb   : > { %v1176_v18 = vpop.f32.mrb[19].mxu0 }
 0x2ed   : > { %5393 = vmatmul.mubr.msk.f32.gmra.mrb[14].mxu1 %vm1208_vm3, %v5342_v0  ;;  %v1884_v0 = vld [vmem:[%s7043_s8 + $0x68] sm:$0xff] }
 0x2ee   : > { %5395 = vmatprep.mubr.msk.f32.mxu1 %vm1208_vm3, %v1106_v3  ;;  %v5369_v19 = vpop.f32.mrb[20].mxu0  ;;  %v1887_v3 = vld [vmem:[%s7043_s8 + $0x80] sm:$0xff] }
 0x2ef   : > { %v1186_v20 = vpop.f32.mrb[21].mxu0 }
 0x2f1   : > { %5396 = vmatmul.mubr.msk.f32.gmra.mrb[16].mxu1 %vm1208_vm3, %v5345_v2  ;;  %v1886_v2 = vld [vmem:[%s7043_s8 + $0x78] sm:$0xff] }
 0x2f2   : > { %5398 = vmatprep.mubr.msk.f32.mxu1 %vm1208_vm3, %v1116_v5  ;;  %v5372_v21 = vpop.f32.mrb[22].mxu0  ;;  %v1889_v5 = vld [vmem:[%s7043_s8 + $0x90] sm:$0xff] }
 0x2f3   : > { %v1196_v22 = vpop.f32.mrb[23].mxu0 }
 0x2f5   : > { %5399 = vmatmul.mubr.msk.f32.gmra.mrb[18].mxu1 %vm1208_vm3, %v5348_v4  ;;  %v1888_v4 = vld [vmem:[%s7043_s8 + $0x88] sm:$0xff] }
 0x2f6   : > { %5403 = vmatprep.mubr.msk.f32.mxu1 %vm1208_vm3, %v1166_v16  ;;  %v5419_v23 = vpop.f32.mrb[24].mxu0  ;;  %v4879_v16 = vld [vmem:[%s7044_s9 + $0x4] sm:$0xf] }
 0x2f7   : > { %v1769_v24 = vpop.f32.mrb[25].mxu0 }
 0x2f8   : > { %v5726_v25 = vpack.c.bf16 %v5419_v23, %v1769_v24  ;;  %v2152_v24 = vld [vmem:[%s7044_s9] sm:$0xf] }
 0x2f9   : > { %5404 = vmatmul.mubr.msk.f32.vlgmr.msra.gmra.mrb[12].mxu1 %vm1208_vm3, %v5363_v15 }
 0x2fa   : > { %5406 = vmatprep.mubr.msk.f32.mxu1 %vm1208_vm3, %v1176_v18  ;;  %v5422_v26 = vpop.f32.mrb[26].mxu0  ;;  %5727 = vmatprep.subr.bf16.mxu1 %v5726_v25 }
 0x2fb   : > { %v1779_v27 = vpop.f32.mrb[27].mxu0  ;;  %5729 = vmatpush3.bf16.msra.mxu1 %v5726_v25 }
 0x2fc   : > { %v5730_v28 = vpack.c.bf16 %v5422_v26, %v1779_v27 }
 0x2fd   : > { %5407 = vmatmul.mubr.msk.f32.gmra.mrb[14].mxu1 %vm1208_vm3, %v5366_v17 }
 0x2fe   : > { %5409 = vmatprep.mubr.msk.f32.mxu1 %vm1208_vm3, %v1186_v20  ;;  %5731 = vmatprep.subr.bf16.mxu1 %v5730_v28 }
 0x2ff   : > { %5733 = vmatpush3.bf16.msra.mxu1 %v5730_v28 }
 0x300   : > { %5474 = vmatprep.subr.msk.mxu1 %vm7012_vm5, %v4879_v16 }
 0x301   : > { %5410 = vmatmul.mubr.msk.f32.gmra.mrb[16].mxu1 %vm1208_vm3, %v5369_v19 }
 0x302   : > { %5412 = vmatprep.mubr.msk.f32.mxu1 %vm1208_vm3, %v1196_v22 }
 0x305   : > { %5413 = vmatmul.mubr.msk.f32.gmra.mrb[18].mxu1 %vm1208_vm3, %v5372_v21 }
 0x306   : > { %5431 = vmatprep.mubr.msk.f32.mxu1 %vm947_vm2, %v1788_v29 }
 0x309   : > { %5432 = vmatmul.mubr.msk.f32.vlgmr.msra.gmra.mrb[20].mxu1 %vm947_vm2, %v1789_v30  ;;  %vm2570_vm2 = vcmask 257152  }
 0x30a   : > { %5475 = vmatpush3.msk.msra.mxu1 %vm7012_vm5, %v4879_v16  ;;  %v2809_v16 = vld [vmem:[%s6968_s12 + $0x28] sm:$0xff] }
 0x30b   : > { %5488 = vmatprep.subr.msk.mxu1 %vm7012_vm5, %v2152_v24 }
 0x3cc   : > { %v5405_v32 = vpop.f32.mrb[12].mxu1 }
 0x3cd   : > { %1623 = vrot.lane.b32.xlu1 %v5405_v32, %s6993_s28  ;;  %v1559_v33 = vpop.f32.mrb[13].mxu1  ;;  %v1617_v37 = vrot.slane %v5405_v32, 4 }
 0x3ce   : > { %v1607_v34 = vrot.slane %v1559_v33, 4 }
 0x3d0   : > { %1610 = vst.msk [vmem:[#allocation2] sm:$0xf0] %vm1609_vm4, %v1607_v34  ;;  %v5408_v35 = vpop.f32.mrb[14].mxu1 }
 0x3d1   : > { %1611 = vrot.lane.b32.xlu1 %v1559_v33, %s6991_s0  ;;  %1647 = vrot.lane.b32.xlu0 %v5408_v35, %s6999_s4  ;;  %v1569_v36 = vpop.f32.mrb[15].mxu1  ;;  %v1641_v43 = vrot.slane %v5408_v35, 4 }
 0x3d2   : > { %v1629_v48 = vrot.slane %v1569_v36, 4 }
 0x3d4   : > { %v5411_v38 = vpop.f32.mrb[16].mxu1 }
 0x3d5   : > { %1618 = vrot.lane.b32.xlu1 %v1617_v37, %s6995_s23  ;;  %1666 = vrot.lane.b32.xlu0 %v5411_v38, %s6993_s28  ;;  %v1579_v39 = vpop.f32.mrb[17].mxu1  ;;  %v1661_v44 = vrot.slane %v5411_v38, 4  ;;  %v4898_v37 = vld [vmem:[%s7044_s9 + $0x8] sm:$0xf]  ;;  %s7045_s28 = smov 32   ;;  %s662_s9 = sand.u32 1, %s5917_s25  }
 0x3d6   : > { %v1653_v40 = vrot.slane %v1579_v39, 4  ;;  %s4782_s6 = sshll.u32 %s662_s9, 6 }
 0x3d8   : > { %1655 = vst.msk [vmem:[#allocation2 + $0x8] sm:$0xf0] %vm1609_vm4, %v1653_v40  ;;  %v5414_v41 = vpop.f32.mrb[18].mxu1 }
 0x3d9   : > { %1635 = vrot.lane.b32.xlu1 %v1569_v36, %s6997_s21  ;;  %1656 = vrot.lane.b32.xlu0 %v1579_v39, %s6991_s0  ;;  %v1589_v42 = vpop.f32.mrb[19].mxu1  ;;  %v1681_v53 = vrot.slane %v5414_v41, 4  ;;  %s5035_s0 = sshll.u32 %s6071_s3, 10  ;;  %s6914_s3 = scalar_lea.sflag [#allocation4], %s662_s9 }
 0x3da   : > { %v1671_v56 = vrot.slane %v1589_v42, 4 }
 0x3dc   : > { %v6293_v45 = vpop.f32.mrb[20].mxu1 }
 0x3dd   : > { %1642 = vrot.lane.b32.xlu1 %v1641_v43, %s7001_s2  ;;  %1662 = vrot.lane.b32.xlu0 %v1661_v44, %s6995_s23  ;;  %v6297_v46 = vpop.f32.mrb[21].mxu1  ;;  %s7046_s23 = smov 48  }
 0x3de   : > { %v5734_v47 = vpack.c.bf16 %v6293_v45, %v6297_v46 }
 0x3e0   : > { %5735 = vmatprep.subr.bf16.mxu0 %v5734_v47 }
 0x3e1   : > { %1630 = vrot.lane.b32.xlu1 %v1629_v48, %s7003_s30  ;;  %1686 = vrot.lane.b32.xlu0 %v5414_v41, %s6999_s4  ;;  %v5934_v48 = vmov 0.0|0.0   ;;  %s5938_s4 = smov [#allocation3]  }
 0x3e2   : > { %5737 = vmatpush3.bf16.msra.mxu0 %v5734_v47 }
 0x3e3   : > { %5516 = vmatprep.subr.msk.mxu0 %vm7012_vm5, %v2645_v49 }
 0x3e5   : > { %5439 = vmatmul.mubr.msk.f32.vlgmr.msra.gmra.mrb[28].mxu0 %vm691_vm0, %v1872_v50  ;;  %1676 = vrot.lane.b32.xlu0 %v1589_v42, %s6997_s21  ;;  %s7049_s21 = smov 96  }
 0x3e6   : > { %5441 = vmatprep.mubr.msk.f32.mxu0 %vm691_vm0, %v1873_v51  ;;  %5517 = vmatpush3.msk.msra.mxu0 %vm7012_vm5, %v2645_v49 }
 0x3e9   : > { %5442 = vmatmul.mubr.msk.f32.gmra.mrb[30].mxu0 %vm691_vm0, %v1874_v52  ;;  %1682 = vrot.lane.b32.xlu0 %v1681_v53, %s7001_s2 }
 0x3ea   : > { %5444 = vmatprep.mubr.msk.f32.mxu0 %vm691_vm0, %v1875_v54 }
 0x3ed   : > { %5445 = vmatmul.mubr.msk.f32.gmra.mrb[32].mxu0 %vm691_vm0, %v1876_v55  ;;  %1672 = vrot.lane.b32.xlu0 %v1671_v56, %s7003_s30  ;;  %v5936_v56 = vmov 0.0  }
 0x3ee   : > { %5447 = vmatprep.mubr.msk.f32.mxu0 %vm691_vm0, %v1877_v57  ;;  %v2730_v57 = vld [vmem:[%s6967_s11] sm:$0xff] }
 0x3f1   : > { %5448 = vmatmul.mubr.msk.f32.gmra.mrb[34].mxu0 %vm691_vm0, %v1878_v58  ;;  %v2804_v58 = vld [vmem:[%s6968_s12] sm:$0xff] }
 0x3f2   : > { %5450 = vmatprep.mubr.msk.f32.mxu0 %vm691_vm0, %v1879_v59 }
 0x3f5   : > { %5451 = vmatmul.mubr.msk.f32.gmra.mrb[36].mxu0 %vm691_vm0, %v1880_v60 }
 0x3f6   : > { %5453 = vmatprep.mubr.msk.f32.mxu0 %vm691_vm0, %v1881_v61 }
 0x3f9   : > { %5454 = vmatmul.mubr.msk.f32.gmra.mrb[38].mxu0 %vm691_vm0, %v1882_v62 }
 0x3fa   : > { %5456 = vmatprep.mubr.msk.f32.mxu0 %vm691_vm0, %v1883_v63 }
 0x3fd   : > { %5457 = vmatmul.mubr.msk.f32.gmra.mrb[40].mxu0 %vm691_vm0, %v1884_v0 }
 0x3fe   : > { %5459 = vmatprep.mubr.msk.f32.mxu0 %vm691_vm0, %v1885_v1 }
 0x401   : > { %5460 = vmatmul.mubr.msk.f32.gmra.mrb[42].mxu0 %vm691_vm0, %v1886_v2 }
 0x402   : > { %5462 = vmatprep.mubr.msk.f32.mxu0 %vm691_vm0, %v1887_v3 }
 0x405   : > { %5463 = vmatmul.mubr.msk.f32.gmra.mrb[44].mxu0 %vm691_vm0, %v1888_v4 }
 0x406   : > { %5465 = vmatprep.mubr.msk.f32.mxu0 %vm691_vm0, %v1889_v5 }
 0x409   : > { %5466 = vmatmul.mubr.msk.f32.gmra.mrb[46].mxu0 %vm691_vm0, %v1890_v6 }
 0x40a   : > { %5468 = vmatprep.mubr.msk.f32.mxu0 %vm691_vm0, %v1891_v7 }
 0x40d   : > { %5469 = vmatmul.mubr.msk.f32.gmra.mrb[48].mxu0 %vm691_vm0, %v1892_v8  ;;  %v2805_v8 = vld [vmem:[%s6968_s12 + $0x8] sm:$0xff] }
 0x40e   : > { %5471 = vmatprep.mubr.msk.f32.mxu0 %vm691_vm0, %v1893_v9 }
 0x411   : > { %5472 = vmatmul.mubr.msk.f32.gmra.mrb[50].mxu0 %vm691_vm0, %v1894_v10  ;;  %v2806_v10 = vld [vmem:[%s6968_s12 + $0x10] sm:$0xff] }
 0x412   : > { %5518 = vmatprep.mubr.msk.f32.mxu0 %vm2155_vm6, %v6297_v46 }
 0x415   : > { %5519 = vmatmul.mubr.msk.f32.vlgmr.msra.gmra.mrb[52].mxu0 %vm2155_vm6, %v6293_v45 }
 0x416   : > { %5530 = vmatprep.mubr.msk.f32.mxu0 %vm1208_vm3, %v2804_v58 }
 0x43f   : > { %v1624_v11 = vpop.permute.xlu1 %1623 }
 0x443   : > { %v1612_v12 = vpop.permute.xlu1 %1611  ;;  %v1648_v13 = vpop.permute.xlu0 %1647 }
 0x444   : > { %1615 = vst.msk [vmem:[#allocation2] sm:$0xf0] %vm1614_vm7, %v1612_v12 }
 0x447   : > { %v1619_v14 = vpop.permute.xlu1 %1618  ;;  %v1667_v15 = vpop.permute.xlu0 %1666 }
 0x448   : > { %1622 = vst.msk [vmem:[#allocation2] sm:$0xf0] %vm1621_vm8, %v1619_v14  ;;  %v2808_v14 = vld [vmem:[%s6968_s12 + $0x20] sm:$0xff] }
 0x449   : > { %1627 = vst.msk [vmem:[#allocation2] sm:$0xf0] %vm7011_vm9, %v1624_v11  ;;  %v3572_v11 = vld [vmem:[%s6970_s14] sm:$0x3] }
 0x44b   : > { %v1636_v17 = vpop.permute.xlu1 %1635  ;;  %v1657_v18 = vpop.permute.xlu0 %1656 }
 0x44c   : > { %1659 = vst.msk [vmem:[#allocation2 + $0x8] sm:$0xf0] %vm1614_vm7, %v1657_v18 }
 0x44f   : > { %v1643_v19 = vpop.permute.xlu1 %1642  ;;  %v1663_v20 = vpop.permute.xlu0 %1662 }
 0x450   : > { %1665 = vst.msk [vmem:[#allocation2 + $0x8] sm:$0xf0] %vm1621_vm8, %v1663_v20  ;;  %v2812_v20 = vld [vmem:[%s6968_s12 + $0x40] sm:$0xff] }
 0x451   : > { %1669 = vst.msk [vmem:[#allocation2 + $0x8] sm:$0xf0] %vm7011_vm9, %v1667_v15  ;;  %vm7013_vm9 = vcmask 1044352  }
 0x453   : > { %v1631_v21 = vpop.permute.xlu1 %1630  ;;  %v1687_v22 = vpop.permute.xlu0 %1686 }
 0x454   : > { %1634 = vst.msk [vmem:[#allocation2] sm:$0xf0] %vm7010_vm10, %v1631_v21 }
 0x455   : > { %1639 = vst.msk [vmem:[#allocation2] sm:$0xf0] %vm7009_vm11, %v1636_v17  ;;  %v2810_v17 = vld [vmem:[%s6968_s12 + $0x30] sm:$0xff] }
 0x456   : > { %1646 = vst.msk [vmem:[#allocation2] sm:$0xf0] %vm7008_vm12, %v1643_v19  ;;  %v2811_v19 = vld [vmem:[%s6968_s12 + $0x38] sm:$0xff] }
 0x457   : > { %1651 = vst.msk [vmem:[#allocation2] sm:$0xf0] %vm7007_vm13, %v1648_v13  ;;  %v1677_v23 = vpop.permute.xlu0 %1676  ;;  %v2807_v13 = vld [vmem:[%s6968_s12 + $0x18] sm:$0xff] }
 0x45b   : > { %v1683_v25 = vpop.permute.xlu0 %1682 }
 0x45f   : > { %v1673_v26 = vpop.permute.xlu0 %1672 }
 0x460   : > { %1675 = vst.msk [vmem:[#allocation2 + $0x8] sm:$0xf0] %vm7010_vm10, %v1673_v26  ;;  %v2817_v26 = vld [vmem:[%s6968_s12 + $0x68] sm:$0xff]  ;;  %vm2600_vm10 = vcmask 913152  }
 0x461   : > { %1679 = vst.msk [vmem:[#allocation2 + $0x8] sm:$0xf0] %vm7009_vm11, %v1677_v23  ;;  %v2814_v23 = vld [vmem:[%s6968_s12 + $0x50] sm:$0xff]  ;;  %vm2594_vm11 = vcmask 781952  }
 0x462   : > { %1685 = vst.msk [vmem:[#allocation2 + $0x8] sm:$0xf0] %vm7008_vm12, %v1683_v25  ;;  %v2816_v25 = vld [vmem:[%s6968_s12 + $0x60] sm:$0xff]  ;;  %vm2588_vm12 = vcmask 650752  }
 0x463   : > { %1689 = vst.msk [vmem:[#allocation2 + $0x8] sm:$0xf0] %vm7007_vm13, %v1687_v22  ;;  %v2813_v22 = vld [vmem:[%s6968_s12 + $0x48] sm:$0xff]  ;;  %vm2582_vm13 = vcmask 519552  }
 0x4b8   : > { %v5440_v27 = vpop.f32.mrb[28].mxu0 }
 0x4b9   : > { %v2033_v28 = vpop.f32.mrb[29].mxu0 }
 0x4bc   : > { %v5443_v29 = vpop.f32.mrb[30].mxu0 }
 0x4bd   : > { %v2043_v30 = vpop.f32.mrb[31].mxu0 }
 0x4c0   : > { %v5446_v31 = vpop.f32.mrb[32].mxu0 }
 0x4c1   : > { %v2053_v32 = vpop.f32.mrb[33].mxu0 }
 0x4c4   : > { %v5449_v33 = vpop.f32.mrb[34].mxu0 }
 0x4c5   : > { %v2063_v34 = vpop.f32.mrb[35].mxu0 }
 0x4c8   : > { %v5452_v35 = vpop.f32.mrb[36].mxu0 }
 0x4c9   : > { %v2073_v36 = vpop.f32.mrb[37].mxu0 }
 0x4ca   : > { %5476 = vmatprep.mubr.msk.f32.mxu1 %vm2155_vm6, %v2073_v36  ;;  %v2827_v36 = vld [vmem:[%s6968_s12 + $0xb8] sm:$0xff] }
 0x4cb   : > { %5477 = vmatmul.mubr.msk.f32.vlgmr.msra.gmra.mrb[22].mxu1 %vm2155_vm6, %v5452_v35  ;;  %v2826_v35 = vld [vmem:[%s6968_s12 + $0xb0] sm:$0xff] }
 0x4cc   : > { %v5455_v38 = vpop.f32.mrb[38].mxu0  ;;  %5489 = vmatpush3.msk.msra.mxu1 %vm7012_vm5, %v2152_v24  ;;  %v2815_v24 = vld [vmem:[%s6968_s12 + $0x58] sm:$0xff] }
 0x4cd   : > { %v2083_v39 = vpop.f32.mrb[39].mxu0  ;;  %5502 = vmatprep.subr.msk.mxu1 %vm7012_vm5, %v4898_v37 }
 0x4ce   : > { %5479 = vmatprep.mubr.msk.f32.mxu1 %vm2155_vm6, %v2083_v39  ;;  %v4936_v39 = vld [vmem:[%s6969_s13 + $0x2] sm:$0x3] }
 0x4cf   : > { %5480 = vmatmul.mubr.msk.f32.gmra.mrb[24].mxu1 %vm2155_vm6, %v5455_v38 }
 0x4d0   : > { %v5458_v40 = vpop.f32.mrb[40].mxu0 }
 0x4d1   : > { %v2093_v41 = vpop.f32.mrb[41].mxu0 }
 0x4d2   : > { %5482 = vmatprep.mubr.msk.f32.mxu1 %vm2155_vm6, %v2093_v41 }
 0x4d3   : > { %5483 = vmatmul.mubr.msk.f32.gmra.mrb[26].mxu1 %vm2155_vm6, %v5458_v40 }
 0x4d4   : > { %v5461_v42 = vpop.f32.mrb[42].mxu0 }
 0x4d5   : > { %v2103_v43 = vpop.f32.mrb[43].mxu0 }
 0x4d6   : > { %5485 = vmatprep.mubr.msk.f32.mxu1 %vm2155_vm6, %v2103_v43 }
 0x4d7   : > { %5486 = vmatmul.mubr.msk.f32.gmra.mrb[28].mxu1 %vm2155_vm6, %v5461_v42 }
 0x4d8   : > { %5490 = vmatprep.mubr.msk.f32.mxu1 %vm2155_vm6, %v2033_v28  ;;  %v5464_v44 = vpop.f32.mrb[44].mxu0  ;;  %v2819_v28 = vld [vmem:[%s6968_s12 + $0x78] sm:$0xff] }
 0x4d9   : > { %v2113_v45 = vpop.f32.mrb[45].mxu0 }
 0x4db   : > { %5491 = vmatmul.mubr.msk.f32.vlgmr.msra.gmra.mrb[22].mxu1 %vm2155_vm6, %v5440_v27  ;;  %v2818_v27 = vld [vmem:[%s6968_s12 + $0x70] sm:$0xff] }
 0x4dc   : > { %5493 = vmatprep.mubr.msk.f32.mxu1 %vm2155_vm6, %v2043_v30  ;;  %v5467_v46 = vpop.f32.mrb[46].mxu0  ;;  %5503 = vmatpush3.msk.msra.mxu1 %vm7012_vm5, %v4898_v37  ;;  %v2821_v30 = vld [vmem:[%s6968_s12 + $0x88] sm:$0xff] }
 0x4dd   : > { %v2123_v47 = vpop.f32.mrb[47].mxu0  ;;  %5738 = vmatprep.subr.bf16.mxu1 %v5934_v48 }
 0x4df   : > { %5494 = vmatmul.mubr.msk.f32.gmra.mrb[24].mxu1 %vm2155_vm6, %v5443_v29  ;;  %v2820_v29 = vld [vmem:[%s6968_s12 + $0x80] sm:$0xff] }
 0x4e0   : > { %5496 = vmatprep.mubr.msk.f32.mxu1 %vm2155_vm6, %v2053_v32  ;;  %v5470_v49 = vpop.f32.mrb[48].mxu0  ;;  %v2823_v32 = vld [vmem:[%s6968_s12 + $0x98] sm:$0xff] }
 0x4e1   : > { %v2133_v50 = vpop.f32.mrb[49].mxu0 }
 0x4e3   : > { %5497 = vmatmul.mubr.msk.f32.gmra.mrb[26].mxu1 %vm2155_vm6, %v5446_v31  ;;  %v2822_v31 = vld [vmem:[%s6968_s12 + $0x90] sm:$0xff] }
 0x4e4   : > { %5499 = vmatprep.mubr.msk.f32.mxu1 %vm2155_vm6, %v2063_v34  ;;  %v5473_v51 = vpop.f32.mrb[50].mxu0  ;;  %v2825_v34 = vld [vmem:[%s6968_s12 + $0xa8] sm:$0xff] }
 0x4e5   : > { %v2143_v52 = vpop.f32.mrb[51].mxu0 }
 0x4e7   : > { %5500 = vmatmul.mubr.msk.f32.gmra.mrb[28].mxu1 %vm2155_vm6, %v5449_v33  ;;  %v2824_v33 = vld [vmem:[%s6968_s12 + $0xa0] sm:$0xff] }
 0x4e8   : > { %5504 = vmatprep.mubr.msk.f32.mxu1 %vm2155_vm6, %v2113_v45  ;;  %v5520_v53 = vpop.f32.mrb[52].mxu0 }
 0x4e9   : > { %v2721_v54 = vpop.f32.mrb[53].mxu0 }
 0x4ea   : > { %v5739_v55 = vpack.c.bf16 %v5520_v53, %v2721_v54 }
 0x4eb   : > { %5505 = vmatmul.mubr.msk.f32.vlgmr.msra.gmra.mrb[22].mxu1 %vm2155_vm6, %v5464_v44 }
 0x4ec   : > { %5507 = vmatprep.mubr.msk.f32.mxu1 %vm2155_vm6, %v2123_v47  ;;  %5740 = vmatpush3.bf16.msra.mxu1 %v5739_v55 }
 0x4ef   : > { %5508 = vmatmul.mubr.msk.f32.gmra.mrb[24].mxu1 %vm2155_vm6, %v5467_v46  ;;  %v3085_v46 = vld [vmem:[%s6969_s13] sm:$0x3] }
 0x4f0   : > { %5510 = vmatprep.mubr.msk.f32.mxu1 %vm2155_vm6, %v2133_v50 }
 0x4f3   : > { %5511 = vmatmul.mubr.msk.f32.gmra.mrb[26].mxu1 %vm2155_vm6, %v5470_v49 }
 0x4f4   : > { %5513 = vmatprep.mubr.msk.f32.mxu1 %vm2155_vm6, %v2143_v52 }
 0x4f7   : > { %5514 = vmatmul.mubr.msk.f32.gmra.mrb[28].mxu1 %vm2155_vm6, %v5473_v51 }
 0x4f8   : > { %5525 = vmatprep.mubr.msk.f32.mxu1 %vm5935_vm14, %v5936_v56 }
 0x4fb   : > { %5526 = vmatmul.mubr.msk.f32.vlgmr.msra.gmra.mrb[30].mxu1 %vm691_vm0, %v2730_v57  ;;  %vm3113_vm0 = vcmask 1041408  }
 0x4fc   : > { %5566 = vmatprep.subr.msk.mxu1 %vm3113_vm0, %v4936_v39 }
 0x4fd   : > { %5567 = vmatpush3.msk.msra.mxu1 %vm3113_vm0, %v4936_v39 }
 0x4fe   : > { %5580 = vmatprep.subr.msk.mxu1 %vm3113_vm0, %v3085_v46 }
 0x5be   : > { %v5506_v59 = vpop.f32.mrb[22].mxu1 }
 0x5bf   : > { %2573 = vrot.lane.b32.xlu1 %v5506_v59, %s7045_s28  ;;  %v2516_v60 = vpop.f32.mrb[23].mxu1  ;;  %v2578_v61 = vrot.slane %v5506_v59, 4 }
 0x5c0   : > { %2564 = vst.msk [vmem:[#allocation2 + $0x10] sm:$0xf] %vm7006_vm15, %v2516_v60  ;;  %v2566_v0 = vrot.slane %v2516_v60, 4 }
 0x5c2   : > { %v5509_v62 = vpop.f32.mrb[24].mxu1 }
 0x5c3   : > { %2579 = vrot.lane.b32.xlu1 %v2578_v61, %s7046_s23  ;;  %v2526_v63 = vpop.f32.mrb[25].mxu1  ;;  %v2602_v12 = vrot.slane %v5509_v62, 4 }
 0x5c4   : > { %v2590_v15 = vrot.slane %v2526_v63, 4 }
 0x5c6   : > { %v5512_v1 = vpop.f32.mrb[26].mxu1 }
 0x5c7   : > { %2567 = vrot.lane.b32.xlu1 %v2566_v0, %s7047_s26  ;;  %v2536_v2 = vpop.f32.mrb[27].mxu1  ;;  %2616 = vrot.lane.b32.xlu0 %v5512_v1, %s7045_s28  ;;  %v2620_v3 = vrot.slane %v5512_v1, 4  ;;  %v4955_v0 = vld [vmem:[%s6969_s13 + $0x4] sm:$0x3] }
 0x5c8   : > { %2608 = vst.msk [vmem:[#allocation2 + $0x18] sm:$0xf] %vm7006_vm15, %v2536_v2  ;;  %v2610_v6 = vrot.slane %v2536_v2, 4  ;;  %vm2576_vm15 = vcmask 388352  }
 0x5ca   : > { %v5515_v4 = vpop.f32.mrb[28].mxu1 }
 0x5cb   : > { %2597 = vrot.lane.b32.xlu1 %v5509_v62, %s7001_s2  ;;  %v2546_v5 = vpop.f32.mrb[29].mxu1  ;;  %2621 = vrot.lane.b32.xlu0 %v2620_v3, %s7046_s23  ;;  %v2640_v18 = vrot.slane %v5515_v4, 4 }
 0x5cc   : > { %v2630_v21 = vrot.slane %v2546_v5, 4 }
 0x5ce   : > { %v6478_v7 = vpop.f32.mrb[30].mxu1 }
 0x5cf   : > { %2585 = vrot.lane.b32.xlu1 %v2526_v63, %s7003_s30  ;;  %v5527_v9 = vpop.f32.mrb[31].mxu1  ;;  %5528 = vmatprep.subr.mxu0 %v6478_v7  ;;  %s6893_s30 = scalar_lea.vmem [#allocation3], %s4782_s6 }
 0x5d0   : > { %2611 = vrot.lane.b32.xlu0 %v2610_v6, %s7047_s26  ;;  %5529 = vmatpush3.msra.mxu0 %v6478_v7 }
 0x5d1   : > { %5531 = vmatmul.mubr.msk.f32.vlgmr.msra.gmra.mrb[54].mxu0 %vm1208_vm3, %v2805_v8  ;;  %5608 = vmatprep.subr.mxu0 %v5936_v56 }
 0x5d2   : > { %5533 = vmatprep.mubr.msk.f32.mxu0 %vm1208_vm3, %v2806_v10  ;;  %5609 = vmatpush3.msk.msra.mxu0 %vm3113_vm0, %v3572_v11 }
 0x5d3   : > { %2603 = vrot.lane.b32.xlu1 %v2602_v12, %s7048_s5 }
 0x5d4   : > { %2636 = vrot.lane.b32.xlu0 %v5515_v4, %s7049_s21 }
 0x5d5   : > { %5534 = vmatmul.mubr.msk.f32.gmra.mrb[56].mxu0 %vm1208_vm3, %v2807_v13 }
 0x5d6   : > { %5536 = vmatprep.mubr.msk.f32.mxu0 %vm1208_vm3, %v2808_v14 }
 0x5d7   : > { %2591 = vrot.lane.b32.xlu1 %v2590_v15, %s7050_s27 }
 0x5d8   : > { %2626 = vrot.lane.b32.xlu0 %v2546_v5, %s7051_s7 }
 0x5d9   : > { %5537 = vmatmul.mubr.msk.f32.gmra.mrb[58].mxu0 %vm1208_vm3, %v2809_v16 }
 0x5da   : > { %5539 = vmatprep.mubr.msk.f32.mxu0 %vm1208_vm3, %v2810_v17  ;;  %v3649_v17 = vld [vmem:[%s6971_s15] sm:$0xf] }
 0x5dc   : > { %2641 = vrot.lane.b32.xlu0 %v2640_v18, %s7048_s5  ;;  %v3723_v18 = vld [vmem:[%s6972_s16] sm:$0xff] }
 0x5dd   : > { %5540 = vmatmul.mubr.msk.f32.gmra.mrb[60].mxu0 %vm1208_vm3, %v2811_v19 }
 0x5de   : > { %5542 = vmatprep.mubr.msk.f32.mxu0 %vm1208_vm3, %v2812_v20 }
 0x5e0   : > { %2631 = vrot.lane.b32.xlu0 %v2630_v21, %s7050_s27 }
 0x5e1   : > { %5543 = vmatmul.mubr.msk.f32.gmra.mrb[62].mxu0 %vm1208_vm3, %v2813_v22 }
 0x5e2   : > { %5545 = vmatprep.mubr.msk.f32.mxu0 %vm1208_vm3, %v2814_v23 }
 0x5e5   : > { %5546 = vmatmul.mubr.msk.f32.gmra.mrb[64].mxu0 %vm1208_vm3, %v2815_v24 }
 0x5e6   : > { %5548 = vmatprep.mubr.msk.f32.mxu0 %vm1208_vm3, %v2816_v25 }
 0x5e9   : > { %5549 = vmatmul.mubr.msk.f32.gmra.mrb[66].mxu0 %vm1208_vm3, %v2817_v26 }
 0x5ea   : > { %5551 = vmatprep.mubr.msk.f32.mxu0 %vm1208_vm3, %v2818_v27 }
 0x5ed   : > { %5552 = vmatmul.mubr.msk.f32.gmra.mrb[68].mxu0 %vm1208_vm3, %v2819_v28 }
 0x5ee   : > { %5554 = vmatprep.mubr.msk.f32.mxu0 %vm1208_vm3, %v2820_v29 }
 0x5f1   : > { %5555 = vmatmul.mubr.msk.f32.gmra.mrb[70].mxu0 %vm1208_vm3, %v2821_v30 }
 0x5f2   : > { %5557 = vmatprep.mubr.msk.f32.mxu0 %vm1208_vm3, %v2822_v31 }
 0x5f5   : > { %5558 = vmatmul.mubr.msk.f32.gmra.mrb[72].mxu0 %vm1208_vm3, %v2823_v32 }
 0x5f6   : > { %5560 = vmatprep.mubr.msk.f32.mxu0 %vm1208_vm3, %v2824_v33  ;;  %v3724_v33 = vld [vmem:[%s6972_s16 + $0x8] sm:$0xff] }
 0x5f9   : > { %5561 = vmatmul.mubr.msk.f32.gmra.mrb[74].mxu0 %vm1208_vm3, %v2825_v34 }
 0x5fa   : > { %5563 = vmatprep.mubr.msk.f32.mxu0 %vm1208_vm3, %v2826_v35  ;;  %v3725_v35 = vld [vmem:[%s6972_s16 + $0x10] sm:$0xff] }
 0x5fd   : > { %5564 = vmatmul.mubr.msk.f32.gmra.mrb[76].mxu0 %vm1208_vm3, %v2827_v36 }
 0x5fe   : > { %5610 = vmatprep.mubr.msk.f32.mxu0 %vm5935_vm14, %v5936_v56 }
 0x601   : > { %5611 = vmatmul.mubr.msk.f32.vlgmr.msra.gmra.mrb[78].mxu0 %vm3088_vm1, %v6478_v7 }
 0x602   : > { %5620 = vmatprep.mubr.msk.f32.mxu0 %vm2155_vm6, %v3723_v18 }
 0x631   : > { %v2574_v37 = vpop.permute.xlu1 %2573 }
 0x635   : > { %v2580_v38 = vpop.permute.xlu1 %2579 }
 0x639   : > { %v2568_v40 = vpop.permute.xlu1 %2567  ;;  %v2617_v41 = vpop.permute.xlu0 %2616 }
 0x63a   : > { %2571 = vst.msk [vmem:[#allocation2 + $0x10] sm:$0xf] %vm2570_vm2, %v2568_v40  ;;  %v3728_v40 = vld [vmem:[%s6972_s16 + $0x28] sm:$0xff] }
 0x63b   : > { %2577 = vst.msk [vmem:[#allocation2 + $0x10] sm:$0xf] %vm2576_vm15, %v2574_v37  ;;  %v3726_v37 = vld [vmem:[%s6972_s16 + $0x18] sm:$0xff] }
 0x63c   : > { %2583 = vst.msk [vmem:[#allocation2 + $0x10] sm:$0xf] %vm2582_vm13, %v2580_v38  ;;  %v3727_v38 = vld [vmem:[%s6972_s16 + $0x20] sm:$0xff] }
 0x63d   : > { %v2598_v42 = vpop.permute.xlu1 %2597  ;;  %v2622_v43 = vpop.permute.xlu0 %2621 }
 0x641   : > { %v2586_v44 = vpop.permute.xlu1 %2585 }
 0x642   : > { %2589 = vst.msk [vmem:[#allocation2 + $0x10] sm:$0xf] %vm2588_vm12, %v2586_v44  ;;  %v2612_v45 = vpop.permute.xlu0 %2611  ;;  %v3731_v44 = vld [vmem:[%s6972_s16 + $0x40] sm:$0xff] }
 0x643   : > { %2614 = vst.msk [vmem:[#allocation2 + $0x18] sm:$0xf] %vm2570_vm2, %v2612_v45  ;;  %v3732_v45 = vld [vmem:[%s6972_s16 + $0x48] sm:$0xff] }
 0x644   : > { %2619 = vst.msk [vmem:[#allocation2 + $0x18] sm:$0xf] %vm2576_vm15, %v2617_v41  ;;  %v3729_v41 = vld [vmem:[%s6972_s16 + $0x30] sm:$0xff] }
 0x645   : > { %2624 = vst.msk [vmem:[#allocation2 + $0x18] sm:$0xf] %vm2582_vm13, %v2622_v43  ;;  %v2604_v47 = vpop.permute.xlu1 %2603  ;;  %v3730_v43 = vld [vmem:[%s6972_s16 + $0x38] sm:$0xff] }
 0x646   : > { %v2637_v48 = vpop.permute.xlu0 %2636 }
 0x649   : > { %v2592_v49 = vpop.permute.xlu1 %2591 }
 0x64a   : > { %2595 = vst.msk [vmem:[#allocation2 + $0x10] sm:$0xf] %vm2594_vm11, %v2592_v49  ;;  %v2627_v50 = vpop.permute.xlu0 %2626  ;;  %v3736_v49 = vld [vmem:[%s6972_s16 + $0x68] sm:$0xff] }
 0x64b   : > { %2601 = vst.msk [vmem:[#allocation2 + $0x10] sm:$0xf] %vm2600_vm10, %v2598_v42 }
 0x64c   : > { %2629 = vst.msk [vmem:[#allocation2 + $0x18] sm:$0xf] %vm2588_vm12, %v2627_v50  ;;  %v3737_v50 = vld [vmem:[%s6972_s16 + $0x70] sm:$0xff] }
 0x64d   : > { %2607 = vst.msk [vmem:[#allocation2 + $0x10] sm:$0xf] %vm7013_vm9, %v2604_v47  ;;  %v3734_v47 = vld [vmem:[%s6972_s16 + $0x58] sm:$0xff] }
 0x64e   : > { %v2642_v51 = vpop.permute.xlu0 %2641 }
 0x652   : > { %v2632_v52 = vpop.permute.xlu0 %2631 }
 0x653   : > { %2634 = vst.msk [vmem:[#allocation2 + $0x18] sm:$0xf] %vm2594_vm11, %v2632_v52  ;;  %v3739_v52 = vld [vmem:[%s6972_s16 + $0x80] sm:$0xff] }
 0x654   : > { %2639 = vst.msk [vmem:[#allocation2 + $0x18] sm:$0xf] %vm2600_vm10, %v2637_v48  ;;  %v3735_v48 = vld [vmem:[%s6972_s16 + $0x60] sm:$0xff] }
 0x655   : > { %2644 = vst.msk [vmem:[#allocation2 + $0x18] sm:$0xf] %vm7013_vm9, %v2642_v51  ;;  %v3738_v51 = vld [vmem:[%s6972_s16 + $0x78] sm:$0xff] }
 0x6a4   : > { %v5532_v53 = vpop.f32.mrb[54].mxu0 }
 0x6a5   : > { %v2966_v54 = vpop.f32.mrb[55].mxu0 }
 0x6a8   : > { %v5535_v55 = vpop.f32.mrb[56].mxu0 }
 0x6a9   : > { %v2976_v57 = vpop.f32.mrb[57].mxu0 }
 0x6ac   : > { %v5538_v58 = vpop.f32.mrb[58].mxu0 }
 0x6ad   : > { %v2986_v59 = vpop.f32.mrb[59].mxu0 }
 0x6b0   : > { %v5541_v60 = vpop.f32.mrb[60].mxu0 }
 0x6b1   : > { %v2996_v61 = vpop.f32.mrb[61].mxu0 }
 0x6b4   : > { %v5544_v62 = vpop.f32.mrb[62].mxu0 }
 0x6b5   : > { %v3006_v63 = vpop.f32.mrb[63].mxu0 }
 0x6b6   : > { %5568 = vmatprep.mubr.msk.f32.mxu1 %vm3088_vm1, %v3006_v63 }
 0x6b7   : > { %5569 = vmatmul.mubr.msk.f32.vlgmr.msra.gmra.mrb[32].mxu1 %vm3088_vm1, %v5544_v62 }
 0x6b8   : > { %v5547_v1 = vpop.f32.mrb[64].mxu0  ;;  %5581 = vmatpush3.msk.msra.mxu1 %vm3113_vm0, %v3085_v46  ;;  %v3733_v46 = vld [vmem:[%s6972_s16 + $0x50] sm:$0xff] }
 0x6b9   : > { %v3016_v2 = vpop.f32.mrb[65].mxu0  ;;  %5594 = vmatprep.subr.msk.mxu1 %vm3113_vm0, %v4955_v0 }
 0x6ba   : > { %5571 = vmatprep.mubr.msk.f32.mxu1 %vm3088_vm1, %v3016_v2 }
 0x6bb   : > { %5572 = vmatmul.mubr.msk.f32.gmra.mrb[34].mxu1 %vm3088_vm1, %v5547_v1 }
 0x6bc   : > { %v5550_v3 = vpop.f32.mrb[66].mxu0 }
 0x6bd   : > { %v3026_v4 = vpop.f32.mrb[67].mxu0 }
 0x6be   : > { %5574 = vmatprep.mubr.msk.f32.mxu1 %vm3088_vm1, %v3026_v4 }
 0x6bf   : > { %5575 = vmatmul.mubr.msk.f32.gmra.mrb[36].mxu1 %vm3088_vm1, %v5550_v3 }
 0x6c0   : > { %v5553_v5 = vpop.f32.mrb[68].mxu0 }
 0x6c1   : > { %v3036_v6 = vpop.f32.mrb[69].mxu0 }
 0x6c2   : > { %5577 = vmatprep.mubr.msk.f32.mxu1 %vm3088_vm1, %v3036_v6 }
 0x6c3   : > { %5578 = vmatmul.mubr.msk.f32.gmra.mrb[38].mxu1 %vm3088_vm1, %v5553_v5 }
 0x6c4   : > { %5582 = vmatprep.mubr.msk.f32.mxu1 %vm3088_vm1, %v2966_v54  ;;  %v5556_v7 = vpop.f32.mrb[70].mxu0  ;;  %v3741_v54 = vld [vmem:[%s6972_s16 + $0x90] sm:$0xff] }
 0x6c5   : > { %v3046_v8 = vpop.f32.mrb[71].mxu0 }
 0x6c7   : > { %5583 = vmatmul.mubr.msk.f32.vlgmr.msra.gmra.mrb[32].mxu1 %vm3088_vm1, %v5532_v53  ;;  %v3740_v53 = vld [vmem:[%s6972_s16 + $0x88] sm:$0xff] }
 0x6c8   : > { %5585 = vmatprep.mubr.msk.f32.mxu1 %vm3088_vm1, %v2976_v57  ;;  %v5559_v9 = vpop.f32.mrb[72].mxu0  ;;  %5595 = vmatpush3.msk.msra.mxu1 %vm3113_vm0, %v4955_v0  ;;  %v3743_v57 = vld [vmem:[%s6972_s16 + $0xa0] sm:$0xff]  ;;  %vm7055_vm0 = vcmask 917252  }
 0x6c9   : > { %v3056_v10 = vpop.f32.mrb[73].mxu0  ;;  %5613 = vmatprep.subr.mxu1 %v5936_v56  ;;  %v4993_v0 = vld [vmem:[%s6973_s17 + $0x1] sm:$0x1] }
 0x6cb   : > { %5586 = vmatmul.mubr.msk.f32.gmra.mrb[34].mxu1 %vm3088_vm1, %v5535_v55  ;;  %v3742_v55 = vld [vmem:[%s6972_s16 + $0x98] sm:$0xff] }
 0x6cc   : > { %5588 = vmatprep.mubr.msk.f32.mxu1 %vm3088_vm1, %v2986_v59  ;;  %v5562_v11 = vpop.f32.mrb[74].mxu0  ;;  %v3745_v59 = vld [vmem:[%s6972_s16 + $0xb0] sm:$0xff] }
 0x6cd   : > { %v3066_v12 = vpop.f32.mrb[75].mxu0 }
 0x6cf   : > { %5589 = vmatmul.mubr.msk.f32.gmra.mrb[36].mxu1 %vm3088_vm1, %v5538_v58  ;;  %v3744_v58 = vld [vmem:[%s6972_s16 + $0xa8] sm:$0xff] }
 0x6d0   : > { %5591 = vmatprep.mubr.msk.f32.mxu1 %vm3088_vm1, %v2996_v61  ;;  %v5565_v13 = vpop.f32.mrb[76].mxu0 }
 0x6d1   : > { %v3076_v14 = vpop.f32.mrb[77].mxu0 }
 0x6d3   : > { %5592 = vmatmul.mubr.msk.f32.gmra.mrb[38].mxu1 %vm3088_vm1, %v5541_v60  ;;  %v3746_v60 = vld [vmem:[%s6972_s16 + $0xb8] sm:$0xff] }
 0x6d4   : > { %v3645_v15 = vpop.f32.mrb[78].mxu0  ;;  %5596 = vmatprep.mubr.msk.f32.mxu1 %vm3088_vm1, %v3046_v8 }
 0x6d5   : > { %v5612_v16 = vpop.f32.mrb[79].mxu0 }
 0x6d7   : > { %5597 = vmatmul.mubr.msk.f32.vlgmr.msra.gmra.mrb[32].mxu1 %vm3088_vm1, %v5556_v7  ;;  %v4007_v7 = vld [vmem:[%s6973_s17] sm:$0x1] }
 0x6d8   : > { %5614 = vmatpush3.msra.mxu1 %v3645_v15  ;;  %5599 = vmatprep.mubr.msk.f32.mxu1 %vm3088_vm1, %v3056_v10 }
 0x6db   : > { %5600 = vmatmul.mubr.msk.f32.gmra.mrb[34].mxu1 %vm3088_vm1, %v5559_v9 }
 0x6dc   : > { %5602 = vmatprep.mubr.msk.f32.mxu1 %vm3088_vm1, %v3066_v12 }
 0x6df   : > { %5603 = vmatmul.mubr.msk.f32.gmra.mrb[36].mxu1 %vm3088_vm1, %v5562_v11 }
 0x6e0   : > { %5605 = vmatprep.mubr.msk.f32.mxu1 %vm3088_vm1, %v3076_v14  ;;  %v4493_v14 = vld [vmem:[#allocation2 + $0x8] sm:$0xff] }
 0x6e3   : > { %5606 = vmatmul.mubr.msk.f32.gmra.mrb[38].mxu1 %vm3088_vm1, %v5565_v13  ;;  %vm7056_vm1 = vcmask 1048452  }
 0x6e4   : > { %5615 = vmatprep.mubr.msk.f32.mxu1 %vm5935_vm14, %v5936_v56  ;;  %vm7054_vm14 = vcmask 786052  }
 0x6e5   : > { %vm7058_vm9 = vmmov %vm7054_vm14 }
 0x6e7   : > { %5616 = vmatmul.mubr.msk.f32.vlgmr.msra.gmra.mrb[40].mxu1 %vm1208_vm3, %v3649_v17  ;;  %vm4035_vm3 = vcmask 1040384   ;;  %v4492_v17 = vld [vmem:[#allocation2] sm:$0xff] }
 0x6e8   : > { %5656 = vmatprep.subr.msk.mxu1 %vm4035_vm3, %v4993_v0 }
 0x6e9   : > { %5657 = vmatpush3.msk.msra.mxu1 %vm4035_vm3, %v4993_v0  ;;  %v4504_v0 = vld [vmem:[%s6975_s19 + $0x10] sm:$0xff] }
 0x6ea   : > { %5670 = vmatprep.subr.msk.mxu1 %vm4035_vm3, %v4007_v7 }
 0x7aa   : > { %v5598_v19 = vpop.f32.mrb[32].mxu1 }
 0x7ab   : > { %3510 = vrot.lane.b32.xlu1 %v5598_v19, %s7046_s23  ;;  %v3449_v20 = vpop.f32.mrb[33].mxu1  ;;  %v3505_v24 = vrot.slane %v5598_v19, 4 }
 0x7ac   : > { %v3497_v21 = vrot.slane %v3449_v20, 4 }
 0x7ae   : > { %3499 = vst.msk [vmem:[#allocation2 + $0x10] sm:$0xf0] %vm1609_vm4, %v3497_v21  ;;  %v5601_v22 = vpop.f32.mrb[34].mxu1 }
 0x7af   : > { %3500 = vrot.lane.b32.xlu1 %v3449_v20, %s7047_s26  ;;  %v3459_v23 = vpop.f32.mrb[35].mxu1  ;;  %3530 = vrot.lane.b32.xlu0 %v5601_v22, %s7048_s5  ;;  %v3525_v31 = vrot.slane %v5601_v22, 4 }
 0x7b0   : > { %v3515_v36 = vrot.slane %v3459_v23, 4 }
 0x7b2   : > { %v5604_v25 = vpop.f32.mrb[36].mxu1 }
 0x7b3   : > { %3506 = vrot.lane.b32.xlu1 %v3505_v24, %s7045_s28  ;;  %v3469_v26 = vpop.f32.mrb[37].mxu1  ;;  %3548 = vrot.lane.b32.xlu0 %v5604_v25, %s7046_s23  ;;  %v3543_v28 = vrot.slane %v5604_v25, 4 }
 0x7b4   : > { %v3535_v27 = vrot.slane %v3469_v26, 4 }
 0x7b6   : > { %3537 = vst.msk [vmem:[#allocation2 + $0x18] sm:$0xf0] %vm1609_vm4, %v3535_v27  ;;  %v5607_v29 = vpop.f32.mrb[38].mxu1  ;;  %vm7052_vm4 = vcmask 523652  }
 0x7b7   : > { %3520 = vrot.lane.b32.xlu1 %v3459_v23, %s7050_s27  ;;  %v3479_v30 = vpop.f32.mrb[39].mxu1  ;;  %3544 = vrot.lane.b32.xlu0 %v3543_v28, %s7045_s28  ;;  %v3563_v39 = vrot.slane %v5607_v29, 4 }
 0x7b8   : > { %v3553_v42 = vrot.slane %v3479_v30, 4 }
 0x7ba   : > { %v3719_v32 = vpop.f32.mrb[40].mxu1 }
 0x7bb   : > { %3526 = vrot.lane.b32.xlu1 %v3525_v31, %s7049_s21  ;;  %v5617_v34 = vpop.f32.mrb[41].mxu1  ;;  %5618 = vmatprep.subr.msk.mxu0 %vm7012_vm5, %v3719_v32 }
 0x7bc   : > { %3568 = vrot.lane.b32.xlu0 %v5607_v29, %s7048_s5  ;;  %5619 = vmatpush3.msk.msra.mxu0 %vm7012_vm5, %v3719_v32  ;;  %v5012_v29 = vld [vmem:[%s6973_s17 + $0x2] sm:$0x1] }
 0x7bd   : > { %5621 = vmatmul.mubr.msk.f32.vlgmr.msra.gmra.mrb[80].mxu0 %vm2155_vm6, %v3724_v33 }
 0x7be   : > { %5623 = vmatprep.mubr.msk.f32.mxu0 %vm2155_vm6, %v3725_v35 }
 0x7bf   : > { %3516 = vrot.lane.b32.xlu1 %v3515_v36, %s7051_s7 }
 0x7c0   : > { %3558 = vrot.lane.b32.xlu0 %v3479_v30, %s7050_s27 }
 0x7c1   : > { %5624 = vmatmul.mubr.msk.f32.gmra.mrb[82].mxu0 %vm2155_vm6, %v3726_v37 }
 0x7c2   : > { %5626 = vmatprep.mubr.msk.f32.mxu0 %vm2155_vm6, %v3727_v38 }
 0x7c3   : > { %3538 = vrot.lane.b32.xlu1 %v3469_v26, %s7047_s26 }
 0x7c4   : > { %3564 = vrot.lane.b32.xlu0 %v3563_v39, %s7049_s21 }
 0x7c5   : > { %5627 = vmatmul.mubr.msk.f32.gmra.mrb[84].mxu0 %vm2155_vm6, %v3728_v40 }
 0x7c6   : > { %5629 = vmatprep.mubr.msk.f32.mxu0 %vm2155_vm6, %v3729_v41 }
 0x7c8   : > { %3554 = vrot.lane.b32.xlu0 %v3553_v42, %s7051_s7 }
 0x7c9   : > { %5630 = vmatmul.mubr.msk.f32.gmra.mrb[86].mxu0 %vm2155_vm6, %v3730_v43 }
 0x7ca   : > { %5632 = vmatprep.mubr.msk.f32.mxu0 %vm2155_vm6, %v3731_v44 }
 0x7cd   : > { %5633 = vmatmul.mubr.msk.f32.gmra.mrb[88].mxu0 %vm2155_vm6, %v3732_v45 }
 0x7ce   : > { %5635 = vmatprep.mubr.msk.f32.mxu0 %vm2155_vm6, %v3733_v46 }
 0x7d1   : > { %5636 = vmatmul.mubr.msk.f32.gmra.mrb[90].mxu0 %vm2155_vm6, %v3734_v47 }
 0x7d2   : > { %5638 = vmatprep.mubr.msk.f32.mxu0 %vm2155_vm6, %v3735_v48 }
 0x7d5   : > { %5639 = vmatmul.mubr.msk.f32.gmra.mrb[92].mxu0 %vm2155_vm6, %v3736_v49 }
 0x7d6   : > { %5641 = vmatprep.mubr.msk.f32.mxu0 %vm2155_vm6, %v3737_v50 }
 0x7d9   : > { %5642 = vmatmul.mubr.msk.f32.gmra.mrb[94].mxu0 %vm2155_vm6, %v3738_v51 }
 0x7da   : > { %5644 = vmatprep.mubr.msk.f32.mxu0 %vm2155_vm6, %v3739_v52 }
 0x7dd   : > { %5645 = vmatmul.mubr.msk.f32.gmra.mrb[96].mxu0 %vm2155_vm6, %v3740_v53 }
 0x7de   : > { %5647 = vmatprep.mubr.msk.f32.mxu0 %vm2155_vm6, %v3741_v54 }
 0x7e1   : > { %5648 = vmatmul.mubr.msk.f32.gmra.mrb[98].mxu0 %vm2155_vm6, %v3742_v55 }
 0x7e2   : > { %5650 = vmatprep.mubr.msk.f32.mxu0 %vm2155_vm6, %v3743_v57 }
 0x7e5   : > { %5651 = vmatmul.mubr.msk.f32.gmra.mrb[100].mxu0 %vm2155_vm6, %v3744_v58 }
 0x7e6   : > { %5653 = vmatprep.mubr.msk.f32.mxu0 %vm2155_vm6, %v3745_v59 }
 0x7e9   : > { %5654 = vmatmul.mubr.msk.f32.gmra.mrb[102].mxu0 %vm2155_vm6, %v3746_v60  ;;  %vm7053_vm6 = vcmask 654852  }
 0x7ea   : > { %4609 = vmatprep.mubr.f32.mxu0 %v5936_v56  ;;  %vm7057_vm5 = vmmov %vm7053_vm6 }
 0x81d   : > { %v3511_v61 = vpop.permute.xlu1 %3510 }
 0x821   : > { %v3501_v62 = vpop.permute.xlu1 %3500  ;;  %v3531_v63 = vpop.permute.xlu0 %3530 }
 0x822   : > { %3503 = vst.msk [vmem:[#allocation2 + $0x10] sm:$0xf0] %vm1614_vm7, %v3501_v62  ;;  %v4502_v62 = vld [vmem:[%s6975_s19] sm:$0xff] }
 0x825   : > { %v3507_v1 = vpop.permute.xlu1 %3506  ;;  %v3549_v2 = vpop.permute.xlu0 %3548 }
 0x826   : > { %3509 = vst.msk [vmem:[#allocation2 + $0x10] sm:$0xf0] %vm1621_vm8, %v3507_v1  ;;  %v4505_v1 = vld [vmem:[%s6975_s19 + $0x18] sm:$0xff] }
 0x827   : > { %3513 = vst.msk [vmem:[#allocation2 + $0x10] sm:$0xf0] %vm7052_vm4, %v3511_v61  ;;  %v4503_v61 = vld [vmem:[%s6975_s19 + $0x8] sm:$0xff] }
 0x829   : > { %v3521_v3 = vpop.permute.xlu1 %3520  ;;  %v3545_v4 = vpop.permute.xlu0 %3544 }
 0x82d   : > { %v3527_v5 = vpop.permute.xlu1 %3526 }
 0x82e   : > { %v3569_v6 = vpop.permute.xlu0 %3568 }
 0x831   : > { %v3517_v8 = vpop.permute.xlu1 %3516 }
 0x832   : > { %3519 = vst.msk [vmem:[#allocation2 + $0x10] sm:$0xf0] %vm7053_vm6, %v3517_v8  ;;  %v3559_v9 = vpop.permute.xlu0 %3558  ;;  %vm7059_vm6 = vmmov %vm7055_vm0 }
 0x833   : > { %3523 = vst.msk [vmem:[#allocation2 + $0x10] sm:$0xf0] %vm7054_vm14, %v3521_v3  ;;  %vm7060_vm14 = vmmov %vm7056_vm1  ;;  %v4643_v3 = vld [vmem:[%s6976_s20 + $0x8] sm:$0xff] }
 0x834   : > { %3529 = vst.msk [vmem:[#allocation2 + $0x10] sm:$0xf0] %vm7055_vm0, %v3527_v5  ;;  %v4645_v5 = vld [vmem:[%s6976_s20 + $0x18] sm:$0xff] }
 0x835   : > { %3533 = vst.msk [vmem:[#allocation2 + $0x10] sm:$0xf0] %vm7056_vm1, %v3531_v63  ;;  %v3539_v10 = vpop.permute.xlu1 %3538  ;;  %v5937_v63 = vmov 0  }
 0x836   : > { %3541 = vst.msk [vmem:[#allocation2 + $0x18] sm:$0xf0] %vm1614_vm7, %v3539_v10  ;;  %v3565_v11 = vpop.permute.xlu0 %3564  ;;  %vm7061_vm7 = vcmask 125952   ;;  %5861 = vset.pattern.permute.xlu1 %v5937_v63  ;;  %5860 = vset.pattern.permute.xlu0 %v5937_v63 }
 0x837   : > { %3547 = vst.msk [vmem:[#allocation2 + $0x18] sm:$0xf0] %vm1621_vm8, %v3545_v4  ;;  %vm7062_vm8 = vmmov %vm7061_vm7  ;;  %v4644_v4 = vld [vmem:[%s6976_s20 + $0x10] sm:$0xff] }
 0x838   : > { %3551 = vst.msk [vmem:[#allocation2 + $0x18] sm:$0xf0] %vm7052_vm4, %v3549_v2  ;;  %v4642_v2 = vld [vmem:[%s6976_s20] sm:$0xff] }
 0x83a   : > { %v3555_v12 = vpop.permute.xlu0 %3554 }
 0x83b   : > { %3557 = vst.msk [vmem:[#allocation2 + $0x18] sm:$0xf0] %vm7057_vm5, %v3555_v12  ;;  %vm4010_vm5 = vcmask 7168  }
 0x83c   : > { %3561 = vst.msk [vmem:[#allocation2 + $0x18] sm:$0xf0] %vm7058_vm9, %v3559_v9  ;;  %v4494_v13 = vld [vmem:[#allocation2 + $0x10] sm:$0xff]  ;;  %vm7063_vm9 = vcmask 1044352  }
 0x83d   : > { %3567 = vst.msk [vmem:[#allocation2 + $0x18] sm:$0xf0] %vm7059_vm6, %v3565_v11  ;;  %v5743_v18 = vpack.c.bf16 %v4494_v13, %v4492_v17 }
 0x83e   : > { %3571 = vst.msk [vmem:[#allocation2 + $0x18] sm:$0xf0] %vm7060_vm14, %v3569_v6 }
 0x845   : > { %v4495_v15 = vld [vmem:[#allocation2 + $0x18] sm:$0xff] }
 0x846   : > { %v5741_v16 = vpack.c.bf16 %v4495_v15, %v4493_v14 }
 0x848   : > { %5742 = vmatprep.subr.bf16.mxu0 %v5741_v16 }
 0x849   : > { %5744 = vmatpush1.bf16.msra.mxu0 %v5743_v18 }
 0x890   : > { %v5622_v19 = vpop.f32.mrb[80].mxu0 }
 0x891   : > { %v3888_v20 = vpop.f32.mrb[81].mxu0 }
 0x894   : > { %v5625_v21 = vpop.f32.mrb[82].mxu0 }
 0x895   : > { %v3898_v22 = vpop.f32.mrb[83].mxu0 }
 0x898   : > { %v5628_v23 = vpop.f32.mrb[84].mxu0 }
 0x899   : > { %v3908_v24 = vpop.f32.mrb[85].mxu0 }
 0x89c   : > { %v5631_v25 = vpop.f32.mrb[86].mxu0 }
 0x89d   : > { %v3918_v26 = vpop.f32.mrb[87].mxu0 }
 0x8a0   : > { %v5634_v27 = vpop.f32.mrb[88].mxu0 }
 0x8a1   : > { %v3928_v28 = vpop.f32.mrb[89].mxu0 }
 0x8a2   : > { %5658 = vmatprep.mubr.msk.f32.mxu1 %vm4010_vm5, %v3928_v28 }
 0x8a3   : > { %5659 = vmatmul.mubr.msk.f32.vlgmr.msra.gmra.mrb[42].mxu1 %vm4010_vm5, %v5634_v27 }
 0x8a4   : > { %v5637_v30 = vpop.f32.mrb[90].mxu0  ;;  %5671 = vmatpush3.msk.msra.mxu1 %vm4035_vm3, %v4007_v7 }
 0x8a5   : > { %v3938_v31 = vpop.f32.mrb[91].mxu0  ;;  %5684 = vmatprep.subr.msk.mxu1 %vm4035_vm3, %v5012_v29 }
 0x8a6   : > { %5661 = vmatprep.mubr.msk.f32.mxu1 %vm4010_vm5, %v3938_v31 }
 0x8a7   : > { %5662 = vmatmul.mubr.msk.f32.gmra.mrb[44].mxu1 %vm4010_vm5, %v5637_v30 }
 0x8a8   : > { %v5640_v32 = vpop.f32.mrb[92].mxu0 }
 0x8a9   : > { %v3948_v33 = vpop.f32.mrb[93].mxu0 }
 0x8aa   : > { %5664 = vmatprep.mubr.msk.f32.mxu1 %vm4010_vm5, %v3948_v33 }
 0x8ab   : > { %5665 = vmatmul.mubr.msk.f32.gmra.mrb[46].mxu1 %vm4010_vm5, %v5640_v32 }
 0x8ac   : > { %v5643_v34 = vpop.f32.mrb[94].mxu0 }
 0x8ad   : > { %v3958_v35 = vpop.f32.mrb[95].mxu0 }
 0x8ae   : > { %5667 = vmatprep.mubr.msk.f32.mxu1 %vm4010_vm5, %v3958_v35 }
 0x8af   : > { %5668 = vmatmul.mubr.msk.f32.gmra.mrb[48].mxu1 %vm4010_vm5, %v5643_v34 }
 0x8b0   : > { %5672 = vmatprep.mubr.msk.f32.mxu1 %vm4010_vm5, %v3888_v20  ;;  %v5646_v36 = vpop.f32.mrb[96].mxu0 }
 0x8b1   : > { %v3968_v37 = vpop.f32.mrb[97].mxu0 }
 0x8b3   : > { %5673 = vmatmul.mubr.msk.f32.vlgmr.msra.gmra.mrb[42].mxu1 %vm4010_vm5, %v5622_v19 }
 0x8b4   : > { %5675 = vmatprep.mubr.msk.f32.mxu1 %vm4010_vm5, %v3898_v22  ;;  %5685 = vmatpush3.msk.msra.mxu1 %vm4035_vm3, %v5012_v29  ;;  %v5649_v38 = vpop.f32.mrb[98].mxu0  ;;  %vm7064_vm3 = vmmov %vm7063_vm9  ;;  %v4498_v22 = vld [vmem:[%s6974_s18] sm:$0xff] }
 0x8b5   : > { %v3978_v39 = vpop.f32.mrb[99].mxu0 }
 0x8b7   : > { %5676 = vmatmul.mubr.msk.f32.gmra.mrb[44].mxu1 %vm4010_vm5, %v5625_v21 }
 0x8b8   : > { %5678 = vmatprep.mubr.msk.f32.mxu1 %vm4010_vm5, %v3908_v24  ;;  %v5652_v40 = vpop.f32.mrb[100].mxu0  ;;  %v4500_v24 = vld [vmem:[%s6974_s18 + $0x10] sm:$0xff] }
 0x8b9   : > { %v3988_v41 = vpop.f32.mrb[101].mxu0 }
 0x8bb   : > { %5679 = vmatmul.mubr.msk.f32.gmra.mrb[46].mxu1 %vm4010_vm5, %v5628_v23  ;;  %v4499_v23 = vld [vmem:[%s6974_s18 + $0x8] sm:$0xff] }
 0x8bc   : > { %5681 = vmatprep.mubr.msk.f32.mxu1 %vm4010_vm5, %v3918_v26  ;;  %v5655_v42 = vpop.f32.mrb[102].mxu0 }
 0x8bd   : > { %v3998_v43 = vpop.f32.mrb[103].mxu0 }
 0x8bf   : > { %5682 = vmatmul.mubr.msk.f32.gmra.mrb[48].mxu1 %vm4010_vm5, %v5631_v25  ;;  %v4501_v25 = vld [vmem:[%s6974_s18 + $0x18] sm:$0xff] }
 0x8c0   : > { %5686 = vmatprep.mubr.msk.f32.mxu1 %vm4010_vm5, %v3968_v37 }
 0x8c3   : > { %5687 = vmatmul.mubr.msk.f32.vlgmr.msra.gmra.mrb[42].mxu1 %vm4010_vm5, %v5646_v36 }
 0x8c4   : > { %5689 = vmatprep.mubr.msk.f32.mxu1 %vm4010_vm5, %v3978_v39 }
 0x8c7   : > { %5690 = vmatmul.mubr.msk.f32.gmra.mrb[44].mxu1 %vm4010_vm5, %v5649_v38 }
 0x8c8   : > { %5692 = vmatprep.mubr.msk.f32.mxu1 %vm4010_vm5, %v3988_v41 }
 0x8cb   : > { %5693 = vmatmul.mubr.msk.f32.gmra.mrb[46].mxu1 %vm4010_vm5, %v5652_v40 }
 0x8cc   : > { %5695 = vmatprep.mubr.msk.f32.mxu1 %vm4010_vm5, %v3998_v43 }
 0x8cf   : > { %5696 = vmatmul.mubr.msk.f32.gmra.mrb[48].mxu1 %vm4010_vm5, %v5655_v42 }
 0x996   : > { %v5688_v44 = vpop.f32.mrb[42].mxu1 }
 0x997   : > { %4426 = vrot.lane.b32.xlu1 %v5688_v44, %s7045_s28  ;;  %v4371_v45 = vpop.f32.mrb[43].mxu1  ;;  %v4430_v46 = vrot.slane %v5688_v44, 4 }
 0x998   : > { %4418 = vst.msk [vmem:[#allocation2 + $0x20] sm:$0xf] %vm7061_vm7, %v4371_v45  ;;  %v4420_v49 = vrot.slane %v4371_v45, 4 }
 0x99a   : > { %v5691_v47 = vpop.f32.mrb[44].mxu1 }
 0x99b   : > { %4431 = vrot.lane.b32.xlu1 %v4430_v46, %s7046_s23  ;;  %v4381_v48 = vpop.f32.mrb[45].mxu1  ;;  %v4450_v59 = vrot.slane %v5691_v47, 4 }
 0x99c   : > { %v4440_v55 = vrot.slane %v4381_v48, 4 }
 0x99e   : > { %v5694_v50 = vpop.f32.mrb[46].mxu1 }
 0x99f   : > { %4421 = vrot.lane.b32.xlu1 %v4420_v49, %s7047_s26  ;;  %v4391_v51 = vpop.f32.mrb[47].mxu1  ;;  %4463 = vrot.lane.b32.xlu0 %v5694_v50, %s7045_s28  ;;  %v4467_v52 = vrot.slane %v5694_v50, 4 }
 0x9a0   : > { %4455 = vst.msk [vmem:[#allocation2 + $0x28] sm:$0xf] %vm7062_vm8, %v4391_v51  ;;  %v4457_v57 = vrot.slane %v4391_v51, 4 }
 0x9a2   : > { %v5697_v53 = vpop.f32.mrb[48].mxu1 }
 0x9a3   : > { %4436 = vrot.lane.b32.xlu1 %v4381_v48, %s7051_s7  ;;  %v4401_v54 = vpop.f32.mrb[49].mxu1  ;;  %4468 = vrot.lane.b32.xlu0 %v4467_v52, %s7046_s23  ;;  %v4487_v60 = vrot.slane %v5697_v53, 4  ;;  %s4704_s23 = sshll.u32 %s6893_s30, 4  ;;  %s6908_s23 = int_to_ptr.vmem [resolvable:$true] %s4704_s23 }
 0x9a4   : > { %v4477_v58 = vrot.slane %v4401_v54, 4 }
 0x9a7   : > { %4441 = vrot.lane.b32.xlu1 %v4440_v55, %s7050_s27  ;;  %4483 = vrot.lane.b32.xlu0 %v5697_v53, %s7049_s21 }
 0x9ab   : > { %4458 = vrot.lane.b32.xlu1 %v4457_v57, %s7047_s26  ;;  %4473 = vrot.lane.b32.xlu0 %v4401_v54, %s7051_s7  ;;  %s7068_s7 = sld [smem:[#allocation23_spill]] }
 0x9af   : > { %4446 = vrot.lane.b32.xlu1 %v5691_v47, %s7049_s21  ;;  %4478 = vrot.lane.b32.xlu0 %v4477_v58, %s7050_s27  ;;  %s5863_s27 = scalar_lea.vmem %s6908_s23, 1024 }
 0x9b0   : > { %p5864_p11 = scmp.ne.s32.totalorder %s6908_s23, %s5863_s27 }
 0x9b1   : > { %s6906_s21 = scalar_lea.hbm %s7068_s7, %s5035_s0 }
 0x9b2   : > { %p5865_p12 = pnand %p5864_p11, %p6088_p5 }
 0x9b3   : > { %4451 = vrot.lane.b32.xlu1 %v4450_v59, %s7048_s5  ;;  %4488 = vrot.lane.b32.xlu0 %v4487_v60, %s7048_s5  ;;  %s5867_s5 = sshll.u32 %s5938_s4, 4  ;;  %s5868_s5 = int_to_ptr.vmem [resolvable:$false] %s5867_s5 }
 0x9b4   : > { %p5866_p13 = pneg %p5865_p12  ;;  %s5869_s1 = scalar_lea.vmem %s5868_s5, 2048 }
 0x9b5   : > { %p5870_p0 = scmp.lt.s32.totalorder %s6908_s23, %s5868_s5  ;;  %p5871_p1 = scmp.lt.s32.totalorder %s5869_s1, %s5863_s27 }
 0x9b7   : > { %4513 = vperm.xlu1 %5861, %v4503_v61   ;;  %4508 = vperm.xlu0 %5860, %v4502_v62   ;;  %p5872_p2 = por %p5871_p1, %p5870_p0 }
 0x9b9   : > { %p5873_p3 = pnand %p5872_p2, %p5866_p13 }
 0x9bb   : > { %4518 = vperm.xlu1 %5861, %v4504_v0   ;;  %4523 = vperm.xlu0 %5860, %v4505_v1  }
 0x9bf   : > { %4648 = vperm.xlu1 %5861, %v4642_v2   ;;  %4653 = vperm.xlu0 %5860, %v4643_v3  }
 0x9c3   : > { %4658 = vperm.xlu1 %5861, %v4644_v4   ;;  %4663 = vperm.xlu0 %5860, %v4645_v5  }
 0xa09   : > { %v4427_v6 = vpop.permute.xlu1 %4426 }
 0xa0d   : > { %v4432_v7 = vpop.permute.xlu1 %4431 }
 0xa11   : > { %v4422_v8 = vpop.permute.xlu1 %4421  ;;  %v4464_v9 = vpop.permute.xlu0 %4463 }
 0xa12   : > { %4424 = vst.msk [vmem:[#allocation2 + $0x20] sm:$0xf] %vm2570_vm2, %v4422_v8 }
 0xa13   : > { %4429 = vst.msk [vmem:[#allocation2 + $0x20] sm:$0xf] %vm2576_vm15, %v4427_v6 }
 0xa14   : > { %4434 = vst.msk [vmem:[#allocation2 + $0x20] sm:$0xf] %vm2582_vm13, %v4432_v7 }
 0xa15   : > { %v4437_v10 = vpop.permute.xlu1 %4436  ;;  %v4469_v11 = vpop.permute.xlu0 %4468 }
 0xa16   : > { %4439 = vst.msk [vmem:[#allocation2 + $0x20] sm:$0xf] %vm2588_vm12, %v4437_v10 }
 0xa19   : > { %v4442_v12 = vpop.permute.xlu1 %4441  ;;  %v4484_v13 = vpop.permute.xlu0 %4483 }
 0xa1a   : > { %4444 = vst.msk [vmem:[#allocation2 + $0x20] sm:$0xf] %vm2594_vm11, %v4442_v12 }
 0xa1d   : > { %v4459_v14 = vpop.permute.xlu1 %4458  ;;  %v4474_v15 = vpop.permute.xlu0 %4473 }
 0xa1e   : > { %4461 = vst.msk [vmem:[#allocation2 + $0x28] sm:$0xf] %vm2570_vm2, %v4459_v14 }
 0xa1f   : > { %4466 = vst.msk [vmem:[#allocation2 + $0x28] sm:$0xf] %vm2576_vm15, %v4464_v9 }
 0xa20   : > { %4471 = vst.msk [vmem:[#allocation2 + $0x28] sm:$0xf] %vm2582_vm13, %v4469_v11  ;;  %vm7065_vm13 = vcmask 1043456  }
 0xa21   : > { %4476 = vst.msk [vmem:[#allocation2 + $0x28] sm:$0xf] %vm2588_vm12, %v4474_v15  ;;  %v4447_v16 = vpop.permute.xlu1 %4446  ;;  %v4479_v17 = vpop.permute.xlu0 %4478  ;;  %vm4526_vm12 = vcmask 162816   ;;  %vm7066_vm15 = vmmov %vm7065_vm13 }
 0xa22   : > { %4449 = vst.msk [vmem:[#allocation2 + $0x20] sm:$0xf] %vm2600_vm10, %v4447_v16 }
 0xa23   : > { %4481 = vst.msk [vmem:[#allocation2 + $0x28] sm:$0xf] %vm2594_vm11, %v4479_v17 }
 0xa24   : > { %4486 = vst.msk [vmem:[#allocation2 + $0x28] sm:$0xf] %vm2600_vm10, %v4484_v13 }
 0xa25   : > { %v4452_v18 = vpop.permute.xlu1 %4451  ;;  %v4489_v19 = vpop.permute.xlu0 %4488 }
 0xa26   : > { %4454 = vst.msk [vmem:[#allocation2 + $0x20] sm:$0xf] %vm7063_vm9, %v4452_v18 }
 0xa27   : > { %4491 = vst.msk [vmem:[#allocation2 + $0x28] sm:$0xf] %vm7064_vm3, %v4489_v19 }
 0xa2d   : > { %v4496_v21 = vld [vmem:[#allocation2 + $0x20] sm:$0xf] }
 0xa2e   : > { %v4497_v20 = vld [vmem:[#allocation2 + $0x28] sm:$0xf] }
 0xa2f   : > { %5022 = vmatprep.subr.msk.mxu0 %vm7065_vm13, %v4497_v20 }
 0xa30   : > { %5023 = vmatpush1.msk.msra.mxu0 %vm7066_vm15, %v4496_v21 }
 0xa31   : > { %5024 = vmatmul.mubr.msk.f32.vlgmr.msra.gmra.mrb[104].mxu0 %vm4526_vm12, %v4498_v22 }
 0xa32   : > { %4615 = vmatprep.mubr.f32.mxu0 %v5936_v56 }
 0xa35   : > { %5025 = vmatmul.mubr.msk.f32.gmra.mrb[106].mxu0 %vm4526_vm12, %v4499_v23 }
 0xa36   : > { %4621 = vmatprep.mubr.f32.mxu0 %v5936_v56  ;;  %v4514_v26 = vpop.permute.xlu1 %4513  ;;  %v4509_v27 = vpop.permute.xlu0 %4508 }
 0xa39   : > { %5026 = vmatmul.mubr.msk.f32.gmra.mrb[108].mxu0 %vm4526_vm12, %v4500_v24 }
 0xa3a   : > { %4627 = vmatprep.mubr.f32.mxu0 %v5936_v56  ;;  %v4519_v28 = vpop.permute.xlu1 %4518  ;;  %v4524_v30 = vpop.permute.xlu0 %4523 }
 0xa3d   : > { %5027 = vmatmul.mubr.msk.f32.gmra.mrb[110].mxu0 %vm4526_vm12, %v4501_v25 }
 0xa3e   : > { %v4649_v34 = vpop.permute.xlu1 %4648  ;;  %v4654_v42 = vpop.permute.xlu0 %4653 }
 0xa42   : > { %v4659_v51 = vpop.permute.xlu1 %4658  ;;  %v4664_v61 = vpop.permute.xlu0 %4663 }
 0xb04   : > { %v4611_v29 = vpop.f32.mrb[104].mxu0 }
 0xb05   : > { %v4612_v31 = vadd.f32 %v4611_v29, %v4509_v27  ;;  %v4613_v32 = vpop.f32.mrb[105].mxu0 }
 0xb06   : > { %v4614_v33 = vadd.f32 %v4613_v32, %v4509_v27 }
 0xb07   : > { %vm4634_vm10 = vcmp.gt.f32.partialorder %v4612_v31, 0.0  ;;  %v4666_v35 = vmul.f32 %v4649_v34, %v4612_v31 }
 0xb08   : > { %vm4635_vm11 = vcmp.gt.f32.partialorder %v4614_v33, 0.0  ;;  %v4617_v56 = vpop.f32.mrb[106].mxu0  ;;  %v4667_v36 = vmul.f32 %v4649_v34, %v4614_v33 }
 0xb09   : > { %v4618_v37 = vadd.f32 %v4617_v56, %v4514_v26  ;;  %v4619_v38 = vpop.f32.mrb[107].mxu0  ;;  %v4674_v39 = vsel %vm4634_vm10, %v4612_v31, %v4666_v35 }
 0xb0a   : > { %v4620_v40 = vadd.f32 %v4619_v38, %v4514_v26  ;;  %v4675_v41 = vsel %vm4635_vm11, %v4614_v33, %v4667_v36  ;;  %4682 = vst [vmem:[%s6893_s30] sm:$0xff] %v4674_v39 }
 0xb0b   : > { %vm4636_vm2 = vcmp.gt.f32.partialorder %v4618_v37, 0.0  ;;  %4683 = vst [vmem:[%s6893_s30 + $0x8] sm:$0xff] %v4675_v41  ;;  %v4668_v43 = vmul.f32 %v4654_v42, %v4618_v37 }
 0xb0c   : > { %vm4637_vm0 = vcmp.gt.f32.partialorder %v4620_v40, 0.0  ;;  %v4623_v44 = vpop.f32.mrb[108].mxu0  ;;  %v4669_v45 = vmul.f32 %v4654_v42, %v4620_v40 }
 0xb0d   : > { %v4624_v46 = vadd.f32 %v4623_v44, %v4519_v28  ;;  %v4625_v47 = vpop.f32.mrb[109].mxu0  ;;  %v4676_v48 = vsel %vm4636_vm2, %v4618_v37, %v4668_v43 }
 0xb0e   : > { %v4626_v49 = vadd.f32 %v4625_v47, %v4519_v28  ;;  %v4677_v50 = vsel %vm4637_vm0, %v4620_v40, %v4669_v45  ;;  %4684 = vst [vmem:[%s6893_s30 + $0x10] sm:$0xff] %v4676_v48 }
 0xb0f   : > { %vm4638_vm1 = vcmp.gt.f32.partialorder %v4624_v46, 0.0  ;;  %4685 = vst [vmem:[%s6893_s30 + $0x18] sm:$0xff] %v4677_v50  ;;  %v4670_v52 = vmul.f32 %v4659_v51, %v4624_v46 }
 0xb10   : > { %vm4639_vm4 = vcmp.gt.f32.partialorder %v4626_v49, 0.0  ;;  %v4629_v53 = vpop.f32.mrb[110].mxu0  ;;  %v4671_v54 = vmul.f32 %v4659_v51, %v4626_v49 }
 0xb11   : > { %v4630_v55 = vadd.f32 %v4629_v53, %v4524_v30  ;;  %v4631_v57 = vpop.f32.mrb[111].mxu0  ;;  %v4678_v58 = vsel %vm4638_vm1, %v4624_v46, %v4670_v52 }
 0xb12   : > { %v4632_v59 = vadd.f32 %v4631_v57, %v4524_v30  ;;  %v4679_v60 = vsel %vm4639_vm4, %v4626_v49, %v4671_v54  ;;  %4686 = vst [vmem:[%s6893_s30 + $0x20] sm:$0xff] %v4678_v58 }
 0xb13   : > { %vm4640_vm6 = vcmp.gt.f32.partialorder %v4630_v55, 0.0  ;;  %4687 = vst [vmem:[%s6893_s30 + $0x28] sm:$0xff] %v4679_v60  ;;  %v4672_v62 = vmul.f32 %v4664_v61, %v4630_v55 }
 0xb14   : > { %vm4641_vm14 = vcmp.gt.f32.partialorder %v4632_v59, 0.0  ;;  %v4673_v63 = vmul.f32 %v4664_v61, %v4632_v59 }
 0xb15   : > { %v4680_v0 = vsel %vm4640_vm6, %v4630_v55, %v4672_v62 }
 0xb16   : > { %v4681_v1 = vsel %vm4641_vm14, %v4632_v59, %v4673_v63  ;;  %4688 = vst [vmem:[%s6893_s30 + $0x30] sm:$0xff] %v4680_v0 }
 0xb17   : > { %4689 = vst [vmem:[%s6893_s30 + $0x38] sm:$0xff] %v4681_v1 }
 0xb18   : > { %5876 = shalt.err (!%p5873_p3)
}
 0xb19   : > { %s5877_s9 = scalar_lea.hbm %s6906_s21, 1024  ;;  %s5881_s0 = scalar_lea.hbm %s7068_s7, 2048 }
 0xb1a   : > { %p5878_p4 = scmp.ne.s32.totalorder %s6906_s21, %s5877_s9  ;;  %p5882_p9 = scmp.lt.u32.totalorder %s6906_s21, %s7068_s7 }
 0xb1b   : > { %p5883_p10 = scmp.lt.u32.totalorder %s5881_s0, %s5877_s9  ;;  %p5885_p12 = scmp.lt.u32.totalorder %s5877_s9, %s6906_s21 }
 0xb1c   : > { %p5879_p7 = pnand %p5878_p4, %p6088_p5 }
 0xb1d   : > { %p5884_p11 = por %p5883_p10, %p5882_p9 }
 0xb1e   : > { %p5880_p8 = pneg %p5879_p7 }
 0xb1f   : > { %p5886_p13 = por %p5885_p12, %p5884_p11 }
 0xb21   : > { %p5887_p0 = pnand %p5886_p13, %p5880_p8 }
 0xb23   : > { %5890 = shalt.err (!%p5887_p0)
}
 0xb24   : > { %s5939_s27 = smov 256  }
 0xb25   : > { %5809 = dma.vmem_to_hbm [thread:$0]  (%p6088_p5), %s6908_s23, 1024, %s6906_s21, %s6914_s3, %s5939_s27, %s5939_s27, %s7047_s26  }
 0xb26 PF: > { %s7069_s4 = sld [smem:[#allocation8_spill]]  ;;  %s7070_s5 = sld [smem:[#allocation6_spill]] }
 0xb2c   : > { %p5815_p1 = scmp.ge.s32.totalorder %s7069_s4, 2  ;;  %s4719_s6 = sand.u32 1, %s7070_s5  }
 0xb2d   : > { %s4720_s9 = scalar_lea.sflag [#allocation4], %s4719_s6 }
 0xb2e   : > { %p5812_p2 = pnand %p5815_p1, %p6092_p6 }
 0xb30   : > { %5908 = dma.done.wait (!%p5812_p2), %s4720_s9, 1024  }
 0xb31   : > { %5910 = vsyncadd (!%p5812_p2), %s4720_s9, 4294966272  ;;  %s7072_s27 = sld [smem:[#allocation9_spill]]  ;;  %s7073_s30 = sld [smem:[#allocation7_spill]] }
 0xb32   : > { %s7074_s26 = sld [smem:[#allocation10_spill]]  ;;  %s7075_s2 = smov %s5917_s25 }
 0xb37   : > { %p31_p3 = scmp.ge.s32.totalorder %s7072_s27, 4   ;;  %s7076_s25 = smov %s7073_s30 }
 0xb39   :  { %33 = sbr.rel (!%p31_p3) target bundleno = 15 (0xf), region = 150 }
 0xb40   :  { %4725 = vsyncpa [#allocation4], 1 }
 0xb41   :  { %4727 = vsyncpa [#allocation4 + $0x1], 1 }

</bundles_post_ra>
